<compile_context>
chip_gen: v7x
topology: tpu7x:2x2x1
jax: 0.10.0
libtpu: 0.0.40
codegen_flags: <defaults>
</compile_context>

<pallas_src>
import jax
import jax.numpy as jnp
from jax.experimental import pallas as pl
from jax.experimental.pallas import tpu as pltpu

# Synthetic env dims (SeqRosModel is not available); small, consistent values.
N_STATES = 16     # env.n_observations
N_ACTIONS = 8     # env.n_actions
H1, H2, H3 = 512, 1024, 1024
OUT_PAD = 128     # lane-dense padded output width (>= N_ACTIONS)

TN = 256          # streamed weight column-tile width
NW2 = H2 // TN    # 4 tiles of w2
NW3 = H3 // TN    # 4 tiles of w3


# ----------------------------------------------------------------------------
# Kernel A: single-tile batch, weights streamed from HBM under compute.
# ----------------------------------------------------------------------------
def _mlp_stream_kernel(x_ref, w1_ref, b1_ref, w2_hbm, b2_ref, w3_hbm, b3_ref,
                       w4_hbm, b4_ref, out_ref,
                       w2_vmem, w3_vmem, w4_vmem, h2_scr, h3_scr,
                       sem2, sem3, sem4):
    # Issue every weight-tile DMA immediately.  Issue order == consumption
    # order (w2 tiles, then w3 tiles, then w4), so each tile's DMA overlaps
    # the MXU work on the previously arrived tiles.
    w2_cp = []
    for j in range(NW2):
        cp = pltpu.make_async_copy(w2_hbm.at[:, j * TN:(j + 1) * TN],
                                   w2_vmem.at[:, j * TN:(j + 1) * TN],
                                   sem2.at[j])
        cp.start()
        w2_cp.append(cp)
    w3_cp = []
    for j in range(NW3):
        cp = pltpu.make_async_copy(w3_hbm.at[:, j * TN:(j + 1) * TN],
                                   w3_vmem.at[:, j * TN:(j + 1) * TN],
                                   sem3.at[j])
        cp.start()
        w3_cp.append(cp)
    w4_cp = pltpu.make_async_copy(w4_hbm, w4_vmem, sem4.at[0])
    w4_cp.start()

    # Layer 1 (tiny, resident weights) runs under the first w2 tile's DMA.
    x = x_ref[...].astype(jnp.bfloat16)
    h = jnp.dot(x, w1_ref[...], preferred_element_type=jnp.float32) + b1_ref[...]
    h = jnp.maximum(h, 0.0).astype(jnp.bfloat16)

    # Layer 2: consume streamed 256-column tiles of w2 as they land.
    for j in range(NW2):
        w2_cp[j].wait()
        y = jnp.dot(h, w2_vmem[:, j * TN:(j + 1) * TN],
                    preferred_element_type=jnp.float32)
        y = y + b2_ref[:, j * TN:(j + 1) * TN]
        h2_scr[:, j * TN:(j + 1) * TN] = jnp.maximum(y, 0.0).astype(h2_scr.dtype)
    h = h2_scr[...]

    # Layer 3: same column-tile streaming for w3.
    for j in range(NW3):
        w3_cp[j].wait()
        y = jnp.dot(h, w3_vmem[:, j * TN:(j + 1) * TN],
                    preferred_element_type=jnp.float32)
        y = y + b3_ref[:, j * TN:(j + 1) * TN]
        h3_scr[:, j * TN:(j + 1) * TN] = jnp.maximum(y, 0.0).astype(h3_scr.dtype)
    h = h3_scr[...]

    # Output layer (raw Q-values); columns >= N_ACTIONS are zero padding.
    w4_cp.wait()
    y = jnp.dot(h, w4_vmem[...], preferred_element_type=jnp.float32) + b4_ref[...]
    out_ref[...] = y.astype(out_ref.dtype)


# ----------------------------------------------------------------------------
# Kernel B: many batch tiles, weights resident in VMEM across grid steps.
# ----------------------------------------------------------------------------
def _mlp_resident_kernel(x_ref, w1_ref, b1_ref, w2_ref, b2_ref, w3_ref, b3_ref,
                         w4_ref, b4_ref, out_ref):
    x = x_ref[...].astype(jnp.bfloat16)

    h = jnp.dot(x, w1_ref[...], preferred_element_type=jnp.float32) + b1_ref[...]
    h = jnp.maximum(h, 0.0).astype(jnp.bfloat16)

    h = jnp.dot(h, w2_ref[...], preferred_element_type=jnp.float32) + b2_ref[...]
    h = jnp.maximum(h, 0.0).astype(jnp.bfloat16)

    h = jnp.dot(h, w3_ref[...], preferred_element_type=jnp.float32) + b3_ref[...]
    h = jnp.maximum(h, 0.0).astype(jnp.bfloat16)

    y = jnp.dot(h, w4_ref[...], preferred_element_type=jnp.float32) + b4_ref[...]
    out_ref[...] = y.astype(out_ref.dtype)


# ----------------------------------------------------------------------------
# Wrappers
# ----------------------------------------------------------------------------
def _cost_estimate(rows):
    weight_bytes = 2 * (N_STATES * H1 + H1 * H2 + H2 * H3 + H3 * OUT_PAD)  # bf16
    bias_bytes = 4 * (H1 + H2 + H3 + OUT_PAD)
    io_bytes = 4 * rows * (N_STATES + OUT_PAD)
    flops = 2 * rows * (N_STATES * H1 + H1 * H2 + H2 * H3 + H3 * OUT_PAD)
    return pl.CostEstimate(flops=flops, transcendentals=0,
                           bytes_accessed=weight_bytes + bias_bytes + io_bytes)


def _choose_tiling(B):
    """Returns (TB, B_pad, n_tiles, use_streaming)."""
    B8 = max(8, -(-B // 8) * 8)
    if B8 <= 512:
        # DQN hot path (action selection, typical replay batches): a single
        # grid step, with the big weights streamed under the MXU work.
        return B8, B8, 1, True
    # Large training batches: weights stay resident across >= 2 grid steps
    # ("parallel" axis -> both v7x TensorCores; TB=512 keeps the ~0.35us
    # per-step overhead small relative to per-step MXU time on v6e).
    TB = 512 if B8 >= 1024 else 256
    B_pad = -(-B8 // TB) * TB
    return TB, B_pad, B_pad // TB, False


def _forward_streaming(x, p, TB):
    def res(shape):
        return pl.BlockSpec(shape, lambda i: (0, 0))

    return pl.pallas_call(
        _mlp_stream_kernel,
        out_shape=jax.ShapeDtypeStruct((TB, OUT_PAD), jnp.float32),
        grid=(1,),
        in_specs=[
            pl.BlockSpec((TB, N_STATES), lambda i: (0, 0)),
            res(p["w1"].shape), res(p["b1"].shape),
            pl.BlockSpec(memory_space=pl.ANY),        # w2: streamed from HBM
            res(p["b2"].shape),
            pl.BlockSpec(memory_space=pl.ANY),        # w3: streamed from HBM
            res(p["b3"].shape),
            pl.BlockSpec(memory_space=pl.ANY),        # w4: streamed from HBM
            res(p["b4"].shape),
        ],
        out_specs=pl.BlockSpec((TB, OUT_PAD), lambda i: (0, 0)),
        scratch_shapes=[
            pltpu.VMEM((H1, H2), jnp.bfloat16),       # w2 landing buffer (1 MiB)
            pltpu.VMEM((H2, H3), jnp.bfloat16),       # w3 landing buffer (2 MiB)
            pltpu.VMEM((H3, OUT_PAD), jnp.bfloat16),  # w4 landing buffer
            pltpu.VMEM((TB, H2), jnp.bfloat16),       # h2 activations
            pltpu.VMEM((TB, H3), jnp.bfloat16),       # h3 activations
            pltpu.SemaphoreType.DMA((NW2,)),
            pltpu.SemaphoreType.DMA((NW3,)),
            pltpu.SemaphoreType.DMA((1,)),
        ],
        compiler_params=pltpu.CompilerParams(
            dimension_semantics=("arbitrary",),
            vmem_limit_bytes=32 << 20,    # fits v7x's 64 MiB physical VMEM/TC
        ),
        cost_estimate=_cost_estimate(TB),
    )(x, p["w1"], p["b1"], p["w2"], p["b2"], p["w3"], p["b3"], p["w4"], p["b4"])


def _forward_tiled(x, p, TB, n_tiles):
    B_pad = x.shape[0]

    def res(shape):
        # Constant block index: the pipeline fetches each weight once and keeps
        # it resident in VMEM for all remaining grid steps.
        # Note: pl.Buffered(1) on these specs would free the unused second
        # buffer (~3.3 MiB of VMEM headroom) but is unnecessary at these sizes.
        return pl.BlockSpec(shape, lambda i: (0, 0))

    return pl.pallas_call(
        _mlp_resident_kernel,
        out_shape=jax.ShapeDtypeStruct((B_pad, OUT_PAD), jnp.float32),
        grid=(n_tiles,),
        in_specs=[
            pl.BlockSpec((TB, N_STATES), lambda i: (i, 0)),
            res(p["w1"].shape), res(p["b1"].shape),
            res(p["w2"].shape), res(p["b2"].shape),
            res(p["w3"].shape), res(p["b3"].shape),
            res(p["w4"].shape), res(p["b4"].shape),
        ],
        out_specs=pl.BlockSpec((TB, OUT_PAD), lambda i: (i, 0)),
        compiler_params=pltpu.CompilerParams(
            dimension_semantics=("parallel",),   # megacore sharding on v7x
            vmem_limit_bytes=32 << 20,
        ),
        cost_estimate=_cost_estimate(B_pad),
    )(x, p["w1"], p["b1"], p["w2"], p["b2"], p["w3"], p["b3"], p["w4"], p["b4"])


def net_forward(x, params):
    """x: [B, N_STATES] float32. Returns [B, N_ACTIONS] float32 Q-values."""
    B = x.shape[0]
    TB, B_pad, n_tiles, streaming = _choose_tiling(B)
    if B_pad != B:
        x = jnp.pad(x, ((0, B_pad - B), (0, 0)))
    if streaming:
        out = _forward_streaming(x, params, TB)
    else:
        out = _forward_tiled(x, params, TB, n_tiles)
    return out[:B, :N_ACTIONS]


def init_params(key):
    """Init mirroring the module: weights ~ N(0, 0.1), biases uniform(+-1/sqrt(fan_in)).

    Weights are stored transposed (in, out) and cast to bf16 (kernels stream
    bf16, accumulate in f32).  Biases stay f32, kept 2D (1, out).  The final
    layer is zero-padded to OUT_PAD output columns for lane-dense stores.
    """
    ks = jax.random.split(key, 8)

    def linear(kw, kb, fan_in, fan_out, pad_out=None):
        w = 0.1 * jax.random.normal(kw, (fan_in, fan_out), dtype=jnp.float32)
        bound = 1.0 / jnp.sqrt(jnp.float32(fan_in))
        b = jax.random.uniform(kb, (1, fan_out), jnp.float32, -bound, bound)
        if pad_out is not None and pad_out > fan_out:
            w = jnp.pad(w, ((0, 0), (0, pad_out - fan_out)))
            b = jnp.pad(b, ((0, 0), (0, pad_out - fan_out)))
        return w.astype(jnp.bfloat16), b

    w1, b1 = linear(ks[0], ks[1], N_STATES, H1)
    w2, b2 = linear(ks[2], ks[3], H1, H2)
    w3, b3 = linear(ks[4], ks[5], H2, H3)
    w4, b4 = linear(ks[6], ks[7], H3, N_ACTIONS, pad_out=OUT_PAD)
    return dict(w1=w1, b1=b1, w2=w2, b2=b2, w3=w3, b3=b3, w4=w4, b4=b4)


def net_forward_ref(x, p):
    """Pure-JAX reference using the same bf16-weight / f32-accumulate math."""
    def layer(h, w, b, relu):
        y = jnp.dot(h.astype(jnp.bfloat16), w, preferred_element_type=jnp.float32) + b
        return jnp.maximum(y, 0.0) if relu else y

    h = layer(x, p["w1"], p["b1"], True)
    h = layer(h, p["w2"], p["b2"], True)
    h = layer(h, p["w3"], p["b3"], True)
    y = layer(h, p["w4"], p["b4"], False)
    return y[:, :N_ACTIONS]


if __name__ == "__main__":
    key = jax.random.PRNGKey(0)
    k_x, k_p, k_x2 = jax.random.split(key, 3)

    params = init_params(k_p)

    # Small inference batch -> single-tile weight-streaming path.
    batch = 2
    x = jax.random.normal(k_x, (batch, N_STATES), dtype=jnp.float32)
    actions_value = jax.block_until_ready(net_forward(x, params))
    ref = net_forward_ref(x, params)
    assert actions_value.shape == (batch, N_ACTIONS)
    assert jnp.allclose(actions_value, ref, atol=1e-2, rtol=1e-2), (
        jnp.max(jnp.abs(actions_value - ref)))

    # Larger training-style batch -> multi-tile resident-weight path.
    batch2 = 600
    x2 = jax.random.normal(k_x2, (batch2, N_STATES), dtype=jnp.float32)
    q2 = jax.block_until_ready(net_forward(x2, params))
    ref2 = net_forward_ref(x2, params)
    assert q2.shape == (batch2, N_ACTIONS)
    assert jnp.allclose(q2, ref2, atol=1e-2, rtol=1e-2), (
        jnp.max(jnp.abs(q2 - ref2)))

    print("KERNEL_OK")
</pallas_src>

<mosaic_0001>
module attributes {stable_mosaic.version = 11 : i64} {
  func.func @_mlp_stream_kernel(%arg0: i32, %arg1: memref<8x16xf32, #tpu.memory_space<vmem>>, %arg2: memref<16x512xbf16, #tpu.memory_space<vmem>>, %arg3: memref<1x512xf32, #tpu.memory_space<vmem>>, %arg4: memref<512x1024xbf16, #tpu.memory_space<any>>, %arg5: memref<1x1024xf32, #tpu.memory_space<vmem>>, %arg6: memref<1024x1024xbf16, #tpu.memory_space<any>>, %arg7: memref<1x1024xf32, #tpu.memory_space<vmem>>, %arg8: memref<1024x128xbf16, #tpu.memory_space<any>>, %arg9: memref<1x128xf32, #tpu.memory_space<vmem>>, %arg10: memref<8x128xf32, #tpu.memory_space<vmem>>, %arg11: memref<512x1024xbf16, #tpu.memory_space<vmem>>, %arg12: memref<1024x1024xbf16, #tpu.memory_space<vmem>>, %arg13: memref<1024x128xbf16, #tpu.memory_space<vmem>>, %arg14: memref<8x1024xbf16, #tpu.memory_space<vmem>>, %arg15: memref<8x1024xbf16, #tpu.memory_space<vmem>>, %arg16: memref<4x!tpu.dma_semaphore, #tpu.memory_space<semaphore_mem>>, %arg17: memref<4x!tpu.dma_semaphore, #tpu.memory_space<semaphore_mem>>, %arg18: memref<1x!tpu.dma_semaphore, #tpu.memory_space<semaphore_mem>>) attributes {dimension_semantics = [#tpu.dimension_semantics<arbitrary>], iteration_bounds = array<i64: 1>, scalar_prefetch = 0 : i64, scratch_operands = 8 : i64, tpu.core_type = #tpu.core_type<tc>, window_params = [{pipeline_mode = #tpu.pipeline_mode<synchronous>, transform_indices = @transform_0, window_bounds = array<i64: 8, 16>}, {pipeline_mode = #tpu.pipeline_mode<synchronous>, transform_indices = @transform_1, window_bounds = array<i64: 16, 512>}, {pipeline_mode = #tpu.pipeline_mode<synchronous>, transform_indices = @transform_2, window_bounds = array<i64: 1, 512>}, {}, {pipeline_mode = #tpu.pipeline_mode<synchronous>, transform_indices = @transform_4, window_bounds = array<i64: 1, 1024>}, {}, {pipeline_mode = #tpu.pipeline_mode<synchronous>, transform_indices = @transform_6, window_bounds = array<i64: 1, 1024>}, {}, {pipeline_mode = #tpu.pipeline_mode<synchronous>, transform_indices = @transform_8, window_bounds = array<i64: 1, 128>}, {pipeline_mode = #tpu.pipeline_mode<synchronous>, transform_indices = @transform_9, window_bounds = array<i64: 8, 128>}]} {
    %c0_i32 = arith.constant 0 : i32
    %c0_i32_0 = arith.constant 0 : i32
    %c0_i32_1 = arith.constant 0 : i32
    %0 = tpu.memref_slice %arg4[%c0_i32_0, %c0_i32_1] : memref<512x1024xbf16, #tpu.memory_space<any>> -> memref<512x256xbf16, #tpu.memory_space<any>>
    %c0_i32_2 = arith.constant 0 : i32
    %c0_i32_3 = arith.constant 0 : i32
    %1 = tpu.memref_slice %arg11[%c0_i32_2, %c0_i32_3] : memref<512x1024xbf16, #tpu.memory_space<vmem>> -> memref<512x256xbf16, #tpu.memory_space<vmem>>
    %2 = tpu.memref_slice %arg16[%c0_i32] : memref<4x!tpu.dma_semaphore, #tpu.memory_space<semaphore_mem>> -> memref<1x!tpu.dma_semaphore, #tpu.memory_space<semaphore_mem>>
    %3 = tpu.memref_squeeze %2 : memref<1x!tpu.dma_semaphore, #tpu.memory_space<semaphore_mem>> -> memref<!tpu.dma_semaphore, #tpu.memory_space<semaphore_mem>>
    tpu.enqueue_dma source(%0 : memref<512x256xbf16, #tpu.memory_space<any>>) target(%1 : memref<512x256xbf16, #tpu.memory_space<vmem>>) target_semaphore(%3 : memref<!tpu.dma_semaphore, #tpu.memory_space<semaphore_mem>>)
    %c1_i32 = arith.constant 1 : i32
    %c0_i32_4 = arith.constant 0 : i32
    %c256_i32 = arith.constant 256 : i32
    %4 = tpu.memref_slice %arg4[%c0_i32_4, %c256_i32] : memref<512x1024xbf16, #tpu.memory_space<any>> -> memref<512x256xbf16, #tpu.memory_space<any>>
    %c0_i32_5 = arith.constant 0 : i32
    %c256_i32_6 = arith.constant 256 : i32
    %5 = tpu.memref_slice %arg11[%c0_i32_5, %c256_i32_6] : memref<512x1024xbf16, #tpu.memory_space<vmem>> -> memref<512x256xbf16, #tpu.memory_space<vmem>>
    %6 = tpu.memref_slice %arg16[%c1_i32] : memref<4x!tpu.dma_semaphore, #tpu.memory_space<semaphore_mem>> -> memref<1x!tpu.dma_semaphore, #tpu.memory_space<semaphore_mem>>
    %7 = tpu.memref_squeeze %6 : memref<1x!tpu.dma_semaphore, #tpu.memory_space<semaphore_mem>> -> memref<!tpu.dma_semaphore, #tpu.memory_space<semaphore_mem>>
    tpu.enqueue_dma source(%4 : memref<512x256xbf16, #tpu.memory_space<any>>) target(%5 : memref<512x256xbf16, #tpu.memory_space<vmem>>) target_semaphore(%7 : memref<!tpu.dma_semaphore, #tpu.memory_space<semaphore_mem>>)
    %c2_i32 = arith.constant 2 : i32
    %c0_i32_7 = arith.constant 0 : i32
    %c512_i32 = arith.constant 512 : i32
    %8 = tpu.memref_slice %arg4[%c0_i32_7, %c512_i32] : memref<512x1024xbf16, #tpu.memory_space<any>> -> memref<512x256xbf16, #tpu.memory_space<any>>
    %c0_i32_8 = arith.constant 0 : i32
    %c512_i32_9 = arith.constant 512 : i32
    %9 = tpu.memref_slice %arg11[%c0_i32_8, %c512_i32_9] : memref<512x1024xbf16, #tpu.memory_space<vmem>> -> memref<512x256xbf16, #tpu.memory_space<vmem>>
    %10 = tpu.memref_slice %arg16[%c2_i32] : memref<4x!tpu.dma_semaphore, #tpu.memory_space<semaphore_mem>> -> memref<1x!tpu.dma_semaphore, #tpu.memory_space<semaphore_mem>>
    %11 = tpu.memref_squeeze %10 : memref<1x!tpu.dma_semaphore, #tpu.memory_space<semaphore_mem>> -> memref<!tpu.dma_semaphore, #tpu.memory_space<semaphore_mem>>
    tpu.enqueue_dma source(%8 : memref<512x256xbf16, #tpu.memory_space<any>>) target(%9 : memref<512x256xbf16, #tpu.memory_space<vmem>>) target_semaphore(%11 : memref<!tpu.dma_semaphore, #tpu.memory_space<semaphore_mem>>)
    %c3_i32 = arith.constant 3 : i32
    %c0_i32_10 = arith.constant 0 : i32
    %c768_i32 = arith.constant 768 : i32
    %12 = tpu.memref_slice %arg4[%c0_i32_10, %c768_i32] : memref<512x1024xbf16, #tpu.memory_space<any>> -> memref<512x256xbf16, #tpu.memory_space<any>>
    %c0_i32_11 = arith.constant 0 : i32
    %c768_i32_12 = arith.constant 768 : i32
    %13 = tpu.memref_slice %arg11[%c0_i32_11, %c768_i32_12] : memref<512x1024xbf16, #tpu.memory_space<vmem>> -> memref<512x256xbf16, #tpu.memory_space<vmem>>
    %14 = tpu.memref_slice %arg16[%c3_i32] : memref<4x!tpu.dma_semaphore, #tpu.memory_space<semaphore_mem>> -> memref<1x!tpu.dma_semaphore, #tpu.memory_space<semaphore_mem>>
    %15 = tpu.memref_squeeze %14 : memref<1x!tpu.dma_semaphore, #tpu.memory_space<semaphore_mem>> -> memref<!tpu.dma_semaphore, #tpu.memory_space<semaphore_mem>>
    tpu.enqueue_dma source(%12 : memref<512x256xbf16, #tpu.memory_space<any>>) target(%13 : memref<512x256xbf16, #tpu.memory_space<vmem>>) target_semaphore(%15 : memref<!tpu.dma_semaphore, #tpu.memory_space<semaphore_mem>>)
    %c0_i32_13 = arith.constant 0 : i32
    %c0_i32_14 = arith.constant 0 : i32
    %c0_i32_15 = arith.constant 0 : i32
    %16 = tpu.memref_slice %arg6[%c0_i32_14, %c0_i32_15] : memref<1024x1024xbf16, #tpu.memory_space<any>> -> memref<1024x256xbf16, #tpu.memory_space<any>>
    %c0_i32_16 = arith.constant 0 : i32
    %c0_i32_17 = arith.constant 0 : i32
    %17 = tpu.memref_slice %arg12[%c0_i32_16, %c0_i32_17] : memref<1024x1024xbf16, #tpu.memory_space<vmem>> -> memref<1024x256xbf16, #tpu.memory_space<vmem>>
    %18 = tpu.memref_slice %arg17[%c0_i32_13] : memref<4x!tpu.dma_semaphore, #tpu.memory_space<semaphore_mem>> -> memref<1x!tpu.dma_semaphore, #tpu.memory_space<semaphore_mem>>
    %19 = tpu.memref_squeeze %18 : memref<1x!tpu.dma_semaphore, #tpu.memory_space<semaphore_mem>> -> memref<!tpu.dma_semaphore, #tpu.memory_space<semaphore_mem>>
    tpu.enqueue_dma source(%16 : memref<1024x256xbf16, #tpu.memory_space<any>>) target(%17 : memref<1024x256xbf16, #tpu.memory_space<vmem>>) target_semaphore(%19 : memref<!tpu.dma_semaphore, #tpu.memory_space<semaphore_mem>>)
    %c1_i32_18 = arith.constant 1 : i32
    %c0_i32_19 = arith.constant 0 : i32
    %c256_i32_20 = arith.constant 256 : i32
    %20 = tpu.memref_slice %arg6[%c0_i32_19, %c256_i32_20] : memref<1024x1024xbf16, #tpu.memory_space<any>> -> memref<1024x256xbf16, #tpu.memory_space<any>>
    %c0_i32_21 = arith.constant 0 : i32
    %c256_i32_22 = arith.constant 256 : i32
    %21 = tpu.memref_slice %arg12[%c0_i32_21, %c256_i32_22] : memref<1024x1024xbf16, #tpu.memory_space<vmem>> -> memref<1024x256xbf16, #tpu.memory_space<vmem>>
    %22 = tpu.memref_slice %arg17[%c1_i32_18] : memref<4x!tpu.dma_semaphore, #tpu.memory_space<semaphore_mem>> -> memref<1x!tpu.dma_semaphore, #tpu.memory_space<semaphore_mem>>
    %23 = tpu.memref_squeeze %22 : memref<1x!tpu.dma_semaphore, #tpu.memory_space<semaphore_mem>> -> memref<!tpu.dma_semaphore, #tpu.memory_space<semaphore_mem>>
    tpu.enqueue_dma source(%20 : memref<1024x256xbf16, #tpu.memory_space<any>>) target(%21 : memref<1024x256xbf16, #tpu.memory_space<vmem>>) target_semaphore(%23 : memref<!tpu.dma_semaphore, #tpu.memory_space<semaphore_mem>>)
    %c2_i32_23 = arith.constant 2 : i32
    %c0_i32_24 = arith.constant 0 : i32
    %c512_i32_25 = arith.constant 512 : i32
    %24 = tpu.memref_slice %arg6[%c0_i32_24, %c512_i32_25] : memref<1024x1024xbf16, #tpu.memory_space<any>> -> memref<1024x256xbf16, #tpu.memory_space<any>>
    %c0_i32_26 = arith.constant 0 : i32
    %c512_i32_27 = arith.constant 512 : i32
    %25 = tpu.memref_slice %arg12[%c0_i32_26, %c512_i32_27] : memref<1024x1024xbf16, #tpu.memory_space<vmem>> -> memref<1024x256xbf16, #tpu.memory_space<vmem>>
    %26 = tpu.memref_slice %arg17[%c2_i32_23] : memref<4x!tpu.dma_semaphore, #tpu.memory_space<semaphore_mem>> -> memref<1x!tpu.dma_semaphore, #tpu.memory_space<semaphore_mem>>
    %27 = tpu.memref_squeeze %26 : memref<1x!tpu.dma_semaphore, #tpu.memory_space<semaphore_mem>> -> memref<!tpu.dma_semaphore, #tpu.memory_space<semaphore_mem>>
    tpu.enqueue_dma source(%24 : memref<1024x256xbf16, #tpu.memory_space<any>>) target(%25 : memref<1024x256xbf16, #tpu.memory_space<vmem>>) target_semaphore(%27 : memref<!tpu.dma_semaphore, #tpu.memory_space<semaphore_mem>>)
    %c3_i32_28 = arith.constant 3 : i32
    %c0_i32_29 = arith.constant 0 : i32
    %c768_i32_30 = arith.constant 768 : i32
    %28 = tpu.memref_slice %arg6[%c0_i32_29, %c768_i32_30] : memref<1024x1024xbf16, #tpu.memory_space<any>> -> memref<1024x256xbf16, #tpu.memory_space<any>>
    %c0_i32_31 = arith.constant 0 : i32
    %c768_i32_32 = arith.constant 768 : i32
    %29 = tpu.memref_slice %arg12[%c0_i32_31, %c768_i32_32] : memref<1024x1024xbf16, #tpu.memory_space<vmem>> -> memref<1024x256xbf16, #tpu.memory_space<vmem>>
    %30 = tpu.memref_slice %arg17[%c3_i32_28] : memref<4x!tpu.dma_semaphore, #tpu.memory_space<semaphore_mem>> -> memref<1x!tpu.dma_semaphore, #tpu.memory_space<semaphore_mem>>
    %31 = tpu.memref_squeeze %30 : memref<1x!tpu.dma_semaphore, #tpu.memory_space<semaphore_mem>> -> memref<!tpu.dma_semaphore, #tpu.memory_space<semaphore_mem>>
    tpu.enqueue_dma source(%28 : memref<1024x256xbf16, #tpu.memory_space<any>>) target(%29 : memref<1024x256xbf16, #tpu.memory_space<vmem>>) target_semaphore(%31 : memref<!tpu.dma_semaphore, #tpu.memory_space<semaphore_mem>>)
    %c0_i32_33 = arith.constant 0 : i32
    %32 = tpu.memref_slice %arg18[%c0_i32_33] : memref<1x!tpu.dma_semaphore, #tpu.memory_space<semaphore_mem>> -> memref<1x!tpu.dma_semaphore, #tpu.memory_space<semaphore_mem>>
    %33 = tpu.memref_squeeze %32 : memref<1x!tpu.dma_semaphore, #tpu.memory_space<semaphore_mem>> -> memref<!tpu.dma_semaphore, #tpu.memory_space<semaphore_mem>>
    tpu.enqueue_dma source(%arg8 : memref<1024x128xbf16, #tpu.memory_space<any>>) target(%arg13 : memref<1024x128xbf16, #tpu.memory_space<vmem>>) target_semaphore(%33 : memref<!tpu.dma_semaphore, #tpu.memory_space<semaphore_mem>>)
    %c0 = arith.constant 0 : index
    %c0_34 = arith.constant 0 : index
    %34 = vector.load %arg1[%c0, %c0_34] : memref<8x16xf32, #tpu.memory_space<vmem>>, vector<8x16xf32>
    %35 = arith.truncf %34 : vector<8x16xf32> to vector<8x16xbf16>
    %c0_35 = arith.constant 0 : index
    %c0_36 = arith.constant 0 : index
    %36 = vector.load %arg2[%c0_35, %c0_36] : memref<16x512xbf16, #tpu.memory_space<vmem>>, vector<16x512xbf16>
    %cst = arith.constant dense<0.000000e+00> : vector<8x512xf32>
    %37 = tpu.matmul %35, %36, %cst {dimension_numbers = #tpu.dot_dimension_numbers<[1], [0], [0], [1], [0, 0, 1, 1], [], []>} : vector<8x16xbf16>, vector<16x512xbf16>, vector<8x512xf32> -> vector<8x512xf32>
    %c0_37 = arith.constant 0 : index
    %c0_38 = arith.constant 0 : index
    %38 = vector.load %arg3[%c0_37, %c0_38] : memref<1x512xf32, #tpu.memory_space<vmem>>, vector<1x512xf32>
    %39 = vector.broadcast %38 : vector<1x512xf32> to vector<8x512xf32>
    %40 = arith.addf %37, %39 : vector<8x512xf32>
    %cst_39 = arith.constant 0.000000e+00 : f32
    %41 = vector.broadcast %cst_39 : f32 to vector<8x512xf32>
    %42 = arith.maximumf %40, %41 : vector<8x512xf32>
    %43 = arith.truncf %42 : vector<8x512xf32> to vector<8x512xbf16>
    %c0_i32_40 = arith.constant 0 : i32
    %c0_i32_41 = arith.constant 0 : i32
    %c0_i32_42 = arith.constant 0 : i32
    %44 = tpu.memref_slice %arg4[%c0_i32_41, %c0_i32_42] : memref<512x1024xbf16, #tpu.memory_space<any>> -> memref<512x256xbf16, #tpu.memory_space<any>>
    %c0_i32_43 = arith.constant 0 : i32
    %c0_i32_44 = arith.constant 0 : i32
    %45 = tpu.memref_slice %arg11[%c0_i32_43, %c0_i32_44] : memref<512x1024xbf16, #tpu.memory_space<vmem>> -> memref<512x256xbf16, #tpu.memory_space<vmem>>
    %46 = tpu.memref_slice %arg16[%c0_i32_40] : memref<4x!tpu.dma_semaphore, #tpu.memory_space<semaphore_mem>> -> memref<1x!tpu.dma_semaphore, #tpu.memory_space<semaphore_mem>>
    %47 = tpu.memref_squeeze %46 : memref<1x!tpu.dma_semaphore, #tpu.memory_space<semaphore_mem>> -> memref<!tpu.dma_semaphore, #tpu.memory_space<semaphore_mem>>
    tpu.wait_dma2 semaphore(%47 : memref<!tpu.dma_semaphore, #tpu.memory_space<semaphore_mem>>) src(%44 : memref<512x256xbf16, #tpu.memory_space<any>>) dst(%45 : memref<512x256xbf16, #tpu.memory_space<vmem>>)
    %c0_45 = arith.constant 0 : index
    %c0_46 = arith.constant 0 : index
    %48 = vector.load %arg11[%c0_45, %c0_46] : memref<512x1024xbf16, #tpu.memory_space<vmem>>, vector<512x256xbf16>
    %cst_47 = arith.constant dense<0.000000e+00> : vector<8x256xf32>
    %49 = tpu.matmul %43, %48, %cst_47 {dimension_numbers = #tpu.dot_dimension_numbers<[1], [0], [0], [1], [0, 0, 1, 1], [], []>} : vector<8x512xbf16>, vector<512x256xbf16>, vector<8x256xf32> -> vector<8x256xf32>
    %c0_48 = arith.constant 0 : index
    %c0_49 = arith.constant 0 : index
    %50 = vector.load %arg5[%c0_48, %c0_49] : memref<1x1024xf32, #tpu.memory_space<vmem>>, vector<1x256xf32>
    %51 = vector.broadcast %50 : vector<1x256xf32> to vector<8x256xf32>
    %52 = arith.addf %49, %51 : vector<8x256xf32>
    %cst_50 = arith.constant 0.000000e+00 : f32
    %53 = vector.broadcast %cst_50 : f32 to vector<8x256xf32>
    %54 = arith.maximumf %52, %53 : vector<8x256xf32>
    %55 = arith.truncf %54 : vector<8x256xf32> to vector<8x256xbf16>
    %c0_51 = arith.constant 0 : index
    %c0_52 = arith.constant 0 : index
    %56 = vector.load %arg14[%c0_51, %c0_52] : memref<8x1024xbf16, #tpu.memory_space<vmem>>, vector<8x256xbf16>
    tpu.vector_store %arg14[%c0_51, %c0_52], %55 {strides = array<i32>} : memref<8x1024xbf16, #tpu.memory_space<vmem>>, vector<8x256xbf16>,
    %c1_i32_53 = arith.constant 1 : i32
    %c0_i32_54 = arith.constant 0 : i32
    %c256_i32_55 = arith.constant 256 : i32
    %57 = tpu.memref_slice %arg4[%c0_i32_54, %c256_i32_55] : memref<512x1024xbf16, #tpu.memory_space<any>> -> memref<512x256xbf16, #tpu.memory_space<any>>
    %c0_i32_56 = arith.constant 0 : i32
    %c256_i32_57 = arith.constant 256 : i32
    %58 = tpu.memref_slice %arg11[%c0_i32_56, %c256_i32_57] : memref<512x1024xbf16, #tpu.memory_space<vmem>> -> memref<512x256xbf16, #tpu.memory_space<vmem>>
    %59 = tpu.memref_slice %arg16[%c1_i32_53] : memref<4x!tpu.dma_semaphore, #tpu.memory_space<semaphore_mem>> -> memref<1x!tpu.dma_semaphore, #tpu.memory_space<semaphore_mem>>
    %60 = tpu.memref_squeeze %59 : memref<1x!tpu.dma_semaphore, #tpu.memory_space<semaphore_mem>> -> memref<!tpu.dma_semaphore, #tpu.memory_space<semaphore_mem>>
    tpu.wait_dma2 semaphore(%60 : memref<!tpu.dma_semaphore, #tpu.memory_space<semaphore_mem>>) src(%57 : memref<512x256xbf16, #tpu.memory_space<any>>) dst(%58 : memref<512x256xbf16, #tpu.memory_space<vmem>>)
    %c0_58 = arith.constant 0 : index
    %c256 = arith.constant 256 : index
    %61 = vector.load %arg11[%c0_58, %c256] : memref<512x1024xbf16, #tpu.memory_space<vmem>>, vector<512x256xbf16>
    %cst_59 = arith.constant dense<0.000000e+00> : vector<8x256xf32>
    %62 = tpu.matmul %43, %61, %cst_59 {dimension_numbers = #tpu.dot_dimension_numbers<[1], [0], [0], [1], [0, 0, 1, 1], [], []>} : vector<8x512xbf16>, vector<512x256xbf16>, vector<8x256xf32> -> vector<8x256xf32>
    %c0_60 = arith.constant 0 : index
    %c256_61 = arith.constant 256 : index
    %63 = vector.load %arg5[%c0_60, %c256_61] : memref<1x1024xf32, #tpu.memory_space<vmem>>, vector<1x256xf32>
    %64 = vector.broadcast %63 : vector<1x256xf32> to vector<8x256xf32>
    %65 = arith.addf %62, %64 : vector<8x256xf32>
    %cst_62 = arith.constant 0.000000e+00 : f32
    %66 = vector.broadcast %cst_62 : f32 to vector<8x256xf32>
    %67 = arith.maximumf %65, %66 : vector<8x256xf32>
    %68 = arith.truncf %67 : vector<8x256xf32> to vector<8x256xbf16>
    %c0_63 = arith.constant 0 : index
    %c256_64 = arith.constant 256 : index
    %69 = vector.load %arg14[%c0_63, %c256_64] : memref<8x1024xbf16, #tpu.memory_space<vmem>>, vector<8x256xbf16>
    tpu.vector_store %arg14[%c0_63, %c256_64], %68 {strides = array<i32>} : memref<8x1024xbf16, #tpu.memory_space<vmem>>, vector<8x256xbf16>,
    %c2_i32_65 = arith.constant 2 : i32
    %c0_i32_66 = arith.constant 0 : i32
    %c512_i32_67 = arith.constant 512 : i32
    %70 = tpu.memref_slice %arg4[%c0_i32_66, %c512_i32_67] : memref<512x1024xbf16, #tpu.memory_space<any>> -> memref<512x256xbf16, #tpu.memory_space<any>>
    %c0_i32_68 = arith.constant 0 : i32
    %c512_i32_69 = arith.constant 512 : i32
    %71 = tpu.memref_slice %arg11[%c0_i32_68, %c512_i32_69] : memref<512x1024xbf16, #tpu.memory_space<vmem>> -> memref<512x256xbf16, #tpu.memory_space<vmem>>
    %72 = tpu.memref_slice %arg16[%c2_i32_65] : memref<4x!tpu.dma_semaphore, #tpu.memory_space<semaphore_mem>> -> memref<1x!tpu.dma_semaphore, #tpu.memory_space<semaphore_mem>>
    %73 = tpu.memref_squeeze %72 : memref<1x!tpu.dma_semaphore, #tpu.memory_space<semaphore_mem>> -> memref<!tpu.dma_semaphore, #tpu.memory_space<semaphore_mem>>
    tpu.wait_dma2 semaphore(%73 : memref<!tpu.dma_semaphore, #tpu.memory_space<semaphore_mem>>) src(%70 : memref<512x256xbf16, #tpu.memory_space<any>>) dst(%71 : memref<512x256xbf16, #tpu.memory_space<vmem>>)
    %c0_70 = arith.constant 0 : index
    %c512 = arith.constant 512 : index
    %74 = vector.load %arg11[%c0_70, %c512] : memref<512x1024xbf16, #tpu.memory_space<vmem>>, vector<512x256xbf16>
    %cst_71 = arith.constant dense<0.000000e+00> : vector<8x256xf32>
    %75 = tpu.matmul %43, %74, %cst_71 {dimension_numbers = #tpu.dot_dimension_numbers<[1], [0], [0], [1], [0, 0, 1, 1], [], []>} : vector<8x512xbf16>, vector<512x256xbf16>, vector<8x256xf32> -> vector<8x256xf32>
    %c0_72 = arith.constant 0 : index
    %c512_73 = arith.constant 512 : index
    %76 = vector.load %arg5[%c0_72, %c512_73] : memref<1x1024xf32, #tpu.memory_space<vmem>>, vector<1x256xf32>
    %77 = vector.broadcast %76 : vector<1x256xf32> to vector<8x256xf32>
    %78 = arith.addf %75, %77 : vector<8x256xf32>
    %cst_74 = arith.constant 0.000000e+00 : f32
    %79 = vector.broadcast %cst_74 : f32 to vector<8x256xf32>
    %80 = arith.maximumf %78, %79 : vector<8x256xf32>
    %81 = arith.truncf %80 : vector<8x256xf32> to vector<8x256xbf16>
    %c0_75 = arith.constant 0 : index
    %c512_76 = arith.constant 512 : index
    %82 = vector.load %arg14[%c0_75, %c512_76] : memref<8x1024xbf16, #tpu.memory_space<vmem>>, vector<8x256xbf16>
    tpu.vector_store %arg14[%c0_75, %c512_76], %81 {strides = array<i32>} : memref<8x1024xbf16, #tpu.memory_space<vmem>>, vector<8x256xbf16>,
    %c3_i32_77 = arith.constant 3 : i32
    %c0_i32_78 = arith.constant 0 : i32
    %c768_i32_79 = arith.constant 768 : i32
    %83 = tpu.memref_slice %arg4[%c0_i32_78, %c768_i32_79] : memref<512x1024xbf16, #tpu.memory_space<any>> -> memref<512x256xbf16, #tpu.memory_space<any>>
    %c0_i32_80 = arith.constant 0 : i32
    %c768_i32_81 = arith.constant 768 : i32
    %84 = tpu.memref_slice %arg11[%c0_i32_80, %c768_i32_81] : memref<512x1024xbf16, #tpu.memory_space<vmem>> -> memref<512x256xbf16, #tpu.memory_space<vmem>>
    %85 = tpu.memref_slice %arg16[%c3_i32_77] : memref<4x!tpu.dma_semaphore, #tpu.memory_space<semaphore_mem>> -> memref<1x!tpu.dma_semaphore, #tpu.memory_space<semaphore_mem>>
    %86 = tpu.memref_squeeze %85 : memref<1x!tpu.dma_semaphore, #tpu.memory_space<semaphore_mem>> -> memref<!tpu.dma_semaphore, #tpu.memory_space<semaphore_mem>>
    tpu.wait_dma2 semaphore(%86 : memref<!tpu.dma_semaphore, #tpu.memory_space<semaphore_mem>>) src(%83 : memref<512x256xbf16, #tpu.memory_space<any>>) dst(%84 : memref<512x256xbf16, #tpu.memory_space<vmem>>)
    %c0_82 = arith.constant 0 : index
    %c768 = arith.constant 768 : index
    %87 = vector.load %arg11[%c0_82, %c768] : memref<512x1024xbf16, #tpu.memory_space<vmem>>, vector<512x256xbf16>
    %cst_83 = arith.constant dense<0.000000e+00> : vector<8x256xf32>
    %88 = tpu.matmul %43, %87, %cst_83 {dimension_numbers = #tpu.dot_dimension_numbers<[1], [0], [0], [1], [0, 0, 1, 1], [], []>} : vector<8x512xbf16>, vector<512x256xbf16>, vector<8x256xf32> -> vector<8x256xf32>
    %c0_84 = arith.constant 0 : index
    %c768_85 = arith.constant 768 : index
    %89 = vector.load %arg5[%c0_84, %c768_85] : memref<1x1024xf32, #tpu.memory_space<vmem>>, vector<1x256xf32>
    %90 = vector.broadcast %89 : vector<1x256xf32> to vector<8x256xf32>
    %91 = arith.addf %88, %90 : vector<8x256xf32>
    %cst_86 = arith.constant 0.000000e+00 : f32
    %92 = vector.broadcast %cst_86 : f32 to vector<8x256xf32>
    %93 = arith.maximumf %91, %92 : vector<8x256xf32>
    %94 = arith.truncf %93 : vector<8x256xf32> to vector<8x256xbf16>
    %c0_87 = arith.constant 0 : index
    %c768_88 = arith.constant 768 : index
    %95 = vector.load %arg14[%c0_87, %c768_88] : memref<8x1024xbf16, #tpu.memory_space<vmem>>, vector<8x256xbf16>
    tpu.vector_store %arg14[%c0_87, %c768_88], %94 {strides = array<i32>} : memref<8x1024xbf16, #tpu.memory_space<vmem>>, vector<8x256xbf16>,
    %c0_89 = arith.constant 0 : index
    %c0_90 = arith.constant 0 : index
    %96 = vector.load %arg14[%c0_89, %c0_90] : memref<8x1024xbf16, #tpu.memory_space<vmem>>, vector<8x1024xbf16>
    %c0_i32_91 = arith.constant 0 : i32
    %c0_i32_92 = arith.constant 0 : i32
    %c0_i32_93 = arith.constant 0 : i32
    %97 = tpu.memref_slice %arg6[%c0_i32_92, %c0_i32_93] : memref<1024x1024xbf16, #tpu.memory_space<any>> -> memref<1024x256xbf16, #tpu.memory_space<any>>
    %c0_i32_94 = arith.constant 0 : i32
    %c0_i32_95 = arith.constant 0 : i32
    %98 = tpu.memref_slice %arg12[%c0_i32_94, %c0_i32_95] : memref<1024x1024xbf16, #tpu.memory_space<vmem>> -> memref<1024x256xbf16, #tpu.memory_space<vmem>>
    %99 = tpu.memref_slice %arg17[%c0_i32_91] : memref<4x!tpu.dma_semaphore, #tpu.memory_space<semaphore_mem>> -> memref<1x!tpu.dma_semaphore, #tpu.memory_space<semaphore_mem>>
    %100 = tpu.memref_squeeze %99 : memref<1x!tpu.dma_semaphore, #tpu.memory_space<semaphore_mem>> -> memref<!tpu.dma_semaphore, #tpu.memory_space<semaphore_mem>>
    tpu.wait_dma2 semaphore(%100 : memref<!tpu.dma_semaphore, #tpu.memory_space<semaphore_mem>>) src(%97 : memref<1024x256xbf16, #tpu.memory_space<any>>) dst(%98 : memref<1024x256xbf16, #tpu.memory_space<vmem>>)
    %c0_96 = arith.constant 0 : index
    %c0_97 = arith.constant 0 : index
    %101 = vector.load %arg12[%c0_96, %c0_97] : memref<1024x1024xbf16, #tpu.memory_space<vmem>>, vector<1024x256xbf16>
    %cst_98 = arith.constant dense<0.000000e+00> : vector<8x256xf32>
    %102 = tpu.matmul %96, %101, %cst_98 {dimension_numbers = #tpu.dot_dimension_numbers<[1], [0], [0], [1], [0, 0, 1, 1], [], []>} : vector<8x1024xbf16>, vector<1024x256xbf16>, vector<8x256xf32> -> vector<8x256xf32>
    %c0_99 = arith.constant 0 : index
    %c0_100 = arith.constant 0 : index
    %103 = vector.load %arg7[%c0_99, %c0_100] : memref<1x1024xf32, #tpu.memory_space<vmem>>, vector<1x256xf32>
    %104 = vector.broadcast %103 : vector<1x256xf32> to vector<8x256xf32>
    %105 = arith.addf %102, %104 : vector<8x256xf32>
    %cst_101 = arith.constant 0.000000e+00 : f32
    %106 = vector.broadcast %cst_101 : f32 to vector<8x256xf32>
    %107 = arith.maximumf %105, %106 : vector<8x256xf32>
    %108 = arith.truncf %107 : vector<8x256xf32> to vector<8x256xbf16>
    %c0_102 = arith.constant 0 : index
    %c0_103 = arith.constant 0 : index
    %109 = vector.load %arg15[%c0_102, %c0_103] : memref<8x1024xbf16, #tpu.memory_space<vmem>>, vector<8x256xbf16>
    tpu.vector_store %arg15[%c0_102, %c0_103], %108 {strides = array<i32>} : memref<8x1024xbf16, #tpu.memory_space<vmem>>, vector<8x256xbf16>,
    %c1_i32_104 = arith.constant 1 : i32
    %c0_i32_105 = arith.constant 0 : i32
    %c256_i32_106 = arith.constant 256 : i32
    %110 = tpu.memref_slice %arg6[%c0_i32_105, %c256_i32_106] : memref<1024x1024xbf16, #tpu.memory_space<any>> -> memref<1024x256xbf16, #tpu.memory_space<any>>
    %c0_i32_107 = arith.constant 0 : i32
    %c256_i32_108 = arith.constant 256 : i32
    %111 = tpu.memref_slice %arg12[%c0_i32_107, %c256_i32_108] : memref<1024x1024xbf16, #tpu.memory_space<vmem>> -> memref<1024x256xbf16, #tpu.memory_space<vmem>>
    %112 = tpu.memref_slice %arg17[%c1_i32_104] : memref<4x!tpu.dma_semaphore, #tpu.memory_space<semaphore_mem>> -> memref<1x!tpu.dma_semaphore, #tpu.memory_space<semaphore_mem>>
    %113 = tpu.memref_squeeze %112 : memref<1x!tpu.dma_semaphore, #tpu.memory_space<semaphore_mem>> -> memref<!tpu.dma_semaphore, #tpu.memory_space<semaphore_mem>>
    tpu.wait_dma2 semaphore(%113 : memref<!tpu.dma_semaphore, #tpu.memory_space<semaphore_mem>>) src(%110 : memref<1024x256xbf16, #tpu.memory_space<any>>) dst(%111 : memref<1024x256xbf16, #tpu.memory_space<vmem>>)
    %c0_109 = arith.constant 0 : index
    %c256_110 = arith.constant 256 : index
    %114 = vector.load %arg12[%c0_109, %c256_110] : memref<1024x1024xbf16, #tpu.memory_space<vmem>>, vector<1024x256xbf16>
    %cst_111 = arith.constant dense<0.000000e+00> : vector<8x256xf32>
    %115 = tpu.matmul %96, %114, %cst_111 {dimension_numbers = #tpu.dot_dimension_numbers<[1], [0], [0], [1], [0, 0, 1, 1], [], []>} : vector<8x1024xbf16>, vector<1024x256xbf16>, vector<8x256xf32> -> vector<8x256xf32>
    %c0_112 = arith.constant 0 : index
    %c256_113 = arith.constant 256 : index
    %116 = vector.load %arg7[%c0_112, %c256_113] : memref<1x1024xf32, #tpu.memory_space<vmem>>, vector<1x256xf32>
    %117 = vector.broadcast %116 : vector<1x256xf32> to vector<8x256xf32>
    %118 = arith.addf %115, %117 : vector<8x256xf32>
    %cst_114 = arith.constant 0.000000e+00 : f32
    %119 = vector.broadcast %cst_114 : f32 to vector<8x256xf32>
    %120 = arith.maximumf %118, %119 : vector<8x256xf32>
    %121 = arith.truncf %120 : vector<8x256xf32> to vector<8x256xbf16>
    %c0_115 = arith.constant 0 : index
    %c256_116 = arith.constant 256 : index
    %122 = vector.load %arg15[%c0_115, %c256_116] : memref<8x1024xbf16, #tpu.memory_space<vmem>>, vector<8x256xbf16>
    tpu.vector_store %arg15[%c0_115, %c256_116], %121 {strides = array<i32>} : memref<8x1024xbf16, #tpu.memory_space<vmem>>, vector<8x256xbf16>,
    %c2_i32_117 = arith.constant 2 : i32
    %c0_i32_118 = arith.constant 0 : i32
    %c512_i32_119 = arith.constant 512 : i32
    %123 = tpu.memref_slice %arg6[%c0_i32_118, %c512_i32_119] : memref<1024x1024xbf16, #tpu.memory_space<any>> -> memref<1024x256xbf16, #tpu.memory_space<any>>
    %c0_i32_120 = arith.constant 0 : i32
    %c512_i32_121 = arith.constant 512 : i32
    %124 = tpu.memref_slice %arg12[%c0_i32_120, %c512_i32_121] : memref<1024x1024xbf16, #tpu.memory_space<vmem>> -> memref<1024x256xbf16, #tpu.memory_space<vmem>>
    %125 = tpu.memref_slice %arg17[%c2_i32_117] : memref<4x!tpu.dma_semaphore, #tpu.memory_space<semaphore_mem>> -> memref<1x!tpu.dma_semaphore, #tpu.memory_space<semaphore_mem>>
    %126 = tpu.memref_squeeze %125 : memref<1x!tpu.dma_semaphore, #tpu.memory_space<semaphore_mem>> -> memref<!tpu.dma_semaphore, #tpu.memory_space<semaphore_mem>>
    tpu.wait_dma2 semaphore(%126 : memref<!tpu.dma_semaphore, #tpu.memory_space<semaphore_mem>>) src(%123 : memref<1024x256xbf16, #tpu.memory_space<any>>) dst(%124 : memref<1024x256xbf16, #tpu.memory_space<vmem>>)
    %c0_122 = arith.constant 0 : index
    %c512_123 = arith.constant 512 : index
    %127 = vector.load %arg12[%c0_122, %c512_123] : memref<1024x1024xbf16, #tpu.memory_space<vmem>>, vector<1024x256xbf16>
    %cst_124 = arith.constant dense<0.000000e+00> : vector<8x256xf32>
    %128 = tpu.matmul %96, %127, %cst_124 {dimension_numbers = #tpu.dot_dimension_numbers<[1], [0], [0], [1], [0, 0, 1, 1], [], []>} : vector<8x1024xbf16>, vector<1024x256xbf16>, vector<8x256xf32> -> vector<8x256xf32>
    %c0_125 = arith.constant 0 : index
    %c512_126 = arith.constant 512 : index
    %129 = vector.load %arg7[%c0_125, %c512_126] : memref<1x1024xf32, #tpu.memory_space<vmem>>, vector<1x256xf32>
    %130 = vector.broadcast %129 : vector<1x256xf32> to vector<8x256xf32>
    %131 = arith.addf %128, %130 : vector<8x256xf32>
    %cst_127 = arith.constant 0.000000e+00 : f32
    %132 = vector.broadcast %cst_127 : f32 to vector<8x256xf32>
    %133 = arith.maximumf %131, %132 : vector<8x256xf32>
    %134 = arith.truncf %133 : vector<8x256xf32> to vector<8x256xbf16>
    %c0_128 = arith.constant 0 : index
    %c512_129 = arith.constant 512 : index
    %135 = vector.load %arg15[%c0_128, %c512_129] : memref<8x1024xbf16, #tpu.memory_space<vmem>>, vector<8x256xbf16>
    tpu.vector_store %arg15[%c0_128, %c512_129], %134 {strides = array<i32>} : memref<8x1024xbf16, #tpu.memory_space<vmem>>, vector<8x256xbf16>,
    %c3_i32_130 = arith.constant 3 : i32
    %c0_i32_131 = arith.constant 0 : i32
    %c768_i32_132 = arith.constant 768 : i32
    %136 = tpu.memref_slice %arg6[%c0_i32_131, %c768_i32_132] : memref<1024x1024xbf16, #tpu.memory_space<any>> -> memref<1024x256xbf16, #tpu.memory_space<any>>
    %c0_i32_133 = arith.constant 0 : i32
    %c768_i32_134 = arith.constant 768 : i32
    %137 = tpu.memref_slice %arg12[%c0_i32_133, %c768_i32_134] : memref<1024x1024xbf16, #tpu.memory_space<vmem>> -> memref<1024x256xbf16, #tpu.memory_space<vmem>>
    %138 = tpu.memref_slice %arg17[%c3_i32_130] : memref<4x!tpu.dma_semaphore, #tpu.memory_space<semaphore_mem>> -> memref<1x!tpu.dma_semaphore, #tpu.memory_space<semaphore_mem>>
    %139 = tpu.memref_squeeze %138 : memref<1x!tpu.dma_semaphore, #tpu.memory_space<semaphore_mem>> -> memref<!tpu.dma_semaphore, #tpu.memory_space<semaphore_mem>>
    tpu.wait_dma2 semaphore(%139 : memref<!tpu.dma_semaphore, #tpu.memory_space<semaphore_mem>>) src(%136 : memref<1024x256xbf16, #tpu.memory_space<any>>) dst(%137 : memref<1024x256xbf16, #tpu.memory_space<vmem>>)
    %c0_135 = arith.constant 0 : index
    %c768_136 = arith.constant 768 : index
    %140 = vector.load %arg12[%c0_135, %c768_136] : memref<1024x1024xbf16, #tpu.memory_space<vmem>>, vector<1024x256xbf16>
    %cst_137 = arith.constant dense<0.000000e+00> : vector<8x256xf32>
    %141 = tpu.matmul %96, %140, %cst_137 {dimension_numbers = #tpu.dot_dimension_numbers<[1], [0], [0], [1], [0, 0, 1, 1], [], []>} : vector<8x1024xbf16>, vector<1024x256xbf16>, vector<8x256xf32> -> vector<8x256xf32>
    %c0_138 = arith.constant 0 : index
    %c768_139 = arith.constant 768 : index
    %142 = vector.load %arg7[%c0_138, %c768_139] : memref<1x1024xf32, #tpu.memory_space<vmem>>, vector<1x256xf32>
    %143 = vector.broadcast %142 : vector<1x256xf32> to vector<8x256xf32>
    %144 = arith.addf %141, %143 : vector<8x256xf32>
    %cst_140 = arith.constant 0.000000e+00 : f32
    %145 = vector.broadcast %cst_140 : f32 to vector<8x256xf32>
    %146 = arith.maximumf %144, %145 : vector<8x256xf32>
    %147 = arith.truncf %146 : vector<8x256xf32> to vector<8x256xbf16>
    %c0_141 = arith.constant 0 : index
    %c768_142 = arith.constant 768 : index
    %148 = vector.load %arg15[%c0_141, %c768_142] : memref<8x1024xbf16, #tpu.memory_space<vmem>>, vector<8x256xbf16>
    tpu.vector_store %arg15[%c0_141, %c768_142], %147 {strides = array<i32>} : memref<8x1024xbf16, #tpu.memory_space<vmem>>, vector<8x256xbf16>,
    %c0_143 = arith.constant 0 : index
    %c0_144 = arith.constant 0 : index
    %149 = vector.load %arg15[%c0_143, %c0_144] : memref<8x1024xbf16, #tpu.memory_space<vmem>>, vector<8x1024xbf16>
    %c0_i32_145 = arith.constant 0 : i32
    %150 = tpu.memref_slice %arg18[%c0_i32_145] : memref<1x!tpu.dma_semaphore, #tpu.memory_space<semaphore_mem>> -> memref<1x!tpu.dma_semaphore, #tpu.memory_space<semaphore_mem>>
    %151 = tpu.memref_squeeze %150 : memref<1x!tpu.dma_semaphore, #tpu.memory_space<semaphore_mem>> -> memref<!tpu.dma_semaphore, #tpu.memory_space<semaphore_mem>>
    tpu.wait_dma2 semaphore(%151 : memref<!tpu.dma_semaphore, #tpu.memory_space<semaphore_mem>>) src(%arg8 : memref<1024x128xbf16, #tpu.memory_space<any>>) dst(%arg13 : memref<1024x128xbf16, #tpu.memory_space<vmem>>)
    %c0_146 = arith.constant 0 : index
    %c0_147 = arith.constant 0 : index
    %152 = vector.load %arg13[%c0_146, %c0_147] : memref<1024x128xbf16, #tpu.memory_space<vmem>>, vector<1024x128xbf16>
    %cst_148 = arith.constant dense<0.000000e+00> : vector<8x128xf32>
    %153 = tpu.matmul %149, %152, %cst_148 {dimension_numbers = #tpu.dot_dimension_numbers<[1], [0], [0], [1], [0, 0, 1, 1], [], []>} : vector<8x1024xbf16>, vector<1024x128xbf16>, vector<8x128xf32> -> vector<8x128xf32>
    %c0_149 = arith.constant 0 : index
    %c0_150 = arith.constant 0 : index
    %154 = vector.load %arg9[%c0_149, %c0_150] : memref<1x128xf32, #tpu.memory_space<vmem>>, vector<1x128xf32>
    %155 = vector.broadcast %154 : vector<1x128xf32> to vector<8x128xf32>
    %156 = arith.addf %153, %155 : vector<8x128xf32>
    %c0_151 = arith.constant 0 : index
    %c0_152 = arith.constant 0 : index
    %157 = vector.load %arg10[%c0_151, %c0_152] : memref<8x128xf32, #tpu.memory_space<vmem>>, vector<8x128xf32>
    tpu.vector_store %arg10[%c0_151, %c0_152], %156 {strides = array<i32>} : memref<8x128xf32, #tpu.memory_space<vmem>>, vector<8x128xf32>,
    return
  }
  func.func @transform_0(%arg0: i32) -> (i32, i32) {
    %c0_i32 = arith.constant 0 : i32
    %c0_i32_0 = arith.constant 0 : i32
    %c0_i32_1 = arith.constant 0 : i32
    return %c0_i32, %c0_i32_0 : i32, i32
  }
  func.func @transform_1(%arg0: i32) -> (i32, i32) {
    %c0_i32 = arith.constant 0 : i32
    %c0_i32_0 = arith.constant 0 : i32
    %c0_i32_1 = arith.constant 0 : i32
    return %c0_i32, %c0_i32_0 : i32, i32
  }
  func.func @transform_2(%arg0: i32) -> (i32, i32) {
    %c0_i32 = arith.constant 0 : i32
    %c0_i32_0 = arith.constant 0 : i32
    %c0_i32_1 = arith.constant 0 : i32
    return %c0_i32, %c0_i32_0 : i32, i32
  }
  func.func @transform_4(%arg0: i32) -> (i32, i32) {
    %c0_i32 = arith.constant 0 : i32
    %c0_i32_0 = arith.constant 0 : i32
    %c0_i32_1 = arith.constant 0 : i32
    return %c0_i32, %c0_i32_0 : i32, i32
  }
  func.func @transform_6(%arg0: i32) -> (i32, i32) {
    %c0_i32 = arith.constant 0 : i32
    %c0_i32_0 = arith.constant 0 : i32
    %c0_i32_1 = arith.constant 0 : i32
    return %c0_i32, %c0_i32_0 : i32, i32
  }
  func.func @transform_8(%arg0: i32) -> (i32, i32) {
    %c0_i32 = arith.constant 0 : i32
    %c0_i32_0 = arith.constant 0 : i32
    %c0_i32_1 = arith.constant 0 : i32
    return %c0_i32, %c0_i32_0 : i32, i32
  }
  func.func @transform_9(%arg0: i32) -> (i32, i32) {
    %c0_i32 = arith.constant 0 : i32
    %c0_i32_0 = arith.constant 0 : i32
    %c0_i32_1 = arith.constant 0 : i32
    return %c0_i32, %c0_i32_0 : i32, i32
  }
}

</mosaic_0001>

<bundles_post_ra>
// kernel: tpu_custom_call.1
= control target key start
LH: loop header
LB: loop body
LE: loop exit
PB: predicated region body
PF: predicated region fallthrough
CT: control target
= control target key end

     0   :  { %14 = vsyncpa [#allocation11], 0  ;;  %s3859_s0 = inlined_call_operand.hbm [shape: f32[8,16], index: 0, kind: input, shape index: {}]   ;;  %s3860_s1 = inlined_call_operand.hbm [shape: bf16[16,512], index: 1, kind: input, shape index: {}]   ;;  %s3861_s2 = inlined_call_operand.hbm [shape: f32[1,512], index: 2, kind: input, shape index: {}]   ;;  %s3862_s3 = inlined_call_operand.hbm [shape: bf16[512,1024], index: 3, kind: input, shape index: {}]   ;;  %s3863_s4 = inlined_call_operand.hbm [shape: f32[1,1024], index: 4, kind: input, shape index: {}]   ;;  %s3864_s5 = inlined_call_operand.hbm [shape: bf16[1024,1024], index: 5, kind: input, shape index: {}]   ;;  %s3865_s6 = inlined_call_operand.hbm [shape: f32[1,1024], index: 6, kind: input, shape index: {}]   ;;  %s3866_s7 = inlined_call_operand.hbm [shape: bf16[1024,128], index: 7, kind: input, shape index: {}]   ;;  %s3867_s8 = inlined_call_operand.hbm [shape: f32[1,128], index: 8, kind: input, shape index: {}]   ;;  %s3868_s9 = inlined_call_operand.hbm [shape: f32[8,128], index: 9, kind: output, shape index: {}]  }
   0x1   :  { %15 = vsyncpa [#allocation14], 0 }
   0x2   :  { %16 = vsyncpa [#allocation17], 0 }
   0x3   :  { %17 = vsyncpa [#allocation20], 0 }
   0x4   :  { %18 = vsyncpa [#allocation12], 0  ;;  %s3376_s30 = smov [#allocation13]   ;;  %s3172_s13 = scalar_lea.hbm %s3860_s1, 512 }
   0x5   :  { %s34_s10 = sshll.u32 %s3376_s30, 4  ;;  %p3173_p0 = scmp.ne.s32.totalorder %s3860_s1, %s3172_s13  ;;  %s35_s10 = int_to_ptr.vmem [resolvable:$true] %s34_s10 }
   0x6   :  { %p3176_p1 = scmp.lt.u32.totalorder %s3172_s13, %s3860_s1 }
   0x8   :  { %p3178_p2 = pnand %p3176_p1, %p3173_p0 }
   0xa   :  { %3181 = shalt.err (!%p3178_p2)
}
   0xb   :  { %s3182_s18 = scalar_lea.vmem %s35_s10, 512  ;;  %p3187_p4 = scmp.lt.s32.totalorder %s35_s10, %s35_s10 }
   0xc   :  { %p3183_p3 = scmp.ne.s32.totalorder %s35_s10, %s3182_s18  ;;  %p3188_p5 = scmp.lt.s32.totalorder %s3182_s18, %s3182_s18 }
   0xe   :  { %p3189_p6 = por %p3188_p5, %p3187_p4 }
  0x10   :  { %p3190_p7 = pnand %p3189_p6, %p3183_p3 }
  0x12   :  { %3193 = shalt.err (!%p3190_p7)
}
  0x13   :  { %s3377_s19 = smov 256   ;;  %s3378_s20 = smov 16  }
  0x14   :  { %40 = dma.hbm_to_vmem [thread:$0]  %s3860_s1, 512, %s35_s10, [#allocation14], %s3377_s19, %s3377_s19, %s3378_s20  }
  0x15   :  { %s3379_s23 = smov [#allocation16]   ;;  %s3380_s25 = smov [#allocation10]  }
  0x16   :  { %s57_s24 = sshll.u32 %s3379_s23, 4  ;;  %s25_s26 = sshll.u32 %s3380_s25, 4  ;;  %s58_s24 = int_to_ptr.vmem [resolvable:$true] %s57_s24  ;;  %s26_s26 = int_to_ptr.vmem [resolvable:$true] %s25_s26 }
  0x17   :  { %s3194_s29 = scalar_lea.hbm %s3863_s4, 128 }
  0x18   :  { %p3195_p8 = scmp.ne.s32.totalorder %s3863_s4, %s3194_s29  ;;  %p3198_p9 = scmp.lt.u32.totalorder %s3194_s29, %s3863_s4 }
  0x1a   :  { %p3200_p10 = pnand %p3198_p9, %p3195_p8 }
  0x1c   :  { %3203 = shalt.err (!%p3200_p10)
}
  0x1d   :  { %s3204_s1 = scalar_lea.vmem %s58_s24, 128  ;;  %p3209_p12 = scmp.lt.s32.totalorder %s58_s24, %s58_s24 }
  0x1e   :  { %p3205_p11 = scmp.ne.s32.totalorder %s58_s24, %s3204_s1  ;;  %p3210_p13 = scmp.lt.s32.totalorder %s3204_s1, %s3204_s1 }
  0x20   :  { %p3211_p0 = por %p3210_p13, %p3209_p12 }
  0x22   :  { %p3212_p1 = pnand %p3211_p0, %p3205_p11 }
  0x24   :  { %3215 = shalt.err (!%p3212_p1)
}
  0x25   :  { %60 = dma.hbm_to_vmem [thread:$0]  %s3863_s4, 128, %s58_s24, [#allocation17]  }
  0x26   :  { %s3216_s17 = scalar_lea.hbm %s3859_s0, 128 }
  0x27   :  { %p3217_p2 = scmp.ne.s32.totalorder %s3859_s0, %s3216_s17  ;;  %p3220_p3 = scmp.lt.u32.totalorder %s3216_s17, %s3859_s0 }
  0x29   :  { %p3222_p4 = pnand %p3220_p3, %p3217_p2 }
  0x2b   :  { %3225 = shalt.err (!%p3222_p4)
}
  0x2c   :  { %s3226_s22 = scalar_lea.vmem %s26_s26, 128  ;;  %p3231_p6 = scmp.lt.s32.totalorder %s26_s26, %s26_s26 }
  0x2d   :  { %p3227_p5 = scmp.ne.s32.totalorder %s26_s26, %s3226_s22  ;;  %p3232_p7 = scmp.lt.s32.totalorder %s3226_s22, %s3226_s22 }
  0x2f   :  { %p3233_p8 = por %p3232_p7, %p3231_p6 }
  0x31   :  { %p3234_p9 = pnand %p3233_p8, %p3227_p5 }
  0x33   :  { %3237 = shalt.err (!%p3234_p9)
}
  0x34   :  { %28 = dma.hbm_to_vmem [thread:$0]  %s3859_s0, 128, %s26_s26, [#allocation11]  }
  0x35   :  { %s3381_s24 = smov [#allocation15]   ;;  %s3382_s27 = smov [#allocation18]  }
  0x36   :  { %s47_s25 = sshll.u32 %s3381_s24, 4  ;;  %s67_s28 = sshll.u32 %s3382_s27, 4  ;;  %s48_s25 = int_to_ptr.vmem [resolvable:$true] %s47_s25  ;;  %s68_s28 = int_to_ptr.vmem [resolvable:$true] %s67_s28 }
  0x37   :  { %s3238_s11 = scalar_lea.hbm %s3861_s2, 64 }
  0x38   :  { %p3239_p10 = scmp.ne.s32.totalorder %s3861_s2, %s3238_s11  ;;  %p3242_p11 = scmp.lt.u32.totalorder %s3238_s11, %s3861_s2 }
  0x3a   :  { %p3244_p12 = pnand %p3242_p11, %p3239_p10 }
  0x3c   :  { %3247 = shalt.err (!%p3244_p12)
}
  0x3d   :  { %s3248_s0 = scalar_lea.vmem %s48_s25, 64  ;;  %p3253_p0 = scmp.lt.s32.totalorder %s48_s25, %s48_s25 }
  0x3e   :  { %p3249_p13 = scmp.ne.s32.totalorder %s48_s25, %s3248_s0  ;;  %p3254_p1 = scmp.lt.s32.totalorder %s3248_s0, %s3248_s0 }
  0x40   :  { %p3255_p2 = por %p3254_p1, %p3253_p0 }
  0x42   :  { %p3256_p3 = pnand %p3255_p2, %p3249_p13 }
  0x44   :  { %3259 = shalt.err (!%p3256_p3)
}
  0x45   :  { %50 = dma.hbm_to_vmem [thread:$0]  %s3861_s2, 64, %s48_s25, [#allocation14]  }
  0x46   :  { %s3260_s17 = scalar_lea.hbm %s3865_s6, 128 }
  0x47   :  { %p3261_p4 = scmp.ne.s32.totalorder %s3865_s6, %s3260_s17  ;;  %p3264_p5 = scmp.lt.u32.totalorder %s3260_s17, %s3865_s6 }
  0x49   :  { %p3266_p6 = pnand %p3264_p5, %p3261_p4 }
  0x4b   :  { %3269 = shalt.err (!%p3266_p6)
}
  0x4c   :  { %s3270_s22 = scalar_lea.vmem %s68_s28, 128  ;;  %p3275_p8 = scmp.lt.s32.totalorder %s68_s28, %s68_s28 }
  0x4d   :  { %p3271_p7 = scmp.ne.s32.totalorder %s68_s28, %s3270_s22  ;;  %p3276_p9 = scmp.lt.s32.totalorder %s3270_s22, %s3270_s22 }
  0x4f   :  { %p3277_p10 = por %p3276_p9, %p3275_p8 }
  0x51   :  { %p3278_p11 = pnand %p3277_p10, %p3271_p7 }
  0x53   :  { %3281 = shalt.err (!%p3278_p11)
}
  0x54   :  { %70 = dma.hbm_to_vmem [thread:$0]  %s3865_s6, 128, %s68_s28, [#allocation17]  }
  0x55   :  { %s3383_s23 = smov [#allocation19]   ;;  %s3282_s29 = scalar_lea.hbm %s3867_s8, 16 }
  0x56   :  { %s77_s24 = sshll.u32 %s3383_s23, 4  ;;  %p3283_p12 = scmp.ne.s32.totalorder %s3867_s8, %s3282_s29  ;;  %s78_s24 = int_to_ptr.vmem [resolvable:$true] %s77_s24 }
  0x57   :  { %p3286_p13 = scmp.lt.u32.totalorder %s3282_s29, %s3867_s8 }
  0x59   :  { %p3288_p0 = pnand %p3286_p13, %p3283_p12 }
  0x5b   :  { %3291 = shalt.err (!%p3288_p0)
}
  0x5c   :  { %s3292_s1 = scalar_lea.vmem %s78_s24, 16  ;;  %s3296_s6 = scalar_lea.vmem %s78_s24, 32 }
  0x5d   :  { %p3293_p1 = scmp.ne.s32.totalorder %s78_s24, %s3292_s1  ;;  %p3297_p2 = scmp.lt.s32.totalorder %s78_s24, %s78_s24 }
  0x5e   :  { %p3298_p3 = scmp.lt.s32.totalorder %s3296_s6, %s3292_s1 }
  0x60   :  { %p3299_p4 = por %p3298_p3, %p3297_p2 }
  0x62   :  { %p3300_p5 = pnand %p3299_p4, %p3293_p1 }
  0x64   :  { %3303 = shalt.err (!%p3300_p5)
}
  0x65   :  { %80 = dma.hbm_to_vmem [thread:$0]  %s3867_s8, 16, %s78_s24, [#allocation20]  }
  0x66   :  { %3348 = dma.done.wait [#allocation11], 128  }
  0x67   :  { %3349 = vsyncadd [#allocation11], 4294967168 }
  0x68   :  { %3350 = dma.done.wait [#allocation14], 576  }
  0x69   :  { %3351 = vsyncadd [#allocation14], 4294966720 }
  0x6a   :  { %3352 = dma.done.wait [#allocation17], 256  }
  0x6b   :  { %3353 = vsyncadd [#allocation17], 4294967040 }
  0x6c   :  { %3354 = dma.done.wait [#allocation20], 16  }
  0x6d   :  { %3355 = vsyncadd [#allocation20], 4294967280  ;;  %s104_s0 = sld [smem:[#allocation0]]   ;;  %s3384_s26 = smov 1024   ;;  %v3385_v0 = vmov 0   ;;  %vm450_vm0 = vcmask 130048  }
  0x6e   :  { %116 = sst [smem:[#allocation23]] %s3384_s26  ;;  %486 = vmatprep.mubr.bf16.mxu0 %v3385_v0  ;;  %527 = vmatprep.mubr.bf16.mxu1 %v3385_v0  ;;  %s3386_s14 = smov 2  }
  0x6f   :  { %118 = sst [smem:[#allocation23 + $0x1]] %s3384_s26  ;;  %s3387_s8 = smov 64  }
  0x70   :  { %120 = sst [smem:[#allocation23 + $0x2]] %s3386_s14  ;;  %s3388_s15 = smov 128  }
  0x71   :  { %122 = sst [smem:[#allocation23 + $0x3]] %s3387_s8  ;;  %s3389_s17 = smov 512  }
  0x72   :  { %124 = sst [smem:[#allocation23 + $0x4]] %s3388_s15  ;;  %s3390_s19 = smov 4  }
  0x73   :  { %126 = sst [smem:[#allocation23 + $0x5]] %s3386_s14  ;;  %s2877_s16 = sshll.u32 %s104_s0, 26 }
  0x74   :  { %128 = sst [smem:[#allocation23 + $0x6]] %s3389_s17  ;;  %s3546_s18 = sadd.s32 134217728, %s2877_s16 }
  0x75   :  { %130 = sst [smem:[#allocation23 + $0x7]] %s3387_s8  ;;  %s3391_s20 = smov [#allocation2]  }
  0x76   :  { %132 = sst [smem:[#allocation23 + $0x8]] %s3390_s19  ;;  %s112_s21 = sshll.u32 %s3391_s20, 4  ;;  %s113_s21 = int_to_ptr.vmem [resolvable:$true] %s112_s21 }
  0x77   :  { %s3392_s22 = smov [#allocation7]   ;;  %s3393_s2 = smov [#allocation22]  }
  0x78   :  { %134 = dma.general %s3862_s3, 8192, %s113_s21, %s3392_s22, %s3393_s2, [#allocation23], %s3546_s18, 0  }
  0x79   :  { %153 = sst [smem:[#allocation25]] %s3384_s26  ;;  %s3394_s24 = smov [#allocation2 + $0x10]  }
  0x7a   :  { %155 = sst [smem:[#allocation25 + $0x1]] %s3384_s26  ;;  %s149_s25 = sshll.u32 %s3394_s24, 4  ;;  %s150_s25 = int_to_ptr.vmem [resolvable:$true] %s149_s25 }
  0x7b   :  { %157 = sst [smem:[#allocation25 + $0x2]] %s3386_s14  ;;  %s135_s30 = scalar_lea.hbm %s3862_s3, 128 }
  0x7c   :  { %159 = sst [smem:[#allocation25 + $0x3]] %s3387_s8  ;;  %s3395_s11 = smov [#allocation7 + $0x1]  }
  0x7d   :  { %161 = sst [smem:[#allocation25 + $0x4]] %s3388_s15  ;;  %s3396_s12 = smov [#allocation24]  }
  0x7e   :  { %163 = sst [smem:[#allocation25 + $0x5]] %s3386_s14  ;;  %s3397_s13 = smov [#allocation2 + $0x20]  }
  0x7f   :  { %165 = sst [smem:[#allocation25 + $0x6]] %s3389_s17  ;;  %s186_s1 = sshll.u32 %s3397_s13, 4  ;;  %s187_s1 = int_to_ptr.vmem [resolvable:$true] %s186_s1 }
  0x80   :  { %167 = sst [smem:[#allocation25 + $0x7]] %s3387_s8  ;;  %s172_s10 = scalar_lea.hbm %s3862_s3, 256 }
  0x81   :  { %169 = sst [smem:[#allocation25 + $0x8]] %s3390_s19  ;;  %s3398_s0 = smov [#allocation7 + $0x2]  }
  0x82   :  { %171 = dma.general %s135_s30, 8192, %s150_s25, %s3395_s11, %s3396_s12, [#allocation25], %s3546_s18, 0  }
  0x83   :  { %190 = sst [smem:[#allocation27]] %s3384_s26  ;;  %s3399_s16 = smov [#allocation26]  }
  0x84   :  { %192 = sst [smem:[#allocation27 + $0x1]] %s3384_s26  ;;  %s3400_s20 = smov [#allocation2 + $0x30]  }
  0x85   :  { %194 = sst [smem:[#allocation27 + $0x2]] %s3386_s14  ;;  %s223_s21 = sshll.u32 %s3400_s20, 4  ;;  %s224_s21 = int_to_ptr.vmem [resolvable:$true] %s223_s21 }
  0x86   :  { %196 = sst [smem:[#allocation27 + $0x3]] %s3387_s8  ;;  %s209_s4 = scalar_lea.hbm %s3862_s3, 384 }
  0x87   :  { %198 = sst [smem:[#allocation27 + $0x4]] %s3388_s15  ;;  %s3401_s23 = smov [#allocation7 + $0x3]  }
  0x88   :  { %200 = sst [smem:[#allocation27 + $0x5]] %s3386_s14  ;;  %s3402_s24 = smov [#allocation28]  }
  0x89   :  { %202 = sst [smem:[#allocation27 + $0x6]] %s3389_s17  ;;  %s3403_s3 = smov [#allocation3]  }
  0x8a   :  { %204 = sst [smem:[#allocation27 + $0x7]] %s3387_s8  ;;  %s257_s25 = sshll.u32 %s3403_s3, 4  ;;  %s258_s25 = int_to_ptr.vmem [resolvable:$true] %s257_s25 }
  0x8b   :  { %206 = sst [smem:[#allocation27 + $0x8]] %s3390_s19  ;;  %s3404_s27 = smov [#allocation8]  }
  0x8c   :  { %208 = dma.general %s172_s10, 8192, %s187_s1, %s3398_s0, %s3399_s16, [#allocation27], %s3546_s18, 0  }
  0x8d   :  { %227 = sst [smem:[#allocation29]] %s3384_s26  ;;  %s3405_s29 = smov [#allocation30]  }
  0x8e   :  { %229 = sst [smem:[#allocation29 + $0x1]] %s3384_s26  ;;  %s3406_s12 = smov [#allocation3 + $0x10]  }
  0x8f   :  { %231 = sst [smem:[#allocation29 + $0x2]] %s3386_s14  ;;  %s294_s13 = sshll.u32 %s3406_s12, 4  ;;  %s295_s13 = int_to_ptr.vmem [resolvable:$true] %s294_s13 }
  0x90   :  { %233 = sst [smem:[#allocation29 + $0x3]] %s3387_s8  ;;  %s280_s28 = scalar_lea.hbm %s3864_s5, 128 }
  0x91   :  { %235 = sst [smem:[#allocation29 + $0x4]] %s3388_s15  ;;  %s3407_s10 = smov [#allocation8 + $0x1]  }
  0x92   :  { %237 = sst [smem:[#allocation29 + $0x5]] %s3386_s14  ;;  %s3408_s0 = smov [#allocation32]  }
  0x93   :  { %239 = sst [smem:[#allocation29 + $0x6]] %s3389_s17  ;;  %s3409_s16 = smov [#allocation3 + $0x20]  }
  0x94   :  { %241 = sst [smem:[#allocation29 + $0x7]] %s3387_s8  ;;  %s331_s20 = sshll.u32 %s3409_s16, 4  ;;  %s332_s20 = int_to_ptr.vmem [resolvable:$true] %s331_s20 }
  0x95   :  { %243 = sst [smem:[#allocation29 + $0x8]] %s3390_s19  ;;  %s317_s2 = scalar_lea.hbm %s3864_s5, 256 }
  0x96   :  { %245 = dma.general %s209_s4, 8192, %s224_s21, %s3401_s23, %s3402_s24, [#allocation29], %s3546_s18, 0  }
  0x97   :  { %261 = sst [smem:[#allocation31]] %s3384_s26  ;;  %s3410_s4 = smov [#allocation8 + $0x2]  }
  0x98   :  { %263 = sst [smem:[#allocation31 + $0x1]] %s3384_s26  ;;  %s3411_s23 = smov [#allocation34]  }
  0x99   :  { %265 = sst [smem:[#allocation31 + $0x2]] %s3386_s14  ;;  %s3412_s24 = smov [#allocation3 + $0x30]  }
  0x9a   :  { %267 = sst [smem:[#allocation31 + $0x3]] %s3387_s8  ;;  %s368_s3 = sshll.u32 %s3412_s24, 4  ;;  %s369_s3 = int_to_ptr.vmem [resolvable:$true] %s368_s3 }
  0x9b   :  { %269 = sst [smem:[#allocation31 + $0x4]] %s3388_s15  ;;  %s3414_s30 = smov [#allocation36]  }
  0x9c   :  { %271 = sst [smem:[#allocation31 + $0x5]] %s3386_s14 }
  0x9d   :  { %273 = sst [smem:[#allocation31 + $0x6]] %s3389_s17 }
  0x9e   :  { %275 = sst [smem:[#allocation31 + $0x7]] %s3387_s8 }
  0x9f   :  { %277 = sst [smem:[#allocation31 + $0x8]] %s3390_s19 }
  0xa0   :  { %279 = dma.general %s3864_s5, 16384, %s258_s25, %s3404_s27, %s3405_s29, [#allocation31], %s3546_s18, 0  }
  0xa1   :  { %298 = sst [smem:[#allocation33]] %s3384_s26  ;;  %s354_s29 = scalar_lea.hbm %s3864_s5, 384 }
  0xa2   :  { %300 = sst [smem:[#allocation33 + $0x1]] %s3384_s26  ;;  %s3415_s5 = smov [#allocation4]  }
  0xa3   :  { %302 = sst [smem:[#allocation33 + $0x2]] %s3386_s14 }
  0xa4   :  { %304 = sst [smem:[#allocation33 + $0x3]] %s3387_s8 }
  0xa5   :  { %306 = sst [smem:[#allocation33 + $0x4]] %s3388_s15 }
  0xa6   :  { %308 = sst [smem:[#allocation33 + $0x5]] %s3386_s14 }
  0xa7   :  { %310 = sst [smem:[#allocation33 + $0x6]] %s3389_s17 }
  0xa8   :  { %312 = sst [smem:[#allocation33 + $0x7]] %s3387_s8 }
  0xa9   :  { %314 = sst [smem:[#allocation33 + $0x8]] %s3390_s19 }
  0xaa   :  { %316 = dma.general %s280_s28, 16384, %s295_s13, %s3407_s10, %s3408_s0, [#allocation33], %s3546_s18, 0  }
  0xab   :  { %335 = sst [smem:[#allocation35]] %s3384_s26 }
  0xac   :  { %337 = sst [smem:[#allocation35 + $0x1]] %s3384_s26 }
  0xad   :  { %339 = sst [smem:[#allocation35 + $0x2]] %s3386_s14 }
  0xae   :  { %341 = sst [smem:[#allocation35 + $0x3]] %s3387_s8 }
  0xaf   :  { %343 = sst [smem:[#allocation35 + $0x4]] %s3388_s15 }
  0xb0   :  { %345 = sst [smem:[#allocation35 + $0x5]] %s3386_s14 }
  0xb1   :  { %347 = sst [smem:[#allocation35 + $0x6]] %s3389_s17 }
  0xb2   :  { %349 = sst [smem:[#allocation35 + $0x7]] %s3387_s8 }
  0xb3   :  { %351 = sst [smem:[#allocation35 + $0x8]] %s3390_s19 }
  0xb4   :  { %353 = dma.general %s317_s2, 16384, %s332_s20, %s3410_s4, %s3411_s23, [#allocation35], %s3546_s18, 0  }
  0xb5   :  { %372 = sst [smem:[#allocation37]] %s3384_s26 }
  0xb6   :  { %374 = sst [smem:[#allocation37 + $0x1]] %s3384_s26  ;;  %s3413_s26 = smov [#allocation8 + $0x3]  }
  0xb7   :  { %376 = sst [smem:[#allocation37 + $0x2]] %s3386_s14 }
  0xb8   :  { %378 = sst [smem:[#allocation37 + $0x3]] %s3387_s8 }
  0xb9   :  { %380 = sst [smem:[#allocation37 + $0x4]] %s3388_s15 }
  0xba   :  { %382 = sst [smem:[#allocation37 + $0x5]] %s3386_s14  ;;  %s398_s14 = sshll.u32 %s3415_s5, 4  ;;  %s399_s14 = int_to_ptr.vmem [resolvable:$true] %s398_s14 }
  0xbb   :  { %384 = sst [smem:[#allocation37 + $0x6]] %s3389_s17  ;;  %s3304_s17 = scalar_lea.hbm %s3866_s7, 8192 }
  0xbc   :  { %386 = sst [smem:[#allocation37 + $0x7]] %s3387_s8  ;;  %p3305_p6 = scmp.ne.s32.totalorder %s3866_s7, %s3304_s17 }
  0xbd   :  { %388 = sst [smem:[#allocation37 + $0x8]] %s3390_s19  ;;  %p3308_p7 = scmp.lt.u32.totalorder %s3304_s17, %s3866_s7 }
  0xbe   :  { %390 = dma.general %s354_s29, 16384, %s369_s3, %s3413_s26, %s3414_s30, [#allocation37], %s3546_s18, 0  }
  0xbf   :  { %v3166_v1 = vld [vmem:[#allocation13 + $0x4] ss:$16 sps:$4 sm:$0xff]   ;;  %v3168_v2 = vld [vmem:[#allocation13 + $0xc] ss:$16 sps:$4 sm:$0xff]   ;;  %v3170_v3 = vld [vmem:[#allocation13] ss:$16 sps:$4 sm:$0xff]   ;;  %p3310_p8 = pnand %p3308_p7, %p3305_p6 }
  0xc0   :  { %454 = vmatprep.subr.bf16.mxu0 %v3166_v1  ;;  %v3171_v4 = vld [vmem:[#allocation13 + $0x8] ss:$16 sps:$4 sm:$0xff]   ;;  %495 = vmatprep.subr.bf16.mxu1 %v3168_v2 }
  0xc1   :  { %v402_v5 = vld [vmem:[#allocation10] sm:$0xff]  ;;  %455 = vmatpush1.bf16.msra.mxu0 %v3170_v3  ;;  %496 = vmatpush1.bf16.msra.mxu1 %v3171_v4 }
  0xc2   :  { %v403_v6 = vpack.c.bf16 %v402_v5, %v402_v5 }
  0xc4   :  { %2897 = vmatmul.mubr.msk.bf16.vlgmr.msra.gmra.mrb[0].mxu0 %vm450_vm0, %v403_v6  ;;  %2898 = vmatmul.mubr.msk.bf16.vlgmr.msra.gmra.mrb[0].mxu1 %vm450_vm0, %v403_v6 }
  0xc5   :  { %3313 = shalt.err (!%p3310_p8)  }
  0xc6   :  { %s3314_s13 = scalar_lea.vmem %s399_s14, 8192  ;;  %p3319_p10 = scmp.lt.s32.totalorder %s399_s14, %s399_s14 }
  0xc7   :  { %p3315_p9 = scmp.ne.s32.totalorder %s399_s14, %s3314_s13  ;;  %p3320_p11 = scmp.lt.s32.totalorder %s3314_s13, %s3314_s13 }
  0xc9   :  { %p3321_p12 = por %p3320_p11, %p3319_p10 }
  0xcb   :  { %p3322_p13 = pnand %p3321_p12, %p3315_p9 }
  0xcd   :  { %3325 = shalt.err (!%p3322_p13)  }
  0xce   :  { %401 = dma.hbm_to_vmem [thread:$0]  %s3866_s7, 8192, %s399_s14, [#allocation9]  ;;  %v410_v7 = vlaneseq  ;;  %v408_v11 = vld [vmem:[#allocation15] sm:$0xf] }
  0xd0   :  { %v411_v8 = vshrl.u32 %v410_v7, 7 }
  0xd2   :  { %v3657_v9 = vsub.s32 0, %v411_v8  ;;  %v420_v10 = vsub.s32 2, %v411_v8  ;;  %v3659_v12 = vsub.s32 1, %v411_v8  ;;  %v424_v13 = vsub.s32 3, %v411_v8 }
  0xd4   :  { %v413_v14 = vrot.slane %v408_v11, %v3657_v9  ;;  %v421_v15 = vrot.slane %v408_v11, %v420_v10  ;;  %v417_v16 = vrot.slane %v408_v11, %v3659_v12  ;;  %v425_v17 = vrot.slane %v408_v11, %v424_v13 }
 0x197   :  { %v488_v18 = vpop.f32.mrb[0].mxu0  ;;  %v529_v19 = vpop.f32.mrb[0].mxu1 }
 0x198   :  { %v489_v20 = vadd.f32 %v488_v18, %v413_v14  ;;  %v530_v21 = vadd.f32 %v529_v19, %v421_v15  ;;  %v490_v22 = vpop.f32.mrb[1].mxu0  ;;  %v531_v23 = vpop.f32.mrb[1].mxu1 }
 0x199   :  { %v491_v24 = vadd.f32 %v490_v22, %v417_v16  ;;  %v532_v25 = vadd.f32 %v531_v23, %v425_v17  ;;  %v492_v26 = vpop.f32.mrb[2].mxu0  ;;  %v533_v27 = vpop.f32.mrb[2].mxu1 }
 0x19a   :  { %v536_v28 = vmax.f32 %v489_v20, 0.0  ;;  %v538_v29 = vmax.f32 %v530_v21, 0.0  ;;  %v493_v30 = vpop.f32.mrb[3].mxu0  ;;  %v534_v31 = vpop.f32.mrb[3].mxu1 }
 0x19b   :  { %v537_v32 = vmax.f32 %v491_v24, 0.0  ;;  %v539_v33 = vmax.f32 %v532_v25, 0.0 }
 0x19c   :  { %v3663_v34 = vpack.c.bf16 %v536_v28, %v536_v28  ;;  %v3665_v35 = vpack.c.bf16 %v538_v29, %v538_v29 }
 0x19d   :  { %v3667_v36 = vpack.c.bf16 %v537_v32, %v537_v32  ;;  %v3669_v37 = vpack.c.bf16 %v539_v33, %v539_v33 }
 0x19e   :  { %3356 = dma.done.wait [#allocation7], 8192 }
 0x19f   :  { %3357 = vsyncadd [#allocation7], 4294959104  ;;  %656 = vmatprep.mubr.bf16.mxu0 %v3667_v36  ;;  %v549_v38 = vld [vmem:[#allocation2 + $0x8] sm:$0xff]  ;;  %v548_v39 = vld [vmem:[#allocation2] sm:$0xff] }
 0x1a0   :  { %v551_v40 = vld [vmem:[#allocation2 + $0x48] sm:$0xff]  ;;  %624 = vmatprep.subr.bf16.mxu0 %v549_v38  ;;  %v550_v41 = vld [vmem:[#allocation2 + $0x40] sm:$0xff] }
 0x1a1   :  { %625 = vmatpush1.bf16.msra.mxu0 %v548_v39  ;;  %v553_v42 = vld [vmem:[#allocation2 + $0x88] sm:$0xff]  ;;  %v552_v43 = vld [vmem:[#allocation2 + $0x80] sm:$0xff] }
 0x1a2   :  { %626 = vmatprep.subr.bf16.mxu0 %v551_v40  ;;  %v555_v44 = vld [vmem:[#allocation2 + $0xc8] sm:$0xff]  ;;  %v554_v45 = vld [vmem:[#allocation2 + $0xc0] sm:$0xff] }
 0x1a3   :  { %v557_v46 = vld [vmem:[#allocation2 + $0x108] sm:$0xff]  ;;  %v556_v47 = vld [vmem:[#allocation2 + $0x100] sm:$0xff] }
 0x1a4   :  { %v559_v48 = vld [vmem:[#allocation2 + $0x148] sm:$0xff]  ;;  %v558_v49 = vld [vmem:[#allocation2 + $0x140] sm:$0xff] }
 0x1a5   :  { %627 = vmatpush1.bf16.msra.mxu0 %v550_v41  ;;  %v561_v50 = vld [vmem:[#allocation2 + $0x188] sm:$0xff]  ;;  %v560_v51 = vld [vmem:[#allocation2 + $0x180] sm:$0xff] }
 0x1a6   :  { %628 = vmatprep.subr.bf16.mxu0 %v553_v42  ;;  %v563_v52 = vld [vmem:[#allocation2 + $0x1c8] sm:$0xff]  ;;  %v562_v53 = vld [vmem:[#allocation2 + $0x1c0] sm:$0xff] }
 0x1a7   :  { %v565_v54 = vld [vmem:[#allocation2 + $0x208] sm:$0xff]  ;;  %v564_v55 = vld [vmem:[#allocation2 + $0x200] sm:$0xff] }
 0x1a8   :  { %v567_v56 = vld [vmem:[#allocation2 + $0x248] sm:$0xff]  ;;  %v566_v57 = vld [vmem:[#allocation2 + $0x240] sm:$0xff] }
 0x1a9   :  { %629 = vmatpush1.bf16.msra.mxu0 %v552_v43  ;;  %v569_v58 = vld [vmem:[#allocation2 + $0x288] sm:$0xff]  ;;  %v568_v59 = vld [vmem:[#allocation2 + $0x280] sm:$0xff] }
 0x1aa   :  { %630 = vmatprep.subr.bf16.mxu0 %v555_v44  ;;  %v571_v60 = vld [vmem:[#allocation2 + $0x2c8] sm:$0xff]  ;;  %v570_v61 = vld [vmem:[#allocation2 + $0x2c0] sm:$0xff] }
 0x1ab   :  { %v573_v62 = vld [vmem:[#allocation2 + $0x308] sm:$0xff]  ;;  %v572_v63 = vld [vmem:[#allocation2 + $0x300] sm:$0xff] }
 0x1ac   :  { %v575_v0 = vld [vmem:[#allocation2 + $0x348] sm:$0xff]  ;;  %v574_v1 = vld [vmem:[#allocation2 + $0x340] sm:$0xff] }
 0x1ad   :  { %631 = vmatpush1.bf16.msra.mxu0 %v554_v45  ;;  %v577_v2 = vld [vmem:[#allocation2 + $0x388] sm:$0xff]  ;;  %v576_v3 = vld [vmem:[#allocation2 + $0x380] sm:$0xff] }
 0x1ae   :  { %632 = vmatprep.subr.bf16.mxu0 %v557_v46  ;;  %v579_v4 = vld [vmem:[#allocation2 + $0x3c8] sm:$0xff]  ;;  %v578_v5 = vld [vmem:[#allocation2 + $0x3c0] sm:$0xff] }
 0x1af   :  { %v581_v6 = vld [vmem:[#allocation2 + $0x408] sm:$0xff]  ;;  %v580_v7 = vld [vmem:[#allocation2 + $0x400] sm:$0xff] }
 0x1b0   :  { %v583_v8 = vld [vmem:[#allocation2 + $0x448] sm:$0xff]  ;;  %v582_v10 = vld [vmem:[#allocation2 + $0x440] sm:$0xff] }
 0x1b1   :  { %633 = vmatpush1.bf16.msra.mxu0 %v556_v47  ;;  %v585_v11 = vld [vmem:[#allocation2 + $0x488] sm:$0xff]  ;;  %v584_v13 = vld [vmem:[#allocation2 + $0x480] sm:$0xff] }
 0x1b2   :  { %634 = vmatprep.subr.bf16.mxu0 %v559_v48  ;;  %v587_v14 = vld [vmem:[#allocation2 + $0x4c8] sm:$0xff]  ;;  %v586_v15 = vld [vmem:[#allocation2 + $0x4c0] sm:$0xff] }
 0x1b3   :  { %v589_v16 = vld [vmem:[#allocation2 + $0x508] sm:$0xff]  ;;  %v588_v17 = vld [vmem:[#allocation2 + $0x500] sm:$0xff] }
 0x1b4   :  { %v591_v18 = vld [vmem:[#allocation2 + $0x548] sm:$0xff]  ;;  %v590_v19 = vld [vmem:[#allocation2 + $0x540] sm:$0xff] }
 0x1b5   :  { %635 = vmatpush1.bf16.msra.mxu0 %v558_v49  ;;  %v593_v20 = vld [vmem:[#allocation2 + $0x588] sm:$0xff]  ;;  %v592_v21 = vld [vmem:[#allocation2 + $0x580] sm:$0xff] }
 0x1b6   :  { %636 = vmatprep.subr.bf16.mxu0 %v561_v50  ;;  %v595_v22 = vld [vmem:[#allocation2 + $0x5c8] sm:$0xff]  ;;  %v594_v23 = vld [vmem:[#allocation2 + $0x5c0] sm:$0xff] }
 0x1b7   :  { %v597_v24 = vld [vmem:[#allocation2 + $0x608] sm:$0xff]  ;;  %v596_v25 = vld [vmem:[#allocation2 + $0x600] sm:$0xff] }
 0x1b8   :  { %v599_v26 = vld [vmem:[#allocation2 + $0x648] sm:$0xff]  ;;  %v598_v27 = vld [vmem:[#allocation2 + $0x640] sm:$0xff] }
 0x1b9   :  { %637 = vmatpush1.bf16.msra.mxu0 %v560_v51  ;;  %v601_v28 = vld [vmem:[#allocation2 + $0x688] sm:$0xff]  ;;  %v600_v29 = vld [vmem:[#allocation2 + $0x680] sm:$0xff] }
 0x1ba   :  { %638 = vmatprep.subr.bf16.mxu0 %v563_v52  ;;  %v603_v30 = vld [vmem:[#allocation2 + $0x6c8] sm:$0xff]  ;;  %v602_v31 = vld [vmem:[#allocation2 + $0x6c0] sm:$0xff] }
 0x1bb   :  { %v605_v32 = vld [vmem:[#allocation2 + $0x708] sm:$0xff]  ;;  %v604_v33 = vld [vmem:[#allocation2 + $0x700] sm:$0xff] }
 0x1bc   :  { %v607_v38 = vld [vmem:[#allocation2 + $0x748] sm:$0xff]  ;;  %v606_v39 = vld [vmem:[#allocation2 + $0x740] sm:$0xff] }
 0x1bd   :  { %639 = vmatpush1.bf16.msra.mxu0 %v562_v53  ;;  %v609_v40 = vld [vmem:[#allocation2 + $0x788] sm:$0xff]  ;;  %v608_v41 = vld [vmem:[#allocation2 + $0x780] sm:$0xff] }
 0x1be   :  { %640 = vmatprep.subr.bf16.mxu0 %v565_v54  ;;  %v611_v42 = vld [vmem:[#allocation2 + $0x7c8] sm:$0xff]  ;;  %v610_v43 = vld [vmem:[#allocation2 + $0x7c0] sm:$0xff] }
 0x1bf   :  { %v612_v44 = vld [vmem:[#allocation16] sm:$0x3] }
 0x1c0   :  { %v617_v45 = vrot.slane %v612_v44, %v3657_v9  ;;  %v621_v46 = vrot.slane %v612_v44, %v3659_v12 }
 0x1c1   :  { %641 = vmatpush1.bf16.msra.mxu0 %v564_v55 }
 0x1c2   :  { %642 = vmatprep.subr.bf16.mxu0 %v567_v56 }
 0x1c5   :  { %643 = vmatpush1.bf16.msra.mxu0 %v566_v57 }
 0x1c6   :  { %644 = vmatprep.subr.bf16.mxu0 %v569_v58 }
 0x1c9   :  { %645 = vmatpush1.bf16.msra.mxu0 %v568_v59 }
 0x1ca   :  { %646 = vmatprep.subr.bf16.mxu0 %v571_v60 }
 0x1cd   :  { %647 = vmatpush1.bf16.msra.mxu0 %v570_v61 }
 0x1ce   :  { %648 = vmatprep.subr.bf16.mxu0 %v573_v62 }
 0x1d1   :  { %649 = vmatpush1.bf16.msra.mxu0 %v572_v63 }
 0x1d2   :  { %650 = vmatprep.subr.bf16.mxu0 %v575_v0 }
 0x1d5   :  { %651 = vmatpush1.bf16.msra.mxu0 %v574_v1 }
 0x1d6   :  { %652 = vmatprep.subr.bf16.mxu0 %v577_v2 }
 0x1d9   :  { %653 = vmatpush1.bf16.msra.mxu0 %v576_v3 }
 0x1da   :  { %654 = vmatprep.subr.bf16.mxu0 %v579_v4 }
 0x1dd   :  { %655 = vmatpush1.bf16.msra.mxu0 %v578_v5 }
 0x1de   :  { %665 = vmatprep.subr.bf16.mxu0 %v581_v6 }
 0x1e0   :  { %657 = vmatmul.mubr.bf16.vlgmr.msra.gmra.mrb[4].mxu0 %v3663_v34 }
 0x1e1   :  { %666 = vmatpush1.bf16.msra.mxu0 %v580_v7  ;;  %697 = vmatprep.mubr.bf16.mxu0 %v3669_v37 }
 0x1e2   :  { %667 = vmatprep.subr.bf16.mxu0 %v583_v8 }
 0x1e5   :  { %668 = vmatpush1.bf16.msra.mxu0 %v582_v10 }
 0x1e6   :  { %669 = vmatprep.subr.bf16.mxu0 %v585_v11 }
 0x1e9   :  { %670 = vmatpush1.bf16.msra.mxu0 %v584_v13 }
 0x1ea   :  { %671 = vmatprep.subr.bf16.mxu0 %v587_v14 }
 0x1ed   :  { %672 = vmatpush1.bf16.msra.mxu0 %v586_v15 }
 0x1ee   :  { %673 = vmatprep.subr.bf16.mxu0 %v589_v16 }
 0x1f1   :  { %674 = vmatpush1.bf16.msra.mxu0 %v588_v17 }
 0x1f2   :  { %675 = vmatprep.subr.bf16.mxu0 %v591_v18 }
 0x1f5   :  { %676 = vmatpush1.bf16.msra.mxu0 %v590_v19 }
 0x1f6   :  { %677 = vmatprep.subr.bf16.mxu0 %v593_v20 }
 0x1f9   :  { %678 = vmatpush1.bf16.msra.mxu0 %v592_v21 }
 0x1fa   :  { %679 = vmatprep.subr.bf16.mxu0 %v595_v22 }
 0x1fd   :  { %680 = vmatpush1.bf16.msra.mxu0 %v594_v23 }
 0x1fe   :  { %681 = vmatprep.subr.bf16.mxu0 %v597_v24 }
 0x201   :  { %682 = vmatpush1.bf16.msra.mxu0 %v596_v25 }
 0x202   :  { %683 = vmatprep.subr.bf16.mxu0 %v599_v26 }
 0x205   :  { %684 = vmatpush1.bf16.msra.mxu0 %v598_v27 }
 0x206   :  { %685 = vmatprep.subr.bf16.mxu0 %v601_v28 }
 0x209   :  { %686 = vmatpush1.bf16.msra.mxu0 %v600_v29 }
 0x20a   :  { %687 = vmatprep.subr.bf16.mxu0 %v603_v30 }
 0x20d   :  { %688 = vmatpush1.bf16.msra.mxu0 %v602_v31 }
 0x20e   :  { %689 = vmatprep.subr.bf16.mxu0 %v605_v32 }
 0x211   :  { %690 = vmatpush1.bf16.msra.mxu0 %v604_v33 }
 0x212   :  { %691 = vmatprep.subr.bf16.mxu0 %v607_v38 }
 0x215   :  { %692 = vmatpush1.bf16.msra.mxu0 %v606_v39 }
 0x216   :  { %693 = vmatprep.subr.bf16.mxu0 %v609_v40 }
 0x219   :  { %694 = vmatpush1.bf16.msra.mxu0 %v608_v41 }
 0x21a   :  { %695 = vmatprep.subr.bf16.mxu0 %v611_v42 }
 0x21d   :  { %696 = vmatpush1.bf16.msra.mxu0 %v610_v43 }
 0x220   :  { %698 = vmatmul.mubr.bf16.vlgmr.msra.gmra.mrb[4].mxu0 %v3665_v35 }
 0x2f3   :  { %v699_v47 = vpop.f32.mrb[4].mxu0 }
 0x2f4   :  { %v3677_v48 = vadd.f32 %v699_v47, %v617_v45  ;;  %v701_v49 = vpop.f32.mrb[5].mxu0 }
 0x2f5   :  { %v3679_v50 = vadd.f32 %v701_v49, %v621_v46  ;;  %v703_v51 = vpop.f32.mrb[6].mxu0 }
 0x2f6   :  { %v706_v52 = vmax.f32 %v3677_v48, 0.0  ;;  %v704_v53 = vpop.f32.mrb[7].mxu0 }
 0x2f7   :  { %v707_v54 = vmax.f32 %v3679_v50, 0.0 }
 0x2f8   :  { %3358 = dma.done.wait [#allocation7 + $0x1], 8192 }
 0x2f9   :  { %3359 = vsyncadd [#allocation7 + $0x1], 4294959104  ;;  %827 = vmatprep.mubr.bf16.mxu1 %v3667_v36  ;;  %v720_v55 = vld [vmem:[#allocation2 + $0x18] sm:$0xff]  ;;  %v719_v56 = vld [vmem:[#allocation2 + $0x10] sm:$0xff] }
 0x2fa   :  { %v722_v57 = vld [vmem:[#allocation2 + $0x58] sm:$0xff]  ;;  %795 = vmatprep.subr.bf16.mxu1 %v720_v55  ;;  %v721_v58 = vld [vmem:[#allocation2 + $0x50] sm:$0xff] }
 0x2fb   :  { %796 = vmatpush1.bf16.msra.mxu1 %v719_v56  ;;  %v724_v59 = vld [vmem:[#allocation2 + $0x98] sm:$0xff]  ;;  %v723_v60 = vld [vmem:[#allocation2 + $0x90] sm:$0xff] }
 0x2fc   :  { %797 = vmatprep.subr.bf16.mxu1 %v722_v57  ;;  %v726_v61 = vld [vmem:[#allocation2 + $0xd8] sm:$0xff]  ;;  %v725_v62 = vld [vmem:[#allocation2 + $0xd0] sm:$0xff] }
 0x2fd   :  { %v728_v63 = vld [vmem:[#allocation2 + $0x118] sm:$0xff]  ;;  %v727_v0 = vld [vmem:[#allocation2 + $0x110] sm:$0xff] }
 0x2fe   :  { %v730_v1 = vld [vmem:[#allocation2 + $0x158] sm:$0xff]  ;;  %v729_v2 = vld [vmem:[#allocation2 + $0x150] sm:$0xff] }
 0x2ff   :  { %798 = vmatpush1.bf16.msra.mxu1 %v721_v58  ;;  %v732_v3 = vld [vmem:[#allocation2 + $0x198] sm:$0xff]  ;;  %v731_v4 = vld [vmem:[#allocation2 + $0x190] sm:$0xff] }
 0x300   :  { %799 = vmatprep.subr.bf16.mxu1 %v724_v59  ;;  %v734_v5 = vld [vmem:[#allocation2 + $0x1d8] sm:$0xff]  ;;  %v733_v6 = vld [vmem:[#allocation2 + $0x1d0] sm:$0xff] }
 0x301   :  { %v736_v7 = vld [vmem:[#allocation2 + $0x218] sm:$0xff]  ;;  %v735_v8 = vld [vmem:[#allocation2 + $0x210] sm:$0xff] }
 0x302   :  { %v738_v10 = vld [vmem:[#allocation2 + $0x258] sm:$0xff]  ;;  %v737_v11 = vld [vmem:[#allocation2 + $0x250] sm:$0xff] }
 0x303   :  { %800 = vmatpush1.bf16.msra.mxu1 %v723_v60  ;;  %v740_v13 = vld [vmem:[#allocation2 + $0x298] sm:$0xff]  ;;  %v739_v14 = vld [vmem:[#allocation2 + $0x290] sm:$0xff] }
 0x304   :  { %801 = vmatprep.subr.bf16.mxu1 %v726_v61  ;;  %v742_v15 = vld [vmem:[#allocation2 + $0x2d8] sm:$0xff]  ;;  %v741_v16 = vld [vmem:[#allocation2 + $0x2d0] sm:$0xff] }
 0x305   :  { %v744_v17 = vld [vmem:[#allocation2 + $0x318] sm:$0xff]  ;;  %v743_v18 = vld [vmem:[#allocation2 + $0x310] sm:$0xff] }
 0x306   :  { %v746_v19 = vld [vmem:[#allocation2 + $0x358] sm:$0xff]  ;;  %v745_v20 = vld [vmem:[#allocation2 + $0x350] sm:$0xff] }
 0x307   :  { %802 = vmatpush1.bf16.msra.mxu1 %v725_v62  ;;  %v748_v21 = vld [vmem:[#allocation2 + $0x398] sm:$0xff]  ;;  %v747_v22 = vld [vmem:[#allocation2 + $0x390] sm:$0xff] }
 0x308   :  { %803 = vmatprep.subr.bf16.mxu1 %v728_v63  ;;  %v750_v23 = vld [vmem:[#allocation2 + $0x3d8] sm:$0xff]  ;;  %v749_v24 = vld [vmem:[#allocation2 + $0x3d0] sm:$0xff] }
 0x309   :  { %v752_v25 = vld [vmem:[#allocation2 + $0x418] sm:$0xff]  ;;  %v751_v26 = vld [vmem:[#allocation2 + $0x410] sm:$0xff] }
 0x30a   :  { %v754_v27 = vld [vmem:[#allocation2 + $0x458] sm:$0xff]  ;;  %v753_v28 = vld [vmem:[#allocation2 + $0x450] sm:$0xff] }
 0x30b   :  { %804 = vmatpush1.bf16.msra.mxu1 %v727_v0  ;;  %v756_v29 = vld [vmem:[#allocation2 + $0x498] sm:$0xff]  ;;  %v755_v30 = vld [vmem:[#allocation2 + $0x490] sm:$0xff] }
 0x30c   :  { %805 = vmatprep.subr.bf16.mxu1 %v730_v1  ;;  %v758_v31 = vld [vmem:[#allocation2 + $0x4d8] sm:$0xff]  ;;  %v757_v32 = vld [vmem:[#allocation2 + $0x4d0] sm:$0xff]  ;;  %v783_v1 = vld [vmem:[#allocation16 + $0x2] sm:$0x3] }
 0x30d   :  { %v760_v33 = vld [vmem:[#allocation2 + $0x518] sm:$0xff]  ;;  %v759_v38 = vld [vmem:[#allocation2 + $0x510] sm:$0xff] }
 0x30e   :  { %v762_v39 = vld [vmem:[#allocation2 + $0x558] sm:$0xff]  ;;  %v761_v40 = vld [vmem:[#allocation2 + $0x550] sm:$0xff] }
 0x30f   :  { %806 = vmatpush1.bf16.msra.mxu1 %v729_v2  ;;  %v764_v41 = vld [vmem:[#allocation2 + $0x598] sm:$0xff]  ;;  %v763_v42 = vld [vmem:[#allocation2 + $0x590] sm:$0xff]  ;;  %v788_v2 = vrot.slane %v783_v1, %v3657_v9 }
 0x310   :  { %807 = vmatprep.subr.bf16.mxu1 %v732_v3  ;;  %v766_v43 = vld [vmem:[#allocation2 + $0x5d8] sm:$0xff]  ;;  %v765_v44 = vld [vmem:[#allocation2 + $0x5d0] sm:$0xff]  ;;  %v792_v3 = vrot.slane %v783_v1, %v3659_v12 }
 0x311   :  { %v768_v45 = vld [vmem:[#allocation2 + $0x618] sm:$0xff]  ;;  %v767_v46 = vld [vmem:[#allocation2 + $0x610] sm:$0xff] }
 0x312   :  { %v770_v47 = vld [vmem:[#allocation2 + $0x658] sm:$0xff]  ;;  %v769_v49 = vld [vmem:[#allocation2 + $0x650] sm:$0xff] }
 0x313   :  { %808 = vmatpush1.bf16.msra.mxu1 %v731_v4  ;;  %v772_v51 = vld [vmem:[#allocation2 + $0x698] sm:$0xff]  ;;  %v771_v53 = vld [vmem:[#allocation2 + $0x690] sm:$0xff] }
 0x314   :  { %809 = vmatprep.subr.bf16.mxu1 %v734_v5  ;;  %v774_v55 = vld [vmem:[#allocation2 + $0x6d8] sm:$0xff]  ;;  %v773_v56 = vld [vmem:[#allocation2 + $0x6d0] sm:$0xff] }
 0x315   :  { %v776_v57 = vld [vmem:[#allocation2 + $0x718] sm:$0xff]  ;;  %v775_v58 = vld [vmem:[#allocation2 + $0x710] sm:$0xff] }
 0x316   :  { %v778_v59 = vld [vmem:[#allocation2 + $0x758] sm:$0xff]  ;;  %v777_v60 = vld [vmem:[#allocation2 + $0x750] sm:$0xff] }
 0x317   :  { %810 = vmatpush1.bf16.msra.mxu1 %v733_v6  ;;  %v780_v61 = vld [vmem:[#allocation2 + $0x798] sm:$0xff]  ;;  %v779_v62 = vld [vmem:[#allocation2 + $0x790] sm:$0xff] }
 0x318   :  { %811 = vmatprep.subr.bf16.mxu1 %v736_v7  ;;  %v782_v63 = vld [vmem:[#allocation2 + $0x7d8] sm:$0xff]  ;;  %v781_v0 = vld [vmem:[#allocation2 + $0x7d0] sm:$0xff] }
 0x31b   :  { %812 = vmatpush1.bf16.msra.mxu1 %v735_v8 }
 0x31c   :  { %813 = vmatprep.subr.bf16.mxu1 %v738_v10 }
 0x31f   :  { %814 = vmatpush1.bf16.msra.mxu1 %v737_v11 }
 0x320   :  { %815 = vmatprep.subr.bf16.mxu1 %v740_v13 }
 0x323   :  { %816 = vmatpush1.bf16.msra.mxu1 %v739_v14 }
 0x324   :  { %817 = vmatprep.subr.bf16.mxu1 %v742_v15 }
 0x327   :  { %818 = vmatpush1.bf16.msra.mxu1 %v741_v16 }
 0x328   :  { %819 = vmatprep.subr.bf16.mxu1 %v744_v17 }
 0x32b   :  { %820 = vmatpush1.bf16.msra.mxu1 %v743_v18 }
 0x32c   :  { %821 = vmatprep.subr.bf16.mxu1 %v746_v19 }
 0x32f   :  { %822 = vmatpush1.bf16.msra.mxu1 %v745_v20 }
 0x330   :  { %823 = vmatprep.subr.bf16.mxu1 %v748_v21 }
 0x333   :  { %824 = vmatpush1.bf16.msra.mxu1 %v747_v22 }
 0x334   :  { %825 = vmatprep.subr.bf16.mxu1 %v750_v23 }
 0x337   :  { %826 = vmatpush1.bf16.msra.mxu1 %v749_v24 }
 0x338   :  { %836 = vmatprep.subr.bf16.mxu1 %v752_v25 }
 0x33a   :  { %828 = vmatmul.mubr.bf16.vlgmr.msra.gmra.mrb[4].mxu1 %v3663_v34 }
 0x33b   :  { %837 = vmatpush1.bf16.msra.mxu1 %v751_v26  ;;  %868 = vmatprep.mubr.bf16.mxu1 %v3669_v37 }
 0x33c   :  { %838 = vmatprep.subr.bf16.mxu1 %v754_v27 }
 0x33f   :  { %839 = vmatpush1.bf16.msra.mxu1 %v753_v28 }
 0x340   :  { %840 = vmatprep.subr.bf16.mxu1 %v756_v29 }
 0x343   :  { %841 = vmatpush1.bf16.msra.mxu1 %v755_v30 }
 0x344   :  { %842 = vmatprep.subr.bf16.mxu1 %v758_v31 }
 0x347   :  { %843 = vmatpush1.bf16.msra.mxu1 %v757_v32 }
 0x348   :  { %844 = vmatprep.subr.bf16.mxu1 %v760_v33 }
 0x34b   :  { %845 = vmatpush1.bf16.msra.mxu1 %v759_v38 }
 0x34c   :  { %846 = vmatprep.subr.bf16.mxu1 %v762_v39 }
 0x34f   :  { %847 = vmatpush1.bf16.msra.mxu1 %v761_v40 }
 0x350   :  { %848 = vmatprep.subr.bf16.mxu1 %v764_v41 }
 0x353   :  { %849 = vmatpush1.bf16.msra.mxu1 %v763_v42 }
 0x354   :  { %850 = vmatprep.subr.bf16.mxu1 %v766_v43 }
 0x357   :  { %851 = vmatpush1.bf16.msra.mxu1 %v765_v44 }
 0x358   :  { %852 = vmatprep.subr.bf16.mxu1 %v768_v45 }
 0x35b   :  { %853 = vmatpush1.bf16.msra.mxu1 %v767_v46 }
 0x35c   :  { %854 = vmatprep.subr.bf16.mxu1 %v770_v47 }
 0x35f   :  { %855 = vmatpush1.bf16.msra.mxu1 %v769_v49 }
 0x360   :  { %856 = vmatprep.subr.bf16.mxu1 %v772_v51 }
 0x363   :  { %857 = vmatpush1.bf16.msra.mxu1 %v771_v53 }
 0x364   :  { %858 = vmatprep.subr.bf16.mxu1 %v774_v55 }
 0x367   :  { %859 = vmatpush1.bf16.msra.mxu1 %v773_v56 }
 0x368   :  { %860 = vmatprep.subr.bf16.mxu1 %v776_v57 }
 0x36b   :  { %861 = vmatpush1.bf16.msra.mxu1 %v775_v58 }
 0x36c   :  { %862 = vmatprep.subr.bf16.mxu1 %v778_v59 }
 0x36f   :  { %863 = vmatpush1.bf16.msra.mxu1 %v777_v60 }
 0x370   :  { %864 = vmatprep.subr.bf16.mxu1 %v780_v61 }
 0x373   :  { %865 = vmatpush1.bf16.msra.mxu1 %v779_v62 }
 0x374   :  { %866 = vmatprep.subr.bf16.mxu1 %v782_v63 }
 0x377   :  { %867 = vmatpush1.bf16.msra.mxu1 %v781_v0 }
 0x37a   :  { %869 = vmatmul.mubr.bf16.vlgmr.msra.gmra.mrb[4].mxu1 %v3665_v35 }
 0x44d   :  { %v870_v4 = vpop.f32.mrb[4].mxu1 }
 0x44e   :  { %v3689_v5 = vadd.f32 %v870_v4, %v788_v2  ;;  %v872_v6 = vpop.f32.mrb[5].mxu1 }
 0x44f   :  { %v3691_v7 = vadd.f32 %v872_v6, %v792_v3  ;;  %v874_v8 = vpop.f32.mrb[6].mxu1 }
 0x450   :  { %v877_v10 = vmax.f32 %v3689_v5, 0.0  ;;  %v875_v11 = vpop.f32.mrb[7].mxu1 }
 0x451   :  { %v878_v13 = vmax.f32 %v3691_v7, 0.0 }
 0x452   :  { %3360 = dma.done.wait [#allocation7 + $0x2], 8192 }
 0x453   :  { %3361 = vsyncadd [#allocation7 + $0x2], 4294959104  ;;  %998 = vmatprep.mubr.bf16.mxu0 %v3667_v36  ;;  %v891_v14 = vld [vmem:[#allocation2 + $0x28] sm:$0xff]  ;;  %v890_v15 = vld [vmem:[#allocation2 + $0x20] sm:$0xff] }
 0x454   :  { %v893_v16 = vld [vmem:[#allocation2 + $0x68] sm:$0xff]  ;;  %966 = vmatprep.subr.bf16.mxu0 %v891_v14  ;;  %v892_v17 = vld [vmem:[#allocation2 + $0x60] sm:$0xff] }
 0x455   :  { %967 = vmatpush1.bf16.msra.mxu0 %v890_v15  ;;  %v895_v18 = vld [vmem:[#allocation2 + $0xa8] sm:$0xff]  ;;  %v894_v19 = vld [vmem:[#allocation2 + $0xa0] sm:$0xff] }
 0x456   :  { %968 = vmatprep.subr.bf16.mxu0 %v893_v16  ;;  %v897_v20 = vld [vmem:[#allocation2 + $0xe8] sm:$0xff]  ;;  %v896_v21 = vld [vmem:[#allocation2 + $0xe0] sm:$0xff] }
 0x457   :  { %v899_v22 = vld [vmem:[#allocation2 + $0x128] sm:$0xff]  ;;  %v898_v23 = vld [vmem:[#allocation2 + $0x120] sm:$0xff] }
 0x458   :  { %v901_v24 = vld [vmem:[#allocation2 + $0x168] sm:$0xff]  ;;  %v900_v25 = vld [vmem:[#allocation2 + $0x160] sm:$0xff] }
 0x459   :  { %969 = vmatpush1.bf16.msra.mxu0 %v892_v17  ;;  %v903_v26 = vld [vmem:[#allocation2 + $0x1a8] sm:$0xff]  ;;  %v902_v27 = vld [vmem:[#allocation2 + $0x1a0] sm:$0xff] }
 0x45a   :  { %970 = vmatprep.subr.bf16.mxu0 %v895_v18  ;;  %v905_v28 = vld [vmem:[#allocation2 + $0x1e8] sm:$0xff]  ;;  %v904_v29 = vld [vmem:[#allocation2 + $0x1e0] sm:$0xff] }
 0x45b   :  { %v907_v30 = vld [vmem:[#allocation2 + $0x228] sm:$0xff]  ;;  %v906_v31 = vld [vmem:[#allocation2 + $0x220] sm:$0xff] }
 0x45c   :  { %v909_v32 = vld [vmem:[#allocation2 + $0x268] sm:$0xff]  ;;  %v908_v33 = vld [vmem:[#allocation2 + $0x260] sm:$0xff] }
 0x45d   :  { %971 = vmatpush1.bf16.msra.mxu0 %v894_v19  ;;  %v911_v38 = vld [vmem:[#allocation2 + $0x2a8] sm:$0xff]  ;;  %v910_v39 = vld [vmem:[#allocation2 + $0x2a0] sm:$0xff] }
 0x45e   :  { %972 = vmatprep.subr.bf16.mxu0 %v897_v20  ;;  %v913_v40 = vld [vmem:[#allocation2 + $0x2e8] sm:$0xff]  ;;  %v912_v41 = vld [vmem:[#allocation2 + $0x2e0] sm:$0xff] }
 0x45f   :  { %v915_v42 = vld [vmem:[#allocation2 + $0x328] sm:$0xff]  ;;  %v914_v43 = vld [vmem:[#allocation2 + $0x320] sm:$0xff] }
 0x460   :  { %v917_v44 = vld [vmem:[#allocation2 + $0x368] sm:$0xff]  ;;  %v916_v45 = vld [vmem:[#allocation2 + $0x360] sm:$0xff] }
 0x461   :  { %973 = vmatpush1.bf16.msra.mxu0 %v896_v21  ;;  %v919_v46 = vld [vmem:[#allocation2 + $0x3a8] sm:$0xff]  ;;  %v918_v47 = vld [vmem:[#allocation2 + $0x3a0] sm:$0xff] }
 0x462   :  { %974 = vmatprep.subr.bf16.mxu0 %v899_v22  ;;  %v921_v49 = vld [vmem:[#allocation2 + $0x3e8] sm:$0xff]  ;;  %v920_v51 = vld [vmem:[#allocation2 + $0x3e0] sm:$0xff] }
 0x463   :  { %v923_v53 = vld [vmem:[#allocation2 + $0x428] sm:$0xff]  ;;  %v922_v55 = vld [vmem:[#allocation2 + $0x420] sm:$0xff] }
 0x464   :  { %v925_v56 = vld [vmem:[#allocation2 + $0x468] sm:$0xff]  ;;  %v924_v57 = vld [vmem:[#allocation2 + $0x460] sm:$0xff] }
 0x465   :  { %975 = vmatpush1.bf16.msra.mxu0 %v898_v23  ;;  %v927_v58 = vld [vmem:[#allocation2 + $0x4a8] sm:$0xff]  ;;  %v926_v59 = vld [vmem:[#allocation2 + $0x4a0] sm:$0xff] }
 0x466   :  { %976 = vmatprep.subr.bf16.mxu0 %v901_v24  ;;  %v929_v60 = vld [vmem:[#allocation2 + $0x4e8] sm:$0xff]  ;;  %v928_v61 = vld [vmem:[#allocation2 + $0x4e0] sm:$0xff] }
 0x467   :  { %v931_v62 = vld [vmem:[#allocation2 + $0x528] sm:$0xff]  ;;  %v930_v63 = vld [vmem:[#allocation2 + $0x520] sm:$0xff] }
 0x468   :  { %v933_v0 = vld [vmem:[#allocation2 + $0x568] sm:$0xff]  ;;  %v932_v1 = vld [vmem:[#allocation2 + $0x560] sm:$0xff] }
 0x469   :  { %977 = vmatpush1.bf16.msra.mxu0 %v900_v25  ;;  %v935_v2 = vld [vmem:[#allocation2 + $0x5a8] sm:$0xff]  ;;  %v934_v3 = vld [vmem:[#allocation2 + $0x5a0] sm:$0xff] }
 0x46a   :  { %978 = vmatprep.subr.bf16.mxu0 %v903_v26  ;;  %v937_v4 = vld [vmem:[#allocation2 + $0x5e8] sm:$0xff]  ;;  %v936_v6 = vld [vmem:[#allocation2 + $0x5e0] sm:$0xff] }
 0x46b   :  { %v939_v8 = vld [vmem:[#allocation2 + $0x628] sm:$0xff]  ;;  %v938_v11 = vld [vmem:[#allocation2 + $0x620] sm:$0xff] }
 0x46c   :  { %v941_v14 = vld [vmem:[#allocation2 + $0x668] sm:$0xff]  ;;  %v940_v15 = vld [vmem:[#allocation2 + $0x660] sm:$0xff] }
 0x46d   :  { %979 = vmatpush1.bf16.msra.mxu0 %v902_v27  ;;  %v943_v16 = vld [vmem:[#allocation2 + $0x6a8] sm:$0xff]  ;;  %v942_v17 = vld [vmem:[#allocation2 + $0x6a0] sm:$0xff] }
 0x46e   :  { %980 = vmatprep.subr.bf16.mxu0 %v905_v28  ;;  %v945_v18 = vld [vmem:[#allocation2 + $0x6e8] sm:$0xff]  ;;  %v944_v19 = vld [vmem:[#allocation2 + $0x6e0] sm:$0xff]  ;;  %v954_v28 = vld [vmem:[#allocation16 + $0x4] sm:$0x3] }
 0x46f   :  { %v947_v20 = vld [vmem:[#allocation2 + $0x728] sm:$0xff]  ;;  %v946_v21 = vld [vmem:[#allocation2 + $0x720] sm:$0xff] }
 0x470   :  { %v949_v22 = vld [vmem:[#allocation2 + $0x768] sm:$0xff]  ;;  %v948_v23 = vld [vmem:[#allocation2 + $0x760] sm:$0xff] }
 0x471   :  { %981 = vmatpush1.bf16.msra.mxu0 %v904_v29  ;;  %v951_v24 = vld [vmem:[#allocation2 + $0x7a8] sm:$0xff]  ;;  %v950_v25 = vld [vmem:[#allocation2 + $0x7a0] sm:$0xff]  ;;  %v959_v29 = vrot.slane %v954_v28, %v3657_v9 }
 0x472   :  { %982 = vmatprep.subr.bf16.mxu0 %v907_v30  ;;  %v953_v26 = vld [vmem:[#allocation2 + $0x7e8] sm:$0xff]  ;;  %v952_v27 = vld [vmem:[#allocation2 + $0x7e0] sm:$0xff]  ;;  %v963_v30 = vrot.slane %v954_v28, %v3659_v12 }
 0x475   :  { %983 = vmatpush1.bf16.msra.mxu0 %v906_v31 }
 0x476   :  { %984 = vmatprep.subr.bf16.mxu0 %v909_v32 }
 0x479   :  { %985 = vmatpush1.bf16.msra.mxu0 %v908_v33 }
 0x47a   :  { %986 = vmatprep.subr.bf16.mxu0 %v911_v38 }
 0x47d   :  { %987 = vmatpush1.bf16.msra.mxu0 %v910_v39 }
 0x47e   :  { %988 = vmatprep.subr.bf16.mxu0 %v913_v40 }
 0x481   :  { %989 = vmatpush1.bf16.msra.mxu0 %v912_v41 }
 0x482   :  { %990 = vmatprep.subr.bf16.mxu0 %v915_v42 }
 0x485   :  { %991 = vmatpush1.bf16.msra.mxu0 %v914_v43 }
 0x486   :  { %992 = vmatprep.subr.bf16.mxu0 %v917_v44 }
 0x489   :  { %993 = vmatpush1.bf16.msra.mxu0 %v916_v45 }
 0x48a   :  { %994 = vmatprep.subr.bf16.mxu0 %v919_v46 }
 0x48d   :  { %995 = vmatpush1.bf16.msra.mxu0 %v918_v47 }
 0x48e   :  { %996 = vmatprep.subr.bf16.mxu0 %v921_v49 }
 0x491   :  { %997 = vmatpush1.bf16.msra.mxu0 %v920_v51 }
 0x492   :  { %1007 = vmatprep.subr.bf16.mxu0 %v923_v53 }
 0x494   :  { %999 = vmatmul.mubr.bf16.vlgmr.msra.gmra.mrb[8].mxu0 %v3663_v34 }
 0x495   :  { %1008 = vmatpush1.bf16.msra.mxu0 %v922_v55  ;;  %1039 = vmatprep.mubr.bf16.mxu0 %v3669_v37 }
 0x496   :  { %1009 = vmatprep.subr.bf16.mxu0 %v925_v56 }
 0x499   :  { %1010 = vmatpush1.bf16.msra.mxu0 %v924_v57 }
 0x49a   :  { %1011 = vmatprep.subr.bf16.mxu0 %v927_v58 }
 0x49d   :  { %1012 = vmatpush1.bf16.msra.mxu0 %v926_v59 }
 0x49e   :  { %1013 = vmatprep.subr.bf16.mxu0 %v929_v60 }
 0x4a1   :  { %1014 = vmatpush1.bf16.msra.mxu0 %v928_v61 }
 0x4a2   :  { %1015 = vmatprep.subr.bf16.mxu0 %v931_v62 }
 0x4a5   :  { %1016 = vmatpush1.bf16.msra.mxu0 %v930_v63 }
 0x4a6   :  { %1017 = vmatprep.subr.bf16.mxu0 %v933_v0 }
 0x4a9   :  { %1018 = vmatpush1.bf16.msra.mxu0 %v932_v1 }
 0x4aa   :  { %1019 = vmatprep.subr.bf16.mxu0 %v935_v2 }
 0x4ad   :  { %1020 = vmatpush1.bf16.msra.mxu0 %v934_v3 }
 0x4ae   :  { %1021 = vmatprep.subr.bf16.mxu0 %v937_v4 }
 0x4b1   :  { %1022 = vmatpush1.bf16.msra.mxu0 %v936_v6 }
 0x4b2   :  { %1023 = vmatprep.subr.bf16.mxu0 %v939_v8 }
 0x4b5   :  { %1024 = vmatpush1.bf16.msra.mxu0 %v938_v11 }
 0x4b6   :  { %1025 = vmatprep.subr.bf16.mxu0 %v941_v14 }
 0x4b9   :  { %1026 = vmatpush1.bf16.msra.mxu0 %v940_v15 }
 0x4ba   :  { %1027 = vmatprep.subr.bf16.mxu0 %v943_v16 }
 0x4bd   :  { %1028 = vmatpush1.bf16.msra.mxu0 %v942_v17 }
 0x4be   :  { %1029 = vmatprep.subr.bf16.mxu0 %v945_v18 }
 0x4c1   :  { %1030 = vmatpush1.bf16.msra.mxu0 %v944_v19 }
 0x4c2   :  { %1031 = vmatprep.subr.bf16.mxu0 %v947_v20 }
 0x4c5   :  { %1032 = vmatpush1.bf16.msra.mxu0 %v946_v21 }
 0x4c6   :  { %1033 = vmatprep.subr.bf16.mxu0 %v949_v22 }
 0x4c9   :  { %1034 = vmatpush1.bf16.msra.mxu0 %v948_v23 }
 0x4ca   :  { %1035 = vmatprep.subr.bf16.mxu0 %v951_v24 }
 0x4cd   :  { %1036 = vmatpush1.bf16.msra.mxu0 %v950_v25 }
 0x4ce   :  { %1037 = vmatprep.subr.bf16.mxu0 %v953_v26 }
 0x4d1   :  { %1038 = vmatpush1.bf16.msra.mxu0 %v952_v27 }
 0x4d4   :  { %1040 = vmatmul.mubr.bf16.vlgmr.msra.gmra.mrb[8].mxu0 %v3665_v35 }
 0x5a7   :  { %v1041_v31 = vpop.f32.mrb[8].mxu0 }
 0x5a8   :  { %v3701_v32 = vadd.f32 %v1041_v31, %v959_v29  ;;  %v1043_v33 = vpop.f32.mrb[9].mxu0 }
 0x5a9   :  { %v3703_v38 = vadd.f32 %v1043_v33, %v963_v30  ;;  %v1045_v39 = vpop.f32.mrb[10].mxu0 }
 0x5aa   :  { %v1048_v40 = vmax.f32 %v3701_v32, 0.0  ;;  %v1046_v41 = vpop.f32.mrb[11].mxu0 }
 0x5ab   :  { %v1049_v42 = vmax.f32 %v3703_v38, 0.0 }
 0x5ac   :  { %3362 = dma.done.wait [#allocation7 + $0x3], 8192 }
 0x5ad   :  { %3363 = vsyncadd [#allocation7 + $0x3], 4294959104  ;;  %1169 = vmatprep.mubr.bf16.mxu1 %v3667_v36  ;;  %v1062_v43 = vld [vmem:[#allocation2 + $0x38] sm:$0xff]  ;;  %v1061_v44 = vld [vmem:[#allocation2 + $0x30] sm:$0xff] }
 0x5ae   :  { %v1064_v45 = vld [vmem:[#allocation2 + $0x78] sm:$0xff]  ;;  %1137 = vmatprep.subr.bf16.mxu1 %v1062_v43  ;;  %v1063_v46 = vld [vmem:[#allocation2 + $0x70] sm:$0xff] }
 0x5af   :  { %1138 = vmatpush1.bf16.msra.mxu1 %v1061_v44  ;;  %v1066_v47 = vld [vmem:[#allocation2 + $0xb8] sm:$0xff]  ;;  %v1065_v49 = vld [vmem:[#allocation2 + $0xb0] sm:$0xff] }
 0x5b0   :  { %1139 = vmatprep.subr.bf16.mxu1 %v1064_v45  ;;  %v1068_v51 = vld [vmem:[#allocation2 + $0xf8] sm:$0xff]  ;;  %v1067_v53 = vld [vmem:[#allocation2 + $0xf0] sm:$0xff] }
 0x5b1   :  { %v1070_v55 = vld [vmem:[#allocation2 + $0x138] sm:$0xff]  ;;  %v1069_v56 = vld [vmem:[#allocation2 + $0x130] sm:$0xff] }
 0x5b2   :  { %v1072_v36 = vld [vmem:[#allocation2 + $0x178] sm:$0xff]  ;;  %v1071_v57 = vld [vmem:[#allocation2 + $0x170] sm:$0xff] }
 0x5b3   :  { %1140 = vmatpush1.bf16.msra.mxu1 %v1063_v46  ;;  %v1074_v58 = vld [vmem:[#allocation2 + $0x1b8] sm:$0xff]  ;;  %v1073_v59 = vld [vmem:[#allocation2 + $0x1b0] sm:$0xff] }
 0x5b4   :  { %1141 = vmatprep.subr.bf16.mxu1 %v1066_v47  ;;  %v1076_v60 = vld [vmem:[#allocation2 + $0x1f8] sm:$0xff]  ;;  %v1075_v61 = vld [vmem:[#allocation2 + $0x1f0] sm:$0xff] }
 0x5b5   :  { %v1078_v62 = vld [vmem:[#allocation2 + $0x238] sm:$0xff]  ;;  %v1077_v63 = vld [vmem:[#allocation2 + $0x230] sm:$0xff] }
 0x5b6   :  { %v1080_v0 = vld [vmem:[#allocation2 + $0x278] sm:$0xff]  ;;  %v1079_v1 = vld [vmem:[#allocation2 + $0x270] sm:$0xff] }
 0x5b7   :  { %1142 = vmatpush1.bf16.msra.mxu1 %v1065_v49  ;;  %v1082_v2 = vld [vmem:[#allocation2 + $0x2b8] sm:$0xff]  ;;  %v1081_v3 = vld [vmem:[#allocation2 + $0x2b0] sm:$0xff] }
 0x5b8   :  { %1143 = vmatprep.subr.bf16.mxu1 %v1068_v51  ;;  %v1084_v4 = vld [vmem:[#allocation2 + $0x2f8] sm:$0xff]  ;;  %v1083_v6 = vld [vmem:[#allocation2 + $0x2f0] sm:$0xff] }
 0x5b9   :  { %v1086_v8 = vld [vmem:[#allocation2 + $0x338] sm:$0xff]  ;;  %v1085_v11 = vld [vmem:[#allocation2 + $0x330] sm:$0xff] }
 0x5ba   :  { %v1088_v14 = vld [vmem:[#allocation2 + $0x378] sm:$0xff]  ;;  %v1087_v15 = vld [vmem:[#allocation2 + $0x370] sm:$0xff] }
 0x5bb   :  { %1144 = vmatpush1.bf16.msra.mxu1 %v1067_v53  ;;  %v1090_v16 = vld [vmem:[#allocation2 + $0x3b8] sm:$0xff]  ;;  %v1089_v17 = vld [vmem:[#allocation2 + $0x3b0] sm:$0xff] }
 0x5bc   :  { %1145 = vmatprep.subr.bf16.mxu1 %v1070_v55  ;;  %v1092_v18 = vld [vmem:[#allocation2 + $0x3f8] sm:$0xff]  ;;  %v1091_v19 = vld [vmem:[#allocation2 + $0x3f0] sm:$0xff] }
 0x5bd   :  { %v1094_v20 = vld [vmem:[#allocation2 + $0x438] sm:$0xff]  ;;  %v1093_v21 = vld [vmem:[#allocation2 + $0x430] sm:$0xff] }
 0x5be   :  { %v1096_v22 = vld [vmem:[#allocation2 + $0x478] sm:$0xff]  ;;  %v1095_v23 = vld [vmem:[#allocation2 + $0x470] sm:$0xff] }
 0x5bf   :  { %1146 = vmatpush1.bf16.msra.mxu1 %v1069_v56  ;;  %v1098_v24 = vld [vmem:[#allocation2 + $0x4b8] sm:$0xff]  ;;  %v1097_v25 = vld [vmem:[#allocation2 + $0x4b0] sm:$0xff] }
 0x5c0   :  { %1147 = vmatprep.subr.bf16.mxu1 %v1072_v36  ;;  %v1100_v26 = vld [vmem:[#allocation2 + $0x4f8] sm:$0xff]  ;;  %v1099_v27 = vld [vmem:[#allocation2 + $0x4f0] sm:$0xff] }
 0x5c1   :  { %v1102_v28 = vld [vmem:[#allocation2 + $0x538] sm:$0xff]  ;;  %v1101_v29 = vld [vmem:[#allocation2 + $0x530] sm:$0xff] }
 0x5c2   :  { %v1104_v30 = vld [vmem:[#allocation2 + $0x578] sm:$0xff]  ;;  %v1107_v39 = vld [vmem:[#allocation2 + $0x5f0] sm:$0xff] }
 0x5c3   :  { %1148 = vmatpush1.bf16.msra.mxu1 %v1071_v57  ;;  %v1106_v31 = vld [vmem:[#allocation2 + $0x5b8] sm:$0xff]  ;;  %v1109_v43 = vld [vmem:[#allocation2 + $0x630] sm:$0xff] }
 0x5c4   :  { %1149 = vmatprep.subr.bf16.mxu1 %v1074_v58  ;;  %v1108_v33 = vld [vmem:[#allocation2 + $0x5f8] sm:$0xff]  ;;  %v1111_v45 = vld [vmem:[#allocation2 + $0x670] sm:$0xff] }
 0x5c5   :  { %v1110_v41 = vld [vmem:[#allocation2 + $0x638] sm:$0xff]  ;;  %v1113_v47 = vld [vmem:[#allocation2 + $0x6b0] sm:$0xff] }
 0x5c6   :  { %v1112_v44 = vld [vmem:[#allocation2 + $0x678] sm:$0xff]  ;;  %v1115_v51 = vld [vmem:[#allocation2 + $0x6f0] sm:$0xff] }
 0x5c7   :  { %1150 = vmatpush1.bf16.msra.mxu1 %v1073_v59  ;;  %v1114_v46 = vld [vmem:[#allocation2 + $0x6b8] sm:$0xff]  ;;  %v1117_v55 = vld [vmem:[#allocation2 + $0x730] sm:$0xff] }
 0x5c8   :  { %1151 = vmatprep.subr.bf16.mxu1 %v1076_v60  ;;  %v1116_v49 = vld [vmem:[#allocation2 + $0x6f8] sm:$0xff]  ;;  %v1119_v36 = vld [vmem:[#allocation2 + $0x770] sm:$0xff] }
 0x5c9   :  { %v1118_v53 = vld [vmem:[#allocation2 + $0x738] sm:$0xff]  ;;  %v1121_v58 = vld [vmem:[#allocation2 + $0x7b0] sm:$0xff] }
 0x5ca   :  { %v1120_v56 = vld [vmem:[#allocation2 + $0x778] sm:$0xff]  ;;  %v1123_v60 = vld [vmem:[#allocation2 + $0x7f0] sm:$0xff] }
 0x5cb   :  { %1152 = vmatpush1.bf16.msra.mxu1 %v1075_v61  ;;  %v1122_v57 = vld [vmem:[#allocation2 + $0x7b8] sm:$0xff]  ;;  %v1125_v61 = vld [vmem:[#allocation16 + $0x6] sm:$0x3] }
 0x5cc   :  { %1153 = vmatprep.subr.bf16.mxu1 %v1078_v62  ;;  %v1124_v59 = vld [vmem:[#allocation2 + $0x7f8] sm:$0xff]  ;;  %v1130_v62 = vrot.slane %v1125_v61, %v3657_v9 }
 0x5cf   :  { %1154 = vmatpush1.bf16.msra.mxu1 %v1077_v63  ;;  %v1134_v63 = vrot.slane %v1125_v61, %v3659_v12 }
 0x5d0   :  { %1155 = vmatprep.subr.bf16.mxu1 %v1080_v0 }
 0x5d3   :  { %1156 = vmatpush1.bf16.msra.mxu1 %v1079_v1 }
 0x5d4   :  { %1157 = vmatprep.subr.bf16.mxu1 %v1082_v2 }
 0x5d7   :  { %1158 = vmatpush1.bf16.msra.mxu1 %v1081_v3 }
 0x5d8   :  { %1159 = vmatprep.subr.bf16.mxu1 %v1084_v4 }
 0x5db   :  { %1160 = vmatpush1.bf16.msra.mxu1 %v1083_v6 }
 0x5dc   :  { %1161 = vmatprep.subr.bf16.mxu1 %v1086_v8 }
 0x5df   :  { %1162 = vmatpush1.bf16.msra.mxu1 %v1085_v11 }
 0x5e0   :  { %1163 = vmatprep.subr.bf16.mxu1 %v1088_v14 }
 0x5e3   :  { %1164 = vmatpush1.bf16.msra.mxu1 %v1087_v15 }
 0x5e4   :  { %1165 = vmatprep.subr.bf16.mxu1 %v1090_v16 }
 0x5e7   :  { %1166 = vmatpush1.bf16.msra.mxu1 %v1089_v17 }
 0x5e8   :  { %1167 = vmatprep.subr.bf16.mxu1 %v1092_v18 }
 0x5eb   :  { %1168 = vmatpush1.bf16.msra.mxu1 %v1091_v19 }
 0x5ec   :  { %1178 = vmatprep.subr.bf16.mxu1 %v1094_v20 }
 0x5ee   :  { %1170 = vmatmul.mubr.bf16.vlgmr.msra.gmra.mrb[8].mxu1 %v3663_v34  ;;  %v1103_v34 = vld [vmem:[#allocation2 + $0x570] sm:$0xff] }
 0x5ef   :  { %1179 = vmatpush1.bf16.msra.mxu1 %v1093_v21  ;;  %1210 = vmatprep.mubr.bf16.mxu1 %v3669_v37  ;;  %v1105_v37 = vld [vmem:[#allocation2 + $0x5b0] sm:$0xff] }
 0x5f0   :  { %1180 = vmatprep.subr.bf16.mxu1 %v1096_v22 }
 0x5f3   :  { %1181 = vmatpush1.bf16.msra.mxu1 %v1095_v23 }
 0x5f4   :  { %1182 = vmatprep.subr.bf16.mxu1 %v1098_v24 }
 0x5f7   :  { %1183 = vmatpush1.bf16.msra.mxu1 %v1097_v25 }
 0x5f8   :  { %1184 = vmatprep.subr.bf16.mxu1 %v1100_v26 }
 0x5fb   :  { %1185 = vmatpush1.bf16.msra.mxu1 %v1099_v27 }
 0x5fc   :  { %1186 = vmatprep.subr.bf16.mxu1 %v1102_v28 }
 0x5ff   :  { %1187 = vmatpush1.bf16.msra.mxu1 %v1101_v29 }
 0x600   :  { %1188 = vmatprep.subr.bf16.mxu1 %v1104_v30 }
 0x603   :  { %1189 = vmatpush1.bf16.msra.mxu1 %v1103_v34 }
 0x604   :  { %1190 = vmatprep.subr.bf16.mxu1 %v1106_v31 }
 0x607   :  { %1191 = vmatpush1.bf16.msra.mxu1 %v1105_v37 }
 0x608   :  { %1192 = vmatprep.subr.bf16.mxu1 %v1108_v33 }
 0x60b   :  { %1193 = vmatpush1.bf16.msra.mxu1 %v1107_v39 }
 0x60c   :  { %1194 = vmatprep.subr.bf16.mxu1 %v1110_v41 }
 0x60f   :  { %1195 = vmatpush1.bf16.msra.mxu1 %v1109_v43 }
 0x610   :  { %1196 = vmatprep.subr.bf16.mxu1 %v1112_v44 }
 0x613   :  { %1197 = vmatpush1.bf16.msra.mxu1 %v1111_v45 }
 0x614   :  { %1198 = vmatprep.subr.bf16.mxu1 %v1114_v46 }
 0x617   :  { %1199 = vmatpush1.bf16.msra.mxu1 %v1113_v47 }
 0x618   :  { %1200 = vmatprep.subr.bf16.mxu1 %v1116_v49 }
 0x61b   :  { %1201 = vmatpush1.bf16.msra.mxu1 %v1115_v51 }
 0x61c   :  { %1202 = vmatprep.subr.bf16.mxu1 %v1118_v53 }
 0x61f   :  { %1203 = vmatpush1.bf16.msra.mxu1 %v1117_v55 }
 0x620   :  { %1204 = vmatprep.subr.bf16.mxu1 %v1120_v56 }
 0x623   :  { %1205 = vmatpush1.bf16.msra.mxu1 %v1119_v36 }
 0x624   :  { %1206 = vmatprep.subr.bf16.mxu1 %v1122_v57 }
 0x627   :  { %1207 = vmatpush1.bf16.msra.mxu1 %v1121_v58 }
 0x628   :  { %1208 = vmatprep.subr.bf16.mxu1 %v1124_v59 }
 0x62b   :  { %1209 = vmatpush1.bf16.msra.mxu1 %v1123_v60 }
 0x62e   :  { %1211 = vmatmul.mubr.bf16.vlgmr.msra.gmra.mrb[8].mxu1 %v3665_v35 }
 0x701   :  { %v1212_v0 = vpop.f32.mrb[8].mxu1 }
 0x702   :  { %v3713_v1 = vadd.f32 %v1212_v0, %v1130_v62  ;;  %v1214_v2 = vpop.f32.mrb[9].mxu1 }
 0x703   :  { %v3715_v3 = vadd.f32 %v1214_v2, %v1134_v63  ;;  %v1216_v4 = vpop.f32.mrb[10].mxu1 }
 0x704   :  { %v1219_v6 = vmax.f32 %v3713_v1, 0.0  ;;  %v1217_v8 = vpop.f32.mrb[11].mxu1 }
 0x705   :  { %v1220_v11 = vmax.f32 %v3715_v3, 0.0 }
 0x706   :  { %3364 = dma.done.wait [#allocation8], 16384 }
 0x707   :  { %3365 = vsyncadd [#allocation8], 4294950912  ;;  %v3722_v35 = vpack.c.bf16 %v707_v54, %v707_v54  ;;  %v1239_v14 = vld [vmem:[#allocation3 + $0x8] sm:$0xff]  ;;  %v1238_v15 = vld [vmem:[#allocation3] sm:$0xff]  ;;  %v3728_v55 = vpack.c.bf16 %v706_v52, %v706_v52  ;;  %v3733_v56 = vpack.c.bf16 %v878_v13, %v878_v13 }
 0x708   :  { %v1241_v16 = vld [vmem:[#allocation3 + $0x48] sm:$0xff]  ;;  %1406 = vmatprep.subr.bf16.mxu0 %v1239_v14  ;;  %v1240_v17 = vld [vmem:[#allocation3 + $0x40] sm:$0xff] }
 0x709   :  { %1438 = vmatprep.mubr.bf16.mxu0 %v3722_v35  ;;  %1407 = vmatpush1.bf16.msra.mxu0 %v1238_v15  ;;  %v1243_v18 = vld [vmem:[#allocation3 + $0x88] sm:$0xff]  ;;  %v1242_v19 = vld [vmem:[#allocation3 + $0x80] sm:$0xff] }
 0x70a   :  { %1408 = vmatprep.subr.bf16.mxu0 %v1241_v16  ;;  %v1245_v20 = vld [vmem:[#allocation3 + $0xc8] sm:$0xff]  ;;  %v1244_v50 = vld [vmem:[#allocation3 + $0xc0] sm:$0xff] }
 0x70b   :  { %v1247_v21 = vld [vmem:[#allocation3 + $0x108] sm:$0xff]  ;;  %v1246_v54 = vld [vmem:[#allocation3 + $0x100] sm:$0xff] }
 0x70c   :  { %v1249_v22 = vld [vmem:[#allocation3 + $0x148] sm:$0xff]  ;;  %v1248_v23 = vld [vmem:[#allocation3 + $0x140] sm:$0xff] }
 0x70d   :  { %1409 = vmatpush1.bf16.msra.mxu0 %v1240_v17  ;;  %v1251_v24 = vld [vmem:[#allocation3 + $0x188] sm:$0xff]  ;;  %v1250_v25 = vld [vmem:[#allocation3 + $0x180] sm:$0xff] }
 0x70e   :  { %1410 = vmatprep.subr.bf16.mxu0 %v1243_v18  ;;  %v1253_v26 = vld [vmem:[#allocation3 + $0x1c8] sm:$0xff]  ;;  %v1252_v27 = vld [vmem:[#allocation3 + $0x1c0] sm:$0xff] }
 0x70f   :  { %v1255_v28 = vld [vmem:[#allocation3 + $0x208] sm:$0xff]  ;;  %v1254_v29 = vld [vmem:[#allocation3 + $0x200] sm:$0xff] }
 0x710   :  { %v1257_v30 = vld [vmem:[#allocation3 + $0x248] sm:$0xff]  ;;  %v1256_v34 = vld [vmem:[#allocation3 + $0x240] sm:$0xff] }
 0x711   :  { %1411 = vmatpush1.bf16.msra.mxu0 %v1242_v19  ;;  %v1259_v31 = vld [vmem:[#allocation3 + $0x288] sm:$0xff]  ;;  %v1258_v37 = vld [vmem:[#allocation3 + $0x280] sm:$0xff] }
 0x712   :  { %1412 = vmatprep.subr.bf16.mxu0 %v1245_v20  ;;  %v1261_v33 = vld [vmem:[#allocation3 + $0x2c8] sm:$0xff]  ;;  %v1260_v39 = vld [vmem:[#allocation3 + $0x2c0] sm:$0xff] }
 0x713   :  { %v1263_v41 = vld [vmem:[#allocation3 + $0x308] sm:$0xff]  ;;  %v1262_v43 = vld [vmem:[#allocation3 + $0x300] sm:$0xff] }
 0x714   :  { %v1265_v44 = vld [vmem:[#allocation3 + $0x348] sm:$0xff]  ;;  %v1264_v45 = vld [vmem:[#allocation3 + $0x340] sm:$0xff] }
 0x715   :  { %1413 = vmatpush1.bf16.msra.mxu0 %v1244_v50  ;;  %v1267_v46 = vld [vmem:[#allocation3 + $0x388] sm:$0xff]  ;;  %v1266_v47 = vld [vmem:[#allocation3 + $0x380] sm:$0xff] }
 0x716   :  { %1414 = vmatprep.subr.bf16.mxu0 %v1247_v21  ;;  %v1269_v49 = vld [vmem:[#allocation3 + $0x3c8] sm:$0xff]  ;;  %v1268_v51 = vld [vmem:[#allocation3 + $0x3c0] sm:$0xff] }
 0x717   :  { %v1271_v53 = vld [vmem:[#allocation3 + $0x408] sm:$0xff]  ;;  %v1270_v36 = vld [vmem:[#allocation3 + $0x400] sm:$0xff] }
 0x718   :  { %v1273_v57 = vld [vmem:[#allocation3 + $0x448] sm:$0xff]  ;;  %v1272_v58 = vld [vmem:[#allocation3 + $0x440] sm:$0xff] }
 0x719   :  { %1415 = vmatpush1.bf16.msra.mxu0 %v1246_v54  ;;  %v1275_v48 = vld [vmem:[#allocation3 + $0x488] sm:$0xff]  ;;  %v1274_v52 = vld [vmem:[#allocation3 + $0x480] sm:$0xff] }
 0x71a   :  { %1416 = vmatprep.subr.bf16.mxu0 %v1249_v22  ;;  %v1277_v59 = vld [vmem:[#allocation3 + $0x4c8] sm:$0xff]  ;;  %v1276_v7 = vld [vmem:[#allocation3 + $0x4c0] sm:$0xff] }
 0x71b   :  { %v1279_v13 = vld [vmem:[#allocation3 + $0x508] sm:$0xff]  ;;  %v1278_v60 = vld [vmem:[#allocation3 + $0x500] sm:$0xff] }
 0x71c   :  { %v1281_v61 = vld [vmem:[#allocation3 + $0x548] sm:$0xff]  ;;  %v1280_v62 = vld [vmem:[#allocation3 + $0x540] sm:$0xff] }
 0x71d   :  { %1417 = vmatpush1.bf16.msra.mxu0 %v1248_v23  ;;  %v1283_v63 = vld [vmem:[#allocation3 + $0x588] sm:$0xff]  ;;  %v1282_v0 = vld [vmem:[#allocation3 + $0x580] sm:$0xff] }
 0x71e   :  { %1418 = vmatprep.subr.bf16.mxu0 %v1251_v24  ;;  %v1285_v2 = vld [vmem:[#allocation3 + $0x5c8] sm:$0xff]  ;;  %v1284_v4 = vld [vmem:[#allocation3 + $0x5c0] sm:$0xff] }
 0x71f   :  { %v1287_v8 = vld [vmem:[#allocation3 + $0x608] sm:$0xff]  ;;  %v1286_v14 = vld [vmem:[#allocation3 + $0x600] sm:$0xff] }
 0x720   :  { %v1289_v15 = vld [vmem:[#allocation3 + $0x648] sm:$0xff]  ;;  %v1288_v16 = vld [vmem:[#allocation3 + $0x640] sm:$0xff] }
 0x721   :  { %1419 = vmatpush1.bf16.msra.mxu0 %v1250_v25  ;;  %v1291_v17 = vld [vmem:[#allocation3 + $0x688] sm:$0xff]  ;;  %v1290_v18 = vld [vmem:[#allocation3 + $0x680] sm:$0xff] }
 0x722   :  { %1420 = vmatprep.subr.bf16.mxu0 %v1253_v26  ;;  %v1293_v19 = vld [vmem:[#allocation3 + $0x6c8] sm:$0xff]  ;;  %v1292_v20 = vld [vmem:[#allocation3 + $0x6c0] sm:$0xff] }
 0x723   :  { %v1295_v50 = vld [vmem:[#allocation3 + $0x708] sm:$0xff]  ;;  %v1294_v21 = vld [vmem:[#allocation3 + $0x700] sm:$0xff] }
 0x724   :  { %v1297_v54 = vld [vmem:[#allocation3 + $0x748] sm:$0xff]  ;;  %v1296_v22 = vld [vmem:[#allocation3 + $0x740] sm:$0xff] }
 0x725   :  { %1421 = vmatpush1.bf16.msra.mxu0 %v1252_v27  ;;  %v1299_v23 = vld [vmem:[#allocation3 + $0x788] sm:$0xff]  ;;  %v1298_v24 = vld [vmem:[#allocation3 + $0x780] sm:$0xff] }
 0x726   :  { %1422 = vmatprep.subr.bf16.mxu0 %v1255_v28  ;;  %v1301_v25 = vld [vmem:[#allocation3 + $0x7c8] sm:$0xff]  ;;  %v1300_v26 = vld [vmem:[#allocation3 + $0x7c0] sm:$0xff]  ;;  %v3740_v28 = vpack.c.bf16 %v877_v10, %v877_v10 }
 0x727   :  { %v1303_v27 = vld [vmem:[#allocation3 + $0x808] sm:$0xff]  ;;  %v1306_v10 = vld [vmem:[#allocation3 + $0x880] sm:$0xff] }
 0x728   :  { %v1307_v5 = vld [vmem:[#allocation3 + $0x888] sm:$0xff]  ;;  %v1308_v38 = vld [vmem:[#allocation3 + $0x8c0] sm:$0xff] }
 0x729   :  { %1423 = vmatpush1.bf16.msra.mxu0 %v1254_v29  ;;  %v3745_v29 = vpack.c.bf16 %v1049_v42, %v1049_v42  ;;  %v1311_v42 = vld [vmem:[#allocation3 + $0x908] sm:$0xff]  ;;  %v1340_v3 = vld [vmem:[#allocation3 + $0xcc0] sm:$0xff] }
 0x72a   :  { %1424 = vmatprep.subr.bf16.mxu0 %v1257_v30  ;;  %v1302_v30 = vld [vmem:[#allocation3 + $0x800] sm:$0xff]  ;;  %v1339_v32 = vld [vmem:[#allocation3 + $0xc88] sm:$0xff] }
 0x72d   :  { %1425 = vmatpush1.bf16.msra.mxu0 %v1256_v34  ;;  %v1305_v34 = vld [vmem:[#allocation3 + $0x848] sm:$0xff] }
 0x72e   :  { %1426 = vmatprep.subr.bf16.mxu0 %v1259_v31  ;;  %v1304_v31 = vld [vmem:[#allocation3 + $0x840] sm:$0xff] }
 0x731   :  { %1427 = vmatpush1.bf16.msra.mxu0 %v1258_v37  ;;  %v1309_v37 = vld [vmem:[#allocation3 + $0x8c8] sm:$0xff] }
 0x732   :  { %1428 = vmatprep.subr.bf16.mxu0 %v1261_v33  ;;  %v1310_v33 = vld [vmem:[#allocation3 + $0x900] sm:$0xff] }
 0x735   :  { %1429 = vmatpush1.bf16.msra.mxu0 %v1260_v39  ;;  %v1313_v39 = vld [vmem:[#allocation3 + $0x948] sm:$0xff] }
 0x736   :  { %1430 = vmatprep.subr.bf16.mxu0 %v1263_v41  ;;  %v1312_v41 = vld [vmem:[#allocation3 + $0x940] sm:$0xff] }
 0x739   :  { %1431 = vmatpush1.bf16.msra.mxu0 %v1262_v43  ;;  %v1315_v43 = vld [vmem:[#allocation3 + $0x988] sm:$0xff] }
 0x73a   :  { %1432 = vmatprep.subr.bf16.mxu0 %v1265_v44  ;;  %v1314_v44 = vld [vmem:[#allocation3 + $0x980] sm:$0xff] }
 0x73d   :  { %1433 = vmatpush1.bf16.msra.mxu0 %v1264_v45  ;;  %v1317_v45 = vld [vmem:[#allocation3 + $0x9c8] sm:$0xff] }
 0x73e   :  { %1434 = vmatprep.subr.bf16.mxu0 %v1267_v46  ;;  %v1316_v46 = vld [vmem:[#allocation3 + $0x9c0] sm:$0xff] }
 0x741   :  { %1435 = vmatpush1.bf16.msra.mxu0 %v1266_v47  ;;  %v1319_v47 = vld [vmem:[#allocation3 + $0xa08] sm:$0xff] }
 0x742   :  { %1436 = vmatprep.subr.bf16.mxu0 %v1269_v49  ;;  %v1318_v49 = vld [vmem:[#allocation3 + $0xa00] sm:$0xff] }
 0x745   :  { %1437 = vmatpush1.bf16.msra.mxu0 %v1268_v51  ;;  %v1321_v51 = vld [vmem:[#allocation3 + $0xa48] sm:$0xff] }
 0x746   :  { %1447 = vmatprep.subr.bf16.mxu0 %v1271_v53  ;;  %v1320_v53 = vld [vmem:[#allocation3 + $0xa40] sm:$0xff] }
 0x748   :  { %1439 = vmatmul.mubr.bf16.vlgmr.msra.gmra.mrb[12].mxu0 %v3728_v55 }
 0x749   :  { %1448 = vmatpush1.bf16.msra.mxu0 %v1270_v36  ;;  %1479 = vmatprep.mubr.bf16.mxu0 %v3733_v56  ;;  %v1323_v36 = vld [vmem:[#allocation3 + $0xa88] sm:$0xff] }
 0x74a   :  { %1449 = vmatprep.subr.bf16.mxu0 %v1273_v57  ;;  %v1322_v57 = vld [vmem:[#allocation3 + $0xa80] sm:$0xff] }
 0x74d   :  { %1450 = vmatpush1.bf16.msra.mxu0 %v1272_v58  ;;  %v1325_v58 = vld [vmem:[#allocation3 + $0xac8] sm:$0xff] }
 0x74e   :  { %1451 = vmatprep.subr.bf16.mxu0 %v1275_v48  ;;  %v1324_v48 = vld [vmem:[#allocation3 + $0xac0] sm:$0xff] }
 0x751   :  { %1452 = vmatpush1.bf16.msra.mxu0 %v1274_v52  ;;  %v1327_v52 = vld [vmem:[#allocation3 + $0xb08] sm:$0xff] }
 0x752   :  { %1453 = vmatprep.subr.bf16.mxu0 %v1277_v59  ;;  %v1326_v59 = vld [vmem:[#allocation3 + $0xb00] sm:$0xff] }
 0x755   :  { %1454 = vmatpush1.bf16.msra.mxu0 %v1276_v7  ;;  %v1329_v7 = vld [vmem:[#allocation3 + $0xb48] sm:$0xff] }
 0x756   :  { %1455 = vmatprep.subr.bf16.mxu0 %v1279_v13  ;;  %v1328_v13 = vld [vmem:[#allocation3 + $0xb40] sm:$0xff] }
 0x759   :  { %1456 = vmatpush1.bf16.msra.mxu0 %v1278_v60  ;;  %v1331_v60 = vld [vmem:[#allocation3 + $0xb88] sm:$0xff] }
 0x75a   :  { %1457 = vmatprep.subr.bf16.mxu0 %v1281_v61  ;;  %v1330_v61 = vld [vmem:[#allocation3 + $0xb80] sm:$0xff] }
 0x75d   :  { %1458 = vmatpush1.bf16.msra.mxu0 %v1280_v62  ;;  %v1333_v62 = vld [vmem:[#allocation3 + $0xbc8] sm:$0xff] }
 0x75e   :  { %1459 = vmatprep.subr.bf16.mxu0 %v1283_v63  ;;  %v1332_v63 = vld [vmem:[#allocation3 + $0xbc0] sm:$0xff] }
 0x761   :  { %1460 = vmatpush1.bf16.msra.mxu0 %v1282_v0  ;;  %v1335_v0 = vld [vmem:[#allocation3 + $0xc08] sm:$0xff] }
 0x762   :  { %1461 = vmatprep.subr.bf16.mxu0 %v1285_v2  ;;  %v3752_v2 = vpack.c.bf16 %v1048_v40, %v1048_v40  ;;  %v1338_v40 = vld [vmem:[#allocation3 + $0xc80] sm:$0xff] }
 0x765   :  { %1462 = vmatpush1.bf16.msra.mxu0 %v1284_v4  ;;  %v3757_v4 = vpack.c.bf16 %v1220_v11, %v1220_v11  ;;  %v1343_v11 = vld [vmem:[#allocation3 + $0xd08] sm:$0xff] }
 0x766   :  { %1463 = vmatprep.subr.bf16.mxu0 %v1287_v8  ;;  %v1334_v8 = vld [vmem:[#allocation3 + $0xc00] sm:$0xff] }
 0x769   :  { %1464 = vmatpush1.bf16.msra.mxu0 %v1286_v14  ;;  %v1337_v14 = vld [vmem:[#allocation3 + $0xc48] sm:$0xff] }
 0x76a   :  { %1465 = vmatprep.subr.bf16.mxu0 %v1289_v15  ;;  %v1336_v15 = vld [vmem:[#allocation3 + $0xc40] sm:$0xff] }
 0x76d   :  { %1466 = vmatpush1.bf16.msra.mxu0 %v1288_v16  ;;  %v1341_v16 = vld [vmem:[#allocation3 + $0xcc8] sm:$0xff] }
 0x76e   :  { %1467 = vmatprep.subr.bf16.mxu0 %v1291_v17  ;;  %v1342_v17 = vld [vmem:[#allocation3 + $0xd00] sm:$0xff] }
 0x771   :  { %1468 = vmatpush1.bf16.msra.mxu0 %v1290_v18  ;;  %v1345_v18 = vld [vmem:[#allocation3 + $0xd48] sm:$0xff] }
 0x772   :  { %1469 = vmatprep.subr.bf16.mxu0 %v1293_v19  ;;  %v1344_v19 = vld [vmem:[#allocation3 + $0xd40] sm:$0xff] }
 0x775   :  { %1470 = vmatpush1.bf16.msra.mxu0 %v1292_v20  ;;  %v1347_v20 = vld [vmem:[#allocation3 + $0xd88] sm:$0xff] }
 0x776   :  { %1471 = vmatprep.subr.bf16.mxu0 %v1295_v50  ;;  %v1346_v50 = vld [vmem:[#allocation3 + $0xd80] sm:$0xff] }
 0x779   :  { %1472 = vmatpush1.bf16.msra.mxu0 %v1294_v21  ;;  %v1349_v21 = vld [vmem:[#allocation3 + $0xdc8] sm:$0xff] }
 0x77a   :  { %1473 = vmatprep.subr.bf16.mxu0 %v1297_v54  ;;  %v1348_v54 = vld [vmem:[#allocation3 + $0xdc0] sm:$0xff] }
 0x77d   :  { %1474 = vmatpush1.bf16.msra.mxu0 %v1296_v22  ;;  %v1351_v22 = vld [vmem:[#allocation3 + $0xe08] sm:$0xff] }
 0x77e   :  { %1475 = vmatprep.subr.bf16.mxu0 %v1299_v23  ;;  %v1350_v23 = vld [vmem:[#allocation3 + $0xe00] sm:$0xff] }
 0x781   :  { %1476 = vmatpush1.bf16.msra.mxu0 %v1298_v24  ;;  %v1353_v24 = vld [vmem:[#allocation3 + $0xe48] sm:$0xff] }
 0x782   :  { %1477 = vmatprep.subr.bf16.mxu0 %v1301_v25  ;;  %v1352_v25 = vld [vmem:[#allocation3 + $0xe40] sm:$0xff] }
 0x785   :  { %1478 = vmatpush1.bf16.msra.mxu0 %v1300_v26  ;;  %v1355_v26 = vld [vmem:[#allocation3 + $0xe88] sm:$0xff] }
 0x786   :  { %1488 = vmatprep.subr.bf16.mxu0 %v1303_v27  ;;  %v1354_v27 = vld [vmem:[#allocation3 + $0xe80] sm:$0xff] }
 0x788   :  { %1480 = vmatmul.mubr.bf16.vlgmr.msra.gmra.mrb[12].mxu0 %v3740_v28 }
 0x789   :  { %1489 = vmatpush1.bf16.msra.mxu0 %v1302_v30  ;;  %1520 = vmatprep.mubr.bf16.mxu0 %v3745_v29  ;;  %v1357_v30 = vld [vmem:[#allocation3 + $0xec8] sm:$0xff] }
 0x78a   :  { %1490 = vmatprep.subr.bf16.mxu0 %v1305_v34  ;;  %v1356_v34 = vld [vmem:[#allocation3 + $0xec0] sm:$0xff] }
 0x78d   :  { %1491 = vmatpush1.bf16.msra.mxu0 %v1304_v31  ;;  %v1359_v31 = vld [vmem:[#allocation3 + $0xf08] sm:$0xff] }
 0x78e   :  { %1492 = vmatprep.subr.bf16.mxu0 %v1307_v5  ;;  %v1358_v5 = vld [vmem:[#allocation3 + $0xf00] sm:$0xff] }
 0x791   :  { %1493 = vmatpush1.bf16.msra.mxu0 %v1306_v10  ;;  %v1361_v10 = vld [vmem:[#allocation3 + $0xf48] sm:$0xff] }
 0x792   :  { %1494 = vmatprep.subr.bf16.mxu0 %v1309_v37  ;;  %v1360_v37 = vld [vmem:[#allocation3 + $0xf40] sm:$0xff] }
 0x795   :  { %1495 = vmatpush1.bf16.msra.mxu0 %v1308_v38  ;;  %v1363_v38 = vld [vmem:[#allocation3 + $0xf88] sm:$0xff] }
 0x796   :  { %1496 = vmatprep.subr.bf16.mxu0 %v1311_v42  ;;  %v1362_v42 = vld [vmem:[#allocation3 + $0xf80] sm:$0xff] }
 0x799   :  { %1497 = vmatpush1.bf16.msra.mxu0 %v1310_v33  ;;  %v1365_v33 = vld [vmem:[#allocation3 + $0xfc8] sm:$0xff] }
 0x79a   :  { %1498 = vmatprep.subr.bf16.mxu0 %v1313_v39  ;;  %v1364_v39 = vld [vmem:[#allocation3 + $0xfc0] sm:$0xff] }
 0x79d   :  { %1499 = vmatpush1.bf16.msra.mxu0 %v1312_v41  ;;  %v3764_v41 = vpack.c.bf16 %v1219_v6, %v1219_v6 }
 0x79e   :  { %1500 = vmatprep.subr.bf16.mxu0 %v1315_v43  ;;  %v1366_v43 = vld [vmem:[#allocation18] sm:$0x3] }
 0x7a1   :  { %1501 = vmatpush1.bf16.msra.mxu0 %v1314_v44  ;;  %v1371_v44 = vrot.slane %v1366_v43, %v3657_v9 }
 0x7a2   :  { %1502 = vmatprep.subr.bf16.mxu0 %v1317_v45  ;;  %v1375_v45 = vrot.slane %v1366_v43, %v3659_v12 }
 0x7a5   :  { %1503 = vmatpush1.bf16.msra.mxu0 %v1316_v46 }
 0x7a6   :  { %1504 = vmatprep.subr.bf16.mxu0 %v1319_v47 }
 0x7a9   :  { %1505 = vmatpush1.bf16.msra.mxu0 %v1318_v49 }
 0x7aa   :  { %1506 = vmatprep.subr.bf16.mxu0 %v1321_v51 }
 0x7ad   :  { %1507 = vmatpush1.bf16.msra.mxu0 %v1320_v53 }
 0x7ae   :  { %1508 = vmatprep.subr.bf16.mxu0 %v1323_v36 }
 0x7b1   :  { %1509 = vmatpush1.bf16.msra.mxu0 %v1322_v57 }
 0x7b2   :  { %1510 = vmatprep.subr.bf16.mxu0 %v1325_v58 }
 0x7b5   :  { %1511 = vmatpush1.bf16.msra.mxu0 %v1324_v48 }
 0x7b6   :  { %1512 = vmatprep.subr.bf16.mxu0 %v1327_v52 }
 0x7b9   :  { %1513 = vmatpush1.bf16.msra.mxu0 %v1326_v59 }
 0x7ba   :  { %1514 = vmatprep.subr.bf16.mxu0 %v1329_v7 }
 0x7bd   :  { %1515 = vmatpush1.bf16.msra.mxu0 %v1328_v13 }
 0x7be   :  { %1516 = vmatprep.subr.bf16.mxu0 %v1331_v60 }
 0x7c1   :  { %1517 = vmatpush1.bf16.msra.mxu0 %v1330_v61 }
 0x7c2   :  { %1518 = vmatprep.subr.bf16.mxu0 %v1333_v62 }
 0x7c5   :  { %1519 = vmatpush1.bf16.msra.mxu0 %v1332_v63 }
 0x7c6   :  { %1529 = vmatprep.subr.bf16.mxu0 %v1335_v0 }
 0x7c8   :  { %1521 = vmatmul.mubr.bf16.vlgmr.msra.gmra.mrb[12].mxu0 %v3752_v2 }
 0x7c9   :  { %1530 = vmatpush1.bf16.msra.mxu0 %v1334_v8  ;;  %1561 = vmatprep.mubr.bf16.mxu0 %v3757_v4 }
 0x7ca   :  { %1531 = vmatprep.subr.bf16.mxu0 %v1337_v14 }
 0x7cd   :  { %1532 = vmatpush1.bf16.msra.mxu0 %v1336_v15 }
 0x7ce   :  { %1533 = vmatprep.subr.bf16.mxu0 %v1339_v32 }
 0x7d1   :  { %1534 = vmatpush1.bf16.msra.mxu0 %v1338_v40 }
 0x7d2   :  { %1535 = vmatprep.subr.bf16.mxu0 %v1341_v16 }
 0x7d5   :  { %1536 = vmatpush1.bf16.msra.mxu0 %v1340_v3 }
 0x7d6   :  { %1537 = vmatprep.subr.bf16.mxu0 %v1343_v11 }
 0x7d9   :  { %1538 = vmatpush1.bf16.msra.mxu0 %v1342_v17 }
 0x7da   :  { %1539 = vmatprep.subr.bf16.mxu0 %v1345_v18 }
 0x7dd   :  { %1540 = vmatpush1.bf16.msra.mxu0 %v1344_v19 }
 0x7de   :  { %1541 = vmatprep.subr.bf16.mxu0 %v1347_v20 }
 0x7e1   :  { %1542 = vmatpush1.bf16.msra.mxu0 %v1346_v50 }
 0x7e2   :  { %1543 = vmatprep.subr.bf16.mxu0 %v1349_v21 }
 0x7e5   :  { %1544 = vmatpush1.bf16.msra.mxu0 %v1348_v54 }
 0x7e6   :  { %1545 = vmatprep.subr.bf16.mxu0 %v1351_v22 }
 0x7e9   :  { %1546 = vmatpush1.bf16.msra.mxu0 %v1350_v23 }
 0x7ea   :  { %1547 = vmatprep.subr.bf16.mxu0 %v1353_v24 }
 0x7ed   :  { %1548 = vmatpush1.bf16.msra.mxu0 %v1352_v25 }
 0x7ee   :  { %1549 = vmatprep.subr.bf16.mxu0 %v1355_v26 }
 0x7f1   :  { %1550 = vmatpush1.bf16.msra.mxu0 %v1354_v27 }
 0x7f2   :  { %1551 = vmatprep.subr.bf16.mxu0 %v1357_v30 }
 0x7f5   :  { %1552 = vmatpush1.bf16.msra.mxu0 %v1356_v34 }
 0x7f6   :  { %1553 = vmatprep.subr.bf16.mxu0 %v1359_v31 }
 0x7f9   :  { %1554 = vmatpush1.bf16.msra.mxu0 %v1358_v5 }
 0x7fa   :  { %1555 = vmatprep.subr.bf16.mxu0 %v1361_v10 }
 0x7fd   :  { %1556 = vmatpush1.bf16.msra.mxu0 %v1360_v37 }
 0x7fe   :  { %1557 = vmatprep.subr.bf16.mxu0 %v1363_v38 }
 0x801   :  { %1558 = vmatpush1.bf16.msra.mxu0 %v1362_v42 }
 0x802   :  { %1559 = vmatprep.subr.bf16.mxu0 %v1365_v33 }
 0x805   :  { %1560 = vmatpush1.bf16.msra.mxu0 %v1364_v39 }
 0x808   :  { %1562 = vmatmul.mubr.bf16.vlgmr.msra.gmra.mrb[12].mxu0 %v3764_v41 }
 0x8db   :  { %v1563_v46 = vpop.f32.mrb[12].mxu0 }
 0x8dc   :  { %v3769_v47 = vadd.f32 %v1563_v46, %v1371_v44  ;;  %v1565_v49 = vpop.f32.mrb[13].mxu0 }
 0x8dd   :  { %v3771_v51 = vadd.f32 %v1565_v49, %v1375_v45  ;;  %v1567_v53 = vpop.f32.mrb[14].mxu0 }
 0x8de   :  { %v1570_v1 = vmax.f32 %v3769_v47, 0.0  ;;  %v1568_v36 = vpop.f32.mrb[15].mxu0 }
 0x8df   :  { %v1571_v6 = vmax.f32 %v3771_v51, 0.0 }
 0x8e0   :  { %3366 = dma.done.wait [#allocation8 + $0x1], 16384 }
 0x8e1   :  { %3367 = vsyncadd [#allocation8 + $0x1], 4294950912  ;;  %1755 = vmatprep.mubr.bf16.mxu1 %v3722_v35  ;;  %v1584_v57 = vld [vmem:[#allocation3 + $0x18] sm:$0xff]  ;;  %v1583_v58 = vld [vmem:[#allocation3 + $0x10] sm:$0xff] }
 0x8e2   :  { %v1586_v48 = vld [vmem:[#allocation3 + $0x58] sm:$0xff]  ;;  %1723 = vmatprep.subr.bf16.mxu1 %v1584_v57  ;;  %v1585_v52 = vld [vmem:[#allocation3 + $0x50] sm:$0xff] }
 0x8e3   :  { %1724 = vmatpush1.bf16.msra.mxu1 %v1583_v58  ;;  %v1588_v59 = vld [vmem:[#allocation3 + $0x98] sm:$0xff]  ;;  %v1587_v7 = vld [vmem:[#allocation3 + $0x90] sm:$0xff] }
 0x8e4   :  { %1725 = vmatprep.subr.bf16.mxu1 %v1586_v48  ;;  %v1590_v13 = vld [vmem:[#allocation3 + $0xd8] sm:$0xff]  ;;  %v1589_v60 = vld [vmem:[#allocation3 + $0xd0] sm:$0xff] }
 0x8e5   :  { %v1592_v61 = vld [vmem:[#allocation3 + $0x118] sm:$0xff]  ;;  %v1591_v62 = vld [vmem:[#allocation3 + $0x110] sm:$0xff] }
 0x8e6   :  { %v1594_v63 = vld [vmem:[#allocation3 + $0x158] sm:$0xff]  ;;  %v1593_v0 = vld [vmem:[#allocation3 + $0x150] sm:$0xff] }
 0x8e7   :  { %1726 = vmatpush1.bf16.msra.mxu1 %v1585_v52  ;;  %v1596_v8 = vld [vmem:[#allocation3 + $0x198] sm:$0xff]  ;;  %v1595_v14 = vld [vmem:[#allocation3 + $0x190] sm:$0xff] }
 0x8e8   :  { %1727 = vmatprep.subr.bf16.mxu1 %v1588_v59  ;;  %v1598_v15 = vld [vmem:[#allocation3 + $0x1d8] sm:$0xff]  ;;  %v1597_v32 = vld [vmem:[#allocation3 + $0x1d0] sm:$0xff] }
 0x8e9   :  { %v1600_v40 = vld [vmem:[#allocation3 + $0x218] sm:$0xff]  ;;  %v1599_v16 = vld [vmem:[#allocation3 + $0x210] sm:$0xff] }
 0x8ea   :  { %v1602_v3 = vld [vmem:[#allocation3 + $0x258] sm:$0xff]  ;;  %v1601_v11 = vld [vmem:[#allocation3 + $0x250] sm:$0xff] }
 0x8eb   :  { %1728 = vmatpush1.bf16.msra.mxu1 %v1587_v7  ;;  %v1604_v17 = vld [vmem:[#allocation3 + $0x298] sm:$0xff]  ;;  %v1603_v18 = vld [vmem:[#allocation3 + $0x290] sm:$0xff] }
 0x8ec   :  { %1729 = vmatprep.subr.bf16.mxu1 %v1590_v13  ;;  %v1606_v19 = vld [vmem:[#allocation3 + $0x2d8] sm:$0xff]  ;;  %v1605_v20 = vld [vmem:[#allocation3 + $0x2d0] sm:$0xff] }
 0x8ed   :  { %v1608_v50 = vld [vmem:[#allocation3 + $0x318] sm:$0xff]  ;;  %v1607_v21 = vld [vmem:[#allocation3 + $0x310] sm:$0xff] }
 0x8ee   :  { %v1610_v54 = vld [vmem:[#allocation3 + $0x358] sm:$0xff]  ;;  %v1609_v22 = vld [vmem:[#allocation3 + $0x350] sm:$0xff] }
 0x8ef   :  { %1730 = vmatpush1.bf16.msra.mxu1 %v1589_v60  ;;  %v1612_v23 = vld [vmem:[#allocation3 + $0x398] sm:$0xff]  ;;  %v1611_v24 = vld [vmem:[#allocation3 + $0x390] sm:$0xff] }
 0x8f0   :  { %1731 = vmatprep.subr.bf16.mxu1 %v1592_v61  ;;  %v1614_v25 = vld [vmem:[#allocation3 + $0x3d8] sm:$0xff]  ;;  %v1613_v26 = vld [vmem:[#allocation3 + $0x3d0] sm:$0xff] }
 0x8f1   :  { %v1616_v27 = vld [vmem:[#allocation3 + $0x418] sm:$0xff]  ;;  %v1615_v30 = vld [vmem:[#allocation3 + $0x410] sm:$0xff] }
 0x8f2   :  { %v1618_v34 = vld [vmem:[#allocation3 + $0x458] sm:$0xff]  ;;  %v1617_v31 = vld [vmem:[#allocation3 + $0x450] sm:$0xff] }
 0x8f3   :  { %1732 = vmatpush1.bf16.msra.mxu1 %v1591_v62  ;;  %v1620_v5 = vld [vmem:[#allocation3 + $0x498] sm:$0xff]  ;;  %v1619_v10 = vld [vmem:[#allocation3 + $0x490] sm:$0xff] }
 0x8f4   :  { %1733 = vmatprep.subr.bf16.mxu1 %v1594_v63  ;;  %v1622_v37 = vld [vmem:[#allocation3 + $0x4d8] sm:$0xff]  ;;  %v1621_v38 = vld [vmem:[#allocation3 + $0x4d0] sm:$0xff] }
 0x8f5   :  { %v1624_v42 = vld [vmem:[#allocation3 + $0x518] sm:$0xff]  ;;  %v1623_v33 = vld [vmem:[#allocation3 + $0x510] sm:$0xff] }
 0x8f6   :  { %v1626_v39 = vld [vmem:[#allocation3 + $0x558] sm:$0xff]  ;;  %v1625_v43 = vld [vmem:[#allocation3 + $0x550] sm:$0xff] }
 0x8f7   :  { %1734 = vmatpush1.bf16.msra.mxu1 %v1593_v0  ;;  %v1628_v44 = vld [vmem:[#allocation3 + $0x598] sm:$0xff]  ;;  %v1627_v45 = vld [vmem:[#allocation3 + $0x590] sm:$0xff] }
 0x8f8   :  { %1735 = vmatprep.subr.bf16.mxu1 %v1596_v8  ;;  %v1630_v46 = vld [vmem:[#allocation3 + $0x5d8] sm:$0xff]  ;;  %v1629_v49 = vld [vmem:[#allocation3 + $0x5d0] sm:$0xff] }
 0x8f9   :  { %v1632_v53 = vld [vmem:[#allocation3 + $0x618] sm:$0xff]  ;;  %v1631_v36 = vld [vmem:[#allocation3 + $0x610] sm:$0xff] }
 0x8fa   :  { %v1634_v57 = vld [vmem:[#allocation3 + $0x658] sm:$0xff]  ;;  %v1633_v58 = vld [vmem:[#allocation3 + $0x650] sm:$0xff] }
 0x8fb   :  { %1736 = vmatpush1.bf16.msra.mxu1 %v1595_v14  ;;  %v1636_v48 = vld [vmem:[#allocation3 + $0x698] sm:$0xff]  ;;  %v1635_v52 = vld [vmem:[#allocation3 + $0x690] sm:$0xff] }
 0x8fc   :  { %1737 = vmatprep.subr.bf16.mxu1 %v1598_v15  ;;  %v1638_v59 = vld [vmem:[#allocation3 + $0x6d8] sm:$0xff]  ;;  %v1637_v7 = vld [vmem:[#allocation3 + $0x6d0] sm:$0xff] }
 0x8fd   :  { %v1640_v13 = vld [vmem:[#allocation3 + $0x718] sm:$0xff]  ;;  %v1639_v60 = vld [vmem:[#allocation3 + $0x710] sm:$0xff] }
 0x8fe   :  { %v1642_v61 = vld [vmem:[#allocation3 + $0x758] sm:$0xff]  ;;  %v1641_v62 = vld [vmem:[#allocation3 + $0x750] sm:$0xff] }
 0x8ff   :  { %1738 = vmatpush1.bf16.msra.mxu1 %v1597_v32  ;;  %v1644_v63 = vld [vmem:[#allocation3 + $0x798] sm:$0xff]  ;;  %v1643_v0 = vld [vmem:[#allocation3 + $0x790] sm:$0xff] }
 0x900   :  { %1739 = vmatprep.subr.bf16.mxu1 %v1600_v40  ;;  %v1646_v8 = vld [vmem:[#allocation3 + $0x7d8] sm:$0xff]  ;;  %v1645_v14 = vld [vmem:[#allocation3 + $0x7d0] sm:$0xff] }
 0x901   :  { %v1648_v15 = vld [vmem:[#allocation3 + $0x818] sm:$0xff]  ;;  %v1647_v32 = vld [vmem:[#allocation3 + $0x810] sm:$0xff] }
 0x902   :  { %v1650_v40 = vld [vmem:[#allocation3 + $0x858] sm:$0xff] }
 0x903   :  { %1740 = vmatpush1.bf16.msra.mxu1 %v1599_v16  ;;  %v1649_v16 = vld [vmem:[#allocation3 + $0x850] sm:$0xff] }
 0x904   :  { %1741 = vmatprep.subr.bf16.mxu1 %v1602_v3  ;;  %v1652_v3 = vld [vmem:[#allocation3 + $0x898] sm:$0xff] }
 0x907   :  { %1742 = vmatpush1.bf16.msra.mxu1 %v1601_v11  ;;  %v1651_v11 = vld [vmem:[#allocation3 + $0x890] sm:$0xff] }
 0x908   :  { %1743 = vmatprep.subr.bf16.mxu1 %v1604_v17  ;;  %v1654_v17 = vld [vmem:[#allocation3 + $0x8d8] sm:$0xff] }
 0x90b   :  { %1744 = vmatpush1.bf16.msra.mxu1 %v1603_v18  ;;  %v1653_v18 = vld [vmem:[#allocation3 + $0x8d0] sm:$0xff] }
 0x90c   :  { %1745 = vmatprep.subr.bf16.mxu1 %v1606_v19  ;;  %v1656_v19 = vld [vmem:[#allocation3 + $0x918] sm:$0xff] }
 0x90f   :  { %1746 = vmatpush1.bf16.msra.mxu1 %v1605_v20  ;;  %v1655_v20 = vld [vmem:[#allocation3 + $0x910] sm:$0xff] }
 0x910   :  { %1747 = vmatprep.subr.bf16.mxu1 %v1608_v50  ;;  %v1658_v50 = vld [vmem:[#allocation3 + $0x958] sm:$0xff] }
 0x913   :  { %1748 = vmatpush1.bf16.msra.mxu1 %v1607_v21  ;;  %v1657_v21 = vld [vmem:[#allocation3 + $0x950] sm:$0xff] }
 0x914   :  { %1749 = vmatprep.subr.bf16.mxu1 %v1610_v54  ;;  %v1660_v54 = vld [vmem:[#allocation3 + $0x998] sm:$0xff] }
 0x917   :  { %1750 = vmatpush1.bf16.msra.mxu1 %v1609_v22  ;;  %v1659_v22 = vld [vmem:[#allocation3 + $0x990] sm:$0xff] }
 0x918   :  { %1751 = vmatprep.subr.bf16.mxu1 %v1612_v23  ;;  %v1662_v23 = vld [vmem:[#allocation3 + $0x9d8] sm:$0xff] }
 0x91b   :  { %1752 = vmatpush1.bf16.msra.mxu1 %v1611_v24  ;;  %v1661_v24 = vld [vmem:[#allocation3 + $0x9d0] sm:$0xff] }
 0x91c   :  { %1753 = vmatprep.subr.bf16.mxu1 %v1614_v25  ;;  %v1664_v25 = vld [vmem:[#allocation3 + $0xa18] sm:$0xff] }
 0x91f   :  { %1754 = vmatpush1.bf16.msra.mxu1 %v1613_v26  ;;  %v1663_v26 = vld [vmem:[#allocation3 + $0xa10] sm:$0xff] }
 0x920   :  { %1764 = vmatprep.subr.bf16.mxu1 %v1616_v27  ;;  %v1666_v27 = vld [vmem:[#allocation3 + $0xa58] sm:$0xff] }
 0x922   :  { %1756 = vmatmul.mubr.bf16.vlgmr.msra.gmra.mrb[12].mxu1 %v3728_v55 }
 0x923   :  { %1765 = vmatpush1.bf16.msra.mxu1 %v1615_v30  ;;  %1796 = vmatprep.mubr.bf16.mxu1 %v3733_v56  ;;  %v1665_v30 = vld [vmem:[#allocation3 + $0xa50] sm:$0xff] }
 0x924   :  { %1766 = vmatprep.subr.bf16.mxu1 %v1618_v34  ;;  %v1668_v34 = vld [vmem:[#allocation3 + $0xa98] sm:$0xff] }
 0x927   :  { %1767 = vmatpush1.bf16.msra.mxu1 %v1617_v31  ;;  %v1667_v31 = vld [vmem:[#allocation3 + $0xa90] sm:$0xff] }
 0x928   :  { %1768 = vmatprep.subr.bf16.mxu1 %v1620_v5  ;;  %v1670_v5 = vld [vmem:[#allocation3 + $0xad8] sm:$0xff] }
 0x92b   :  { %1769 = vmatpush1.bf16.msra.mxu1 %v1619_v10  ;;  %v1669_v10 = vld [vmem:[#allocation3 + $0xad0] sm:$0xff] }
 0x92c   :  { %1770 = vmatprep.subr.bf16.mxu1 %v1622_v37  ;;  %v1672_v37 = vld [vmem:[#allocation3 + $0xb18] sm:$0xff] }
 0x92f   :  { %1771 = vmatpush1.bf16.msra.mxu1 %v1621_v38  ;;  %v1671_v38 = vld [vmem:[#allocation3 + $0xb10] sm:$0xff] }
 0x930   :  { %1772 = vmatprep.subr.bf16.mxu1 %v1624_v42  ;;  %v1674_v42 = vld [vmem:[#allocation3 + $0xb58] sm:$0xff] }
 0x933   :  { %1773 = vmatpush1.bf16.msra.mxu1 %v1623_v33  ;;  %v1673_v33 = vld [vmem:[#allocation3 + $0xb50] sm:$0xff] }
 0x934   :  { %1774 = vmatprep.subr.bf16.mxu1 %v1626_v39  ;;  %v1676_v39 = vld [vmem:[#allocation3 + $0xb98] sm:$0xff] }
 0x937   :  { %1775 = vmatpush1.bf16.msra.mxu1 %v1625_v43  ;;  %v1675_v43 = vld [vmem:[#allocation3 + $0xb90] sm:$0xff] }
 0x938   :  { %1776 = vmatprep.subr.bf16.mxu1 %v1628_v44  ;;  %v1678_v44 = vld [vmem:[#allocation3 + $0xbd8] sm:$0xff] }
 0x93b   :  { %1777 = vmatpush1.bf16.msra.mxu1 %v1627_v45  ;;  %v1677_v45 = vld [vmem:[#allocation3 + $0xbd0] sm:$0xff] }
 0x93c   :  { %1778 = vmatprep.subr.bf16.mxu1 %v1630_v46  ;;  %v1680_v46 = vld [vmem:[#allocation3 + $0xc18] sm:$0xff] }
 0x93f   :  { %1779 = vmatpush1.bf16.msra.mxu1 %v1629_v49  ;;  %v1679_v49 = vld [vmem:[#allocation3 + $0xc10] sm:$0xff] }
 0x940   :  { %1780 = vmatprep.subr.bf16.mxu1 %v1632_v53  ;;  %v1682_v53 = vld [vmem:[#allocation3 + $0xc58] sm:$0xff] }
 0x943   :  { %1781 = vmatpush1.bf16.msra.mxu1 %v1631_v36  ;;  %v1681_v36 = vld [vmem:[#allocation3 + $0xc50] sm:$0xff] }
 0x944   :  { %1782 = vmatprep.subr.bf16.mxu1 %v1634_v57  ;;  %v1684_v57 = vld [vmem:[#allocation3 + $0xc98] sm:$0xff] }
 0x947   :  { %1783 = vmatpush1.bf16.msra.mxu1 %v1633_v58  ;;  %v1683_v58 = vld [vmem:[#allocation3 + $0xc90] sm:$0xff] }
 0x948   :  { %1784 = vmatprep.subr.bf16.mxu1 %v1636_v48  ;;  %v1686_v48 = vld [vmem:[#allocation3 + $0xcd8] sm:$0xff] }
 0x94b   :  { %1785 = vmatpush1.bf16.msra.mxu1 %v1635_v52  ;;  %v1685_v52 = vld [vmem:[#allocation3 + $0xcd0] sm:$0xff] }
 0x94c   :  { %1786 = vmatprep.subr.bf16.mxu1 %v1638_v59  ;;  %v1688_v59 = vld [vmem:[#allocation3 + $0xd18] sm:$0xff] }
 0x94f   :  { %1787 = vmatpush1.bf16.msra.mxu1 %v1637_v7  ;;  %v1687_v7 = vld [vmem:[#allocation3 + $0xd10] sm:$0xff] }
 0x950   :  { %1788 = vmatprep.subr.bf16.mxu1 %v1640_v13  ;;  %v1690_v13 = vld [vmem:[#allocation3 + $0xd58] sm:$0xff] }
 0x953   :  { %1789 = vmatpush1.bf16.msra.mxu1 %v1639_v60  ;;  %v1689_v60 = vld [vmem:[#allocation3 + $0xd50] sm:$0xff] }
 0x954   :  { %1790 = vmatprep.subr.bf16.mxu1 %v1642_v61  ;;  %v1692_v61 = vld [vmem:[#allocation3 + $0xd98] sm:$0xff] }
 0x957   :  { %1791 = vmatpush1.bf16.msra.mxu1 %v1641_v62  ;;  %v1691_v62 = vld [vmem:[#allocation3 + $0xd90] sm:$0xff] }
 0x958   :  { %1792 = vmatprep.subr.bf16.mxu1 %v1644_v63  ;;  %v1694_v63 = vld [vmem:[#allocation3 + $0xdd8] sm:$0xff] }
 0x95b   :  { %1793 = vmatpush1.bf16.msra.mxu1 %v1643_v0  ;;  %v1693_v0 = vld [vmem:[#allocation3 + $0xdd0] sm:$0xff] }
 0x95c   :  { %1794 = vmatprep.subr.bf16.mxu1 %v1646_v8  ;;  %v1696_v8 = vld [vmem:[#allocation3 + $0xe18] sm:$0xff] }
 0x95f   :  { %1795 = vmatpush1.bf16.msra.mxu1 %v1645_v14  ;;  %v1695_v14 = vld [vmem:[#allocation3 + $0xe10] sm:$0xff] }
 0x960   :  { %1805 = vmatprep.subr.bf16.mxu1 %v1648_v15  ;;  %v1698_v15 = vld [vmem:[#allocation3 + $0xe58] sm:$0xff] }
 0x962   :  { %1797 = vmatmul.mubr.bf16.vlgmr.msra.gmra.mrb[12].mxu1 %v3740_v28 }
 0x963   :  { %1806 = vmatpush1.bf16.msra.mxu1 %v1647_v32  ;;  %1837 = vmatprep.mubr.bf16.mxu1 %v3745_v29  ;;  %v1697_v32 = vld [vmem:[#allocation3 + $0xe50] sm:$0xff] }
 0x964   :  { %1807 = vmatprep.subr.bf16.mxu1 %v1650_v40  ;;  %v1700_v40 = vld [vmem:[#allocation3 + $0xe98] sm:$0xff] }
 0x967   :  { %1808 = vmatpush1.bf16.msra.mxu1 %v1649_v16  ;;  %v1699_v16 = vld [vmem:[#allocation3 + $0xe90] sm:$0xff] }
 0x968   :  { %1809 = vmatprep.subr.bf16.mxu1 %v1652_v3  ;;  %v1702_v3 = vld [vmem:[#allocation3 + $0xed8] sm:$0xff] }
 0x96b   :  { %1810 = vmatpush1.bf16.msra.mxu1 %v1651_v11  ;;  %v1701_v11 = vld [vmem:[#allocation3 + $0xed0] sm:$0xff] }
 0x96c   :  { %1811 = vmatprep.subr.bf16.mxu1 %v1654_v17  ;;  %v1704_v17 = vld [vmem:[#allocation3 + $0xf18] sm:$0xff] }
 0x96f   :  { %1812 = vmatpush1.bf16.msra.mxu1 %v1653_v18  ;;  %v1703_v18 = vld [vmem:[#allocation3 + $0xf10] sm:$0xff] }
 0x970   :  { %1813 = vmatprep.subr.bf16.mxu1 %v1656_v19  ;;  %v1706_v19 = vld [vmem:[#allocation3 + $0xf58] sm:$0xff] }
 0x973   :  { %1814 = vmatpush1.bf16.msra.mxu1 %v1655_v20  ;;  %v1705_v20 = vld [vmem:[#allocation3 + $0xf50] sm:$0xff] }
 0x974   :  { %1815 = vmatprep.subr.bf16.mxu1 %v1658_v50  ;;  %v1708_v50 = vld [vmem:[#allocation3 + $0xf98] sm:$0xff] }
 0x977   :  { %1816 = vmatpush1.bf16.msra.mxu1 %v1657_v21  ;;  %v1707_v21 = vld [vmem:[#allocation3 + $0xf90] sm:$0xff] }
 0x978   :  { %1817 = vmatprep.subr.bf16.mxu1 %v1660_v54  ;;  %v1710_v54 = vld [vmem:[#allocation3 + $0xfd8] sm:$0xff] }
 0x97b   :  { %1818 = vmatpush1.bf16.msra.mxu1 %v1659_v22  ;;  %v1709_v22 = vld [vmem:[#allocation3 + $0xfd0] sm:$0xff] }
 0x97c   :  { %1819 = vmatprep.subr.bf16.mxu1 %v1662_v23  ;;  %v1711_v23 = vld [vmem:[#allocation18 + $0x2] sm:$0x3] }
 0x97f   :  { %1820 = vmatpush1.bf16.msra.mxu1 %v1661_v24  ;;  %v1716_v24 = vrot.slane %v1711_v23, %v3657_v9 }
 0x980   :  { %1821 = vmatprep.subr.bf16.mxu1 %v1664_v25  ;;  %v1720_v25 = vrot.slane %v1711_v23, %v3659_v12 }
 0x983   :  { %1822 = vmatpush1.bf16.msra.mxu1 %v1663_v26 }
 0x984   :  { %1823 = vmatprep.subr.bf16.mxu1 %v1666_v27 }
 0x987   :  { %1824 = vmatpush1.bf16.msra.mxu1 %v1665_v30 }
 0x988   :  { %1825 = vmatprep.subr.bf16.mxu1 %v1668_v34 }
 0x98b   :  { %1826 = vmatpush1.bf16.msra.mxu1 %v1667_v31 }
 0x98c   :  { %1827 = vmatprep.subr.bf16.mxu1 %v1670_v5 }
 0x98f   :  { %1828 = vmatpush1.bf16.msra.mxu1 %v1669_v10 }
 0x990   :  { %1829 = vmatprep.subr.bf16.mxu1 %v1672_v37 }
 0x993   :  { %1830 = vmatpush1.bf16.msra.mxu1 %v1671_v38 }
 0x994   :  { %1831 = vmatprep.subr.bf16.mxu1 %v1674_v42 }
 0x997   :  { %1832 = vmatpush1.bf16.msra.mxu1 %v1673_v33 }
 0x998   :  { %1833 = vmatprep.subr.bf16.mxu1 %v1676_v39 }
 0x99b   :  { %1834 = vmatpush1.bf16.msra.mxu1 %v1675_v43 }
 0x99c   :  { %1835 = vmatprep.subr.bf16.mxu1 %v1678_v44 }
 0x99f   :  { %1836 = vmatpush1.bf16.msra.mxu1 %v1677_v45 }
 0x9a0   :  { %1846 = vmatprep.subr.bf16.mxu1 %v1680_v46 }
 0x9a2   :  { %1838 = vmatmul.mubr.bf16.vlgmr.msra.gmra.mrb[12].mxu1 %v3752_v2 }
 0x9a3   :  { %1847 = vmatpush1.bf16.msra.mxu1 %v1679_v49  ;;  %1878 = vmatprep.mubr.bf16.mxu1 %v3757_v4 }
 0x9a4   :  { %1848 = vmatprep.subr.bf16.mxu1 %v1682_v53 }
 0x9a7   :  { %1849 = vmatpush1.bf16.msra.mxu1 %v1681_v36 }
 0x9a8   :  { %1850 = vmatprep.subr.bf16.mxu1 %v1684_v57 }
 0x9ab   :  { %1851 = vmatpush1.bf16.msra.mxu1 %v1683_v58 }
 0x9ac   :  { %1852 = vmatprep.subr.bf16.mxu1 %v1686_v48 }
 0x9af   :  { %1853 = vmatpush1.bf16.msra.mxu1 %v1685_v52 }
 0x9b0   :  { %1854 = vmatprep.subr.bf16.mxu1 %v1688_v59 }
 0x9b3   :  { %1855 = vmatpush1.bf16.msra.mxu1 %v1687_v7 }
 0x9b4   :  { %1856 = vmatprep.subr.bf16.mxu1 %v1690_v13 }
 0x9b7   :  { %1857 = vmatpush1.bf16.msra.mxu1 %v1689_v60 }
 0x9b8   :  { %1858 = vmatprep.subr.bf16.mxu1 %v1692_v61 }
 0x9bb   :  { %1859 = vmatpush1.bf16.msra.mxu1 %v1691_v62 }
 0x9bc   :  { %1860 = vmatprep.subr.bf16.mxu1 %v1694_v63 }
 0x9bf   :  { %1861 = vmatpush1.bf16.msra.mxu1 %v1693_v0 }
 0x9c0   :  { %1862 = vmatprep.subr.bf16.mxu1 %v1696_v8 }
 0x9c3   :  { %1863 = vmatpush1.bf16.msra.mxu1 %v1695_v14 }
 0x9c4   :  { %1864 = vmatprep.subr.bf16.mxu1 %v1698_v15 }
 0x9c7   :  { %1865 = vmatpush1.bf16.msra.mxu1 %v1697_v32 }
 0x9c8   :  { %1866 = vmatprep.subr.bf16.mxu1 %v1700_v40 }
 0x9cb   :  { %1867 = vmatpush1.bf16.msra.mxu1 %v1699_v16 }
 0x9cc   :  { %1868 = vmatprep.subr.bf16.mxu1 %v1702_v3 }
 0x9cf   :  { %1869 = vmatpush1.bf16.msra.mxu1 %v1701_v11 }
 0x9d0   :  { %1870 = vmatprep.subr.bf16.mxu1 %v1704_v17 }
 0x9d3   :  { %1871 = vmatpush1.bf16.msra.mxu1 %v1703_v18 }
 0x9d4   :  { %1872 = vmatprep.subr.bf16.mxu1 %v1706_v19 }
 0x9d7   :  { %1873 = vmatpush1.bf16.msra.mxu1 %v1705_v20 }
 0x9d8   :  { %1874 = vmatprep.subr.bf16.mxu1 %v1708_v50 }
 0x9db   :  { %1875 = vmatpush1.bf16.msra.mxu1 %v1707_v21 }
 0x9dc   :  { %1876 = vmatprep.subr.bf16.mxu1 %v1710_v54 }
 0x9df   :  { %1877 = vmatpush1.bf16.msra.mxu1 %v1709_v22 }
 0x9e2   :  { %1879 = vmatmul.mubr.bf16.vlgmr.msra.gmra.mrb[12].mxu1 %v3764_v41 }
 0xab5   :  { %v1880_v26 = vpop.f32.mrb[12].mxu1 }
 0xab6   :  { %v3785_v27 = vadd.f32 %v1880_v26, %v1716_v24  ;;  %v1882_v30 = vpop.f32.mrb[13].mxu1 }
 0xab7   :  { %v3787_v34 = vadd.f32 %v1882_v30, %v1720_v25  ;;  %v1884_v31 = vpop.f32.mrb[14].mxu1 }
 0xab8   :  { %v1887_v5 = vmax.f32 %v3785_v27, 0.0  ;;  %v1885_v10 = vpop.f32.mrb[15].mxu1 }
 0xab9   :  { %v1888_v37 = vmax.f32 %v3787_v34, 0.0 }
 0xaba   :  { %3368 = dma.done.wait [#allocation8 + $0x2], 16384 }
 0xabb   :  { %3369 = vsyncadd [#allocation8 + $0x2], 4294950912  ;;  %2072 = vmatprep.mubr.bf16.mxu0 %v3722_v35  ;;  %v1901_v38 = vld [vmem:[#allocation3 + $0x28] sm:$0xff]  ;;  %v1900_v42 = vld [vmem:[#allocation3 + $0x20] sm:$0xff] }
 0xabc   :  { %v1903_v33 = vld [vmem:[#allocation3 + $0x68] sm:$0xff]  ;;  %2040 = vmatprep.subr.bf16.mxu0 %v1901_v38  ;;  %v1902_v39 = vld [vmem:[#allocation3 + $0x60] sm:$0xff] }
 0xabd   :  { %2041 = vmatpush1.bf16.msra.mxu0 %v1900_v42  ;;  %v1905_v43 = vld [vmem:[#allocation3 + $0xa8] sm:$0xff]  ;;  %v1904_v44 = vld [vmem:[#allocation3 + $0xa0] sm:$0xff] }
 0xabe   :  { %2042 = vmatprep.subr.bf16.mxu0 %v1903_v33  ;;  %v1907_v45 = vld [vmem:[#allocation3 + $0xe8] sm:$0xff]  ;;  %v1906_v46 = vld [vmem:[#allocation3 + $0xe0] sm:$0xff] }
 0xabf   :  { %v1909_v49 = vld [vmem:[#allocation3 + $0x128] sm:$0xff]  ;;  %v1908_v53 = vld [vmem:[#allocation3 + $0x120] sm:$0xff] }
 0xac0   :  { %v1911_v36 = vld [vmem:[#allocation3 + $0x168] sm:$0xff]  ;;  %v1910_v57 = vld [vmem:[#allocation3 + $0x160] sm:$0xff] }
 0xac1   :  { %2043 = vmatpush1.bf16.msra.mxu0 %v1902_v39  ;;  %v1913_v58 = vld [vmem:[#allocation3 + $0x1a8] sm:$0xff]  ;;  %v1912_v48 = vld [vmem:[#allocation3 + $0x1a0] sm:$0xff] }
 0xac2   :  { %2044 = vmatprep.subr.bf16.mxu0 %v1905_v43  ;;  %v1915_v52 = vld [vmem:[#allocation3 + $0x1e8] sm:$0xff]  ;;  %v1914_v59 = vld [vmem:[#allocation3 + $0x1e0] sm:$0xff] }
 0xac3   :  { %v1917_v7 = vld [vmem:[#allocation3 + $0x228] sm:$0xff]  ;;  %v1916_v13 = vld [vmem:[#allocation3 + $0x220] sm:$0xff] }
 0xac4   :  { %v1919_v60 = vld [vmem:[#allocation3 + $0x268] sm:$0xff]  ;;  %v1918_v61 = vld [vmem:[#allocation3 + $0x260] sm:$0xff] }
 0xac5   :  { %2045 = vmatpush1.bf16.msra.mxu0 %v1904_v44  ;;  %v1921_v62 = vld [vmem:[#allocation3 + $0x2a8] sm:$0xff]  ;;  %v1920_v63 = vld [vmem:[#allocation3 + $0x2a0] sm:$0xff] }
 0xac6   :  { %2046 = vmatprep.subr.bf16.mxu0 %v1907_v45  ;;  %v1923_v0 = vld [vmem:[#allocation3 + $0x2e8] sm:$0xff]  ;;  %v1922_v8 = vld [vmem:[#allocation3 + $0x2e0] sm:$0xff] }
 0xac7   :  { %v1925_v14 = vld [vmem:[#allocation3 + $0x328] sm:$0xff]  ;;  %v1924_v15 = vld [vmem:[#allocation3 + $0x320] sm:$0xff] }
 0xac8   :  { %v1927_v32 = vld [vmem:[#allocation3 + $0x368] sm:$0xff]  ;;  %v1926_v40 = vld [vmem:[#allocation3 + $0x360] sm:$0xff] }
 0xac9   :  { %2047 = vmatpush1.bf16.msra.mxu0 %v1906_v46  ;;  %v1929_v16 = vld [vmem:[#allocation3 + $0x3a8] sm:$0xff]  ;;  %v1928_v3 = vld [vmem:[#allocation3 + $0x3a0] sm:$0xff] }
 0xaca   :  { %2048 = vmatprep.subr.bf16.mxu0 %v1909_v49  ;;  %v1931_v11 = vld [vmem:[#allocation3 + $0x3e8] sm:$0xff]  ;;  %v1930_v17 = vld [vmem:[#allocation3 + $0x3e0] sm:$0xff] }
 0xacb   :  { %v1933_v18 = vld [vmem:[#allocation3 + $0x428] sm:$0xff]  ;;  %v1932_v19 = vld [vmem:[#allocation3 + $0x420] sm:$0xff] }
 0xacc   :  { %v1935_v20 = vld [vmem:[#allocation3 + $0x468] sm:$0xff]  ;;  %v1934_v50 = vld [vmem:[#allocation3 + $0x460] sm:$0xff] }
 0xacd   :  { %2049 = vmatpush1.bf16.msra.mxu0 %v1908_v53  ;;  %v1937_v21 = vld [vmem:[#allocation3 + $0x4a8] sm:$0xff]  ;;  %v1936_v54 = vld [vmem:[#allocation3 + $0x4a0] sm:$0xff] }
 0xace   :  { %2050 = vmatprep.subr.bf16.mxu0 %v1911_v36  ;;  %v1939_v22 = vld [vmem:[#allocation3 + $0x4e8] sm:$0xff]  ;;  %v1938_v23 = vld [vmem:[#allocation3 + $0x4e0] sm:$0xff] }
 0xacf   :  { %v1941_v24 = vld [vmem:[#allocation3 + $0x528] sm:$0xff]  ;;  %v1940_v25 = vld [vmem:[#allocation3 + $0x520] sm:$0xff] }
 0xad0   :  { %v1943_v26 = vld [vmem:[#allocation3 + $0x568] sm:$0xff]  ;;  %v1942_v30 = vld [vmem:[#allocation3 + $0x560] sm:$0xff] }
 0xad1   :  { %2051 = vmatpush1.bf16.msra.mxu0 %v1910_v57  ;;  %v1945_v31 = vld [vmem:[#allocation3 + $0x5a8] sm:$0xff]  ;;  %v1944_v10 = vld [vmem:[#allocation3 + $0x5a0] sm:$0xff] }
 0xad2   :  { %2052 = vmatprep.subr.bf16.mxu0 %v1913_v58  ;;  %v1947_v38 = vld [vmem:[#allocation3 + $0x5e8] sm:$0xff]  ;;  %v1946_v42 = vld [vmem:[#allocation3 + $0x5e0] sm:$0xff] }
 0xad3   :  { %v1949_v33 = vld [vmem:[#allocation3 + $0x628] sm:$0xff]  ;;  %v1948_v39 = vld [vmem:[#allocation3 + $0x620] sm:$0xff] }
 0xad4   :  { %v1951_v43 = vld [vmem:[#allocation3 + $0x668] sm:$0xff]  ;;  %v1950_v44 = vld [vmem:[#allocation3 + $0x660] sm:$0xff] }
 0xad5   :  { %2053 = vmatpush1.bf16.msra.mxu0 %v1912_v48  ;;  %v1953_v45 = vld [vmem:[#allocation3 + $0x6a8] sm:$0xff]  ;;  %v1952_v46 = vld [vmem:[#allocation3 + $0x6a0] sm:$0xff] }
 0xad6   :  { %2054 = vmatprep.subr.bf16.mxu0 %v1915_v52  ;;  %v1955_v49 = vld [vmem:[#allocation3 + $0x6e8] sm:$0xff]  ;;  %v1954_v53 = vld [vmem:[#allocation3 + $0x6e0] sm:$0xff] }
 0xad7   :  { %v1957_v36 = vld [vmem:[#allocation3 + $0x728] sm:$0xff]  ;;  %v1956_v57 = vld [vmem:[#allocation3 + $0x720] sm:$0xff] }
 0xad8   :  { %v1959_v58 = vld [vmem:[#allocation3 + $0x768] sm:$0xff]  ;;  %v1958_v48 = vld [vmem:[#allocation3 + $0x760] sm:$0xff] }
 0xad9   :  { %2055 = vmatpush1.bf16.msra.mxu0 %v1914_v59  ;;  %v1961_v52 = vld [vmem:[#allocation3 + $0x7a8] sm:$0xff]  ;;  %v1960_v59 = vld [vmem:[#allocation3 + $0x7a0] sm:$0xff] }
 0xada   :  { %2056 = vmatprep.subr.bf16.mxu0 %v1917_v7  ;;  %v1963_v7 = vld [vmem:[#allocation3 + $0x7e8] sm:$0xff] }
 0xadd   :  { %2057 = vmatpush1.bf16.msra.mxu0 %v1916_v13  ;;  %v1962_v13 = vld [vmem:[#allocation3 + $0x7e0] sm:$0xff] }
 0xade   :  { %2058 = vmatprep.subr.bf16.mxu0 %v1919_v60  ;;  %v1965_v60 = vld [vmem:[#allocation3 + $0x828] sm:$0xff] }
 0xae1   :  { %2059 = vmatpush1.bf16.msra.mxu0 %v1918_v61  ;;  %v1964_v61 = vld [vmem:[#allocation3 + $0x820] sm:$0xff] }
 0xae2   :  { %2060 = vmatprep.subr.bf16.mxu0 %v1921_v62  ;;  %v1967_v62 = vld [vmem:[#allocation3 + $0x868] sm:$0xff] }
 0xae5   :  { %2061 = vmatpush1.bf16.msra.mxu0 %v1920_v63  ;;  %v1966_v63 = vld [vmem:[#allocation3 + $0x860] sm:$0xff] }
 0xae6   :  { %2062 = vmatprep.subr.bf16.mxu0 %v1923_v0  ;;  %v1969_v0 = vld [vmem:[#allocation3 + $0x8a8] sm:$0xff] }
 0xae9   :  { %2063 = vmatpush1.bf16.msra.mxu0 %v1922_v8  ;;  %v1968_v8 = vld [vmem:[#allocation3 + $0x8a0] sm:$0xff] }
 0xaea   :  { %2064 = vmatprep.subr.bf16.mxu0 %v1925_v14  ;;  %v1971_v14 = vld [vmem:[#allocation3 + $0x8e8] sm:$0xff] }
 0xaed   :  { %2065 = vmatpush1.bf16.msra.mxu0 %v1924_v15  ;;  %v1970_v15 = vld [vmem:[#allocation3 + $0x8e0] sm:$0xff] }
 0xaee   :  { %2066 = vmatprep.subr.bf16.mxu0 %v1927_v32  ;;  %v1973_v32 = vld [vmem:[#allocation3 + $0x928] sm:$0xff] }
 0xaf1   :  { %2067 = vmatpush1.bf16.msra.mxu0 %v1926_v40  ;;  %v1972_v40 = vld [vmem:[#allocation3 + $0x920] sm:$0xff] }
 0xaf2   :  { %2068 = vmatprep.subr.bf16.mxu0 %v1929_v16  ;;  %v1975_v16 = vld [vmem:[#allocation3 + $0x968] sm:$0xff] }
 0xaf5   :  { %2069 = vmatpush1.bf16.msra.mxu0 %v1928_v3  ;;  %v1974_v3 = vld [vmem:[#allocation3 + $0x960] sm:$0xff] }
 0xaf6   :  { %2070 = vmatprep.subr.bf16.mxu0 %v1931_v11  ;;  %v1977_v11 = vld [vmem:[#allocation3 + $0x9a8] sm:$0xff] }
 0xaf9   :  { %2071 = vmatpush1.bf16.msra.mxu0 %v1930_v17  ;;  %v1976_v17 = vld [vmem:[#allocation3 + $0x9a0] sm:$0xff] }
 0xafa   :  { %2081 = vmatprep.subr.bf16.mxu0 %v1933_v18  ;;  %v1979_v18 = vld [vmem:[#allocation3 + $0x9e8] sm:$0xff] }
 0xafc   :  { %2073 = vmatmul.mubr.bf16.vlgmr.msra.gmra.mrb[16].mxu0 %v3728_v55 }
 0xafd   :  { %2082 = vmatpush1.bf16.msra.mxu0 %v1932_v19  ;;  %2113 = vmatprep.mubr.bf16.mxu0 %v3733_v56  ;;  %v1978_v19 = vld [vmem:[#allocation3 + $0x9e0] sm:$0xff] }
 0xafe   :  { %2083 = vmatprep.subr.bf16.mxu0 %v1935_v20  ;;  %v1981_v20 = vld [vmem:[#allocation3 + $0xa28] sm:$0xff] }
 0xb01   :  { %2084 = vmatpush1.bf16.msra.mxu0 %v1934_v50  ;;  %v1980_v50 = vld [vmem:[#allocation3 + $0xa20] sm:$0xff] }
 0xb02   :  { %2085 = vmatprep.subr.bf16.mxu0 %v1937_v21  ;;  %v1983_v21 = vld [vmem:[#allocation3 + $0xa68] sm:$0xff] }
 0xb05   :  { %2086 = vmatpush1.bf16.msra.mxu0 %v1936_v54  ;;  %v1982_v54 = vld [vmem:[#allocation3 + $0xa60] sm:$0xff] }
 0xb06   :  { %2087 = vmatprep.subr.bf16.mxu0 %v1939_v22  ;;  %v1985_v22 = vld [vmem:[#allocation3 + $0xaa8] sm:$0xff] }
 0xb09   :  { %2088 = vmatpush1.bf16.msra.mxu0 %v1938_v23  ;;  %v1984_v23 = vld [vmem:[#allocation3 + $0xaa0] sm:$0xff] }
 0xb0a   :  { %2089 = vmatprep.subr.bf16.mxu0 %v1941_v24  ;;  %v1987_v24 = vld [vmem:[#allocation3 + $0xae8] sm:$0xff] }
 0xb0d   :  { %2090 = vmatpush1.bf16.msra.mxu0 %v1940_v25  ;;  %v1986_v25 = vld [vmem:[#allocation3 + $0xae0] sm:$0xff] }
 0xb0e   :  { %2091 = vmatprep.subr.bf16.mxu0 %v1943_v26  ;;  %v1989_v26 = vld [vmem:[#allocation3 + $0xb28] sm:$0xff] }
 0xb11   :  { %2092 = vmatpush1.bf16.msra.mxu0 %v1942_v30  ;;  %v1988_v30 = vld [vmem:[#allocation3 + $0xb20] sm:$0xff] }
 0xb12   :  { %2093 = vmatprep.subr.bf16.mxu0 %v1945_v31  ;;  %v1991_v31 = vld [vmem:[#allocation3 + $0xb68] sm:$0xff] }
 0xb15   :  { %2094 = vmatpush1.bf16.msra.mxu0 %v1944_v10  ;;  %v1990_v10 = vld [vmem:[#allocation3 + $0xb60] sm:$0xff] }
 0xb16   :  { %2095 = vmatprep.subr.bf16.mxu0 %v1947_v38  ;;  %v1993_v38 = vld [vmem:[#allocation3 + $0xba8] sm:$0xff] }
 0xb19   :  { %2096 = vmatpush1.bf16.msra.mxu0 %v1946_v42  ;;  %v1992_v42 = vld [vmem:[#allocation3 + $0xba0] sm:$0xff] }
 0xb1a   :  { %2097 = vmatprep.subr.bf16.mxu0 %v1949_v33  ;;  %v1995_v33 = vld [vmem:[#allocation3 + $0xbe8] sm:$0xff] }
 0xb1d   :  { %2098 = vmatpush1.bf16.msra.mxu0 %v1948_v39  ;;  %v1994_v39 = vld [vmem:[#allocation3 + $0xbe0] sm:$0xff] }
 0xb1e   :  { %2099 = vmatprep.subr.bf16.mxu0 %v1951_v43  ;;  %v1997_v43 = vld [vmem:[#allocation3 + $0xc28] sm:$0xff] }
 0xb21   :  { %2100 = vmatpush1.bf16.msra.mxu0 %v1950_v44  ;;  %v1996_v44 = vld [vmem:[#allocation3 + $0xc20] sm:$0xff] }
 0xb22   :  { %2101 = vmatprep.subr.bf16.mxu0 %v1953_v45  ;;  %v1999_v45 = vld [vmem:[#allocation3 + $0xc68] sm:$0xff] }
 0xb25   :  { %2102 = vmatpush1.bf16.msra.mxu0 %v1952_v46  ;;  %v1998_v46 = vld [vmem:[#allocation3 + $0xc60] sm:$0xff] }
 0xb26   :  { %2103 = vmatprep.subr.bf16.mxu0 %v1955_v49  ;;  %v2001_v49 = vld [vmem:[#allocation3 + $0xca8] sm:$0xff] }
 0xb29   :  { %2104 = vmatpush1.bf16.msra.mxu0 %v1954_v53  ;;  %v2000_v53 = vld [vmem:[#allocation3 + $0xca0] sm:$0xff] }
 0xb2a   :  { %2105 = vmatprep.subr.bf16.mxu0 %v1957_v36  ;;  %v2003_v36 = vld [vmem:[#allocation3 + $0xce8] sm:$0xff] }
 0xb2d   :  { %2106 = vmatpush1.bf16.msra.mxu0 %v1956_v57  ;;  %v2002_v57 = vld [vmem:[#allocation3 + $0xce0] sm:$0xff] }
 0xb2e   :  { %2107 = vmatprep.subr.bf16.mxu0 %v1959_v58  ;;  %v2005_v58 = vld [vmem:[#allocation3 + $0xd28] sm:$0xff] }
 0xb31   :  { %2108 = vmatpush1.bf16.msra.mxu0 %v1958_v48  ;;  %v2004_v48 = vld [vmem:[#allocation3 + $0xd20] sm:$0xff] }
 0xb32   :  { %2109 = vmatprep.subr.bf16.mxu0 %v1961_v52  ;;  %v2007_v52 = vld [vmem:[#allocation3 + $0xd68] sm:$0xff] }
 0xb35   :  { %2110 = vmatpush1.bf16.msra.mxu0 %v1960_v59  ;;  %v2006_v59 = vld [vmem:[#allocation3 + $0xd60] sm:$0xff] }
 0xb36   :  { %2111 = vmatprep.subr.bf16.mxu0 %v1963_v7  ;;  %v2009_v7 = vld [vmem:[#allocation3 + $0xda8] sm:$0xff] }
 0xb39   :  { %2112 = vmatpush1.bf16.msra.mxu0 %v1962_v13  ;;  %v2008_v13 = vld [vmem:[#allocation3 + $0xda0] sm:$0xff] }
 0xb3a   :  { %2122 = vmatprep.subr.bf16.mxu0 %v1965_v60  ;;  %v2011_v60 = vld [vmem:[#allocation3 + $0xde8] sm:$0xff] }
 0xb3c   :  { %2114 = vmatmul.mubr.bf16.vlgmr.msra.gmra.mrb[16].mxu0 %v3740_v28 }
 0xb3d   :  { %2123 = vmatpush1.bf16.msra.mxu0 %v1964_v61  ;;  %2154 = vmatprep.mubr.bf16.mxu0 %v3745_v29  ;;  %v2010_v61 = vld [vmem:[#allocation3 + $0xde0] sm:$0xff] }
 0xb3e   :  { %2124 = vmatprep.subr.bf16.mxu0 %v1967_v62  ;;  %v2013_v62 = vld [vmem:[#allocation3 + $0xe28] sm:$0xff] }
 0xb41   :  { %2125 = vmatpush1.bf16.msra.mxu0 %v1966_v63  ;;  %v2012_v63 = vld [vmem:[#allocation3 + $0xe20] sm:$0xff] }
 0xb42   :  { %2126 = vmatprep.subr.bf16.mxu0 %v1969_v0  ;;  %v2015_v0 = vld [vmem:[#allocation3 + $0xe68] sm:$0xff] }
 0xb45   :  { %2127 = vmatpush1.bf16.msra.mxu0 %v1968_v8  ;;  %v2014_v8 = vld [vmem:[#allocation3 + $0xe60] sm:$0xff] }
 0xb46   :  { %2128 = vmatprep.subr.bf16.mxu0 %v1971_v14  ;;  %v2017_v14 = vld [vmem:[#allocation3 + $0xea8] sm:$0xff] }
 0xb49   :  { %2129 = vmatpush1.bf16.msra.mxu0 %v1970_v15  ;;  %v2016_v15 = vld [vmem:[#allocation3 + $0xea0] sm:$0xff] }
 0xb4a   :  { %2130 = vmatprep.subr.bf16.mxu0 %v1973_v32  ;;  %v2019_v32 = vld [vmem:[#allocation3 + $0xee8] sm:$0xff] }
 0xb4d   :  { %2131 = vmatpush1.bf16.msra.mxu0 %v1972_v40  ;;  %v2018_v40 = vld [vmem:[#allocation3 + $0xee0] sm:$0xff] }
 0xb4e   :  { %2132 = vmatprep.subr.bf16.mxu0 %v1975_v16  ;;  %v2021_v16 = vld [vmem:[#allocation3 + $0xf28] sm:$0xff] }
 0xb51   :  { %2133 = vmatpush1.bf16.msra.mxu0 %v1974_v3  ;;  %v2020_v3 = vld [vmem:[#allocation3 + $0xf20] sm:$0xff] }
 0xb52   :  { %2134 = vmatprep.subr.bf16.mxu0 %v1977_v11  ;;  %v2023_v11 = vld [vmem:[#allocation3 + $0xf68] sm:$0xff] }
 0xb55   :  { %2135 = vmatpush1.bf16.msra.mxu0 %v1976_v17  ;;  %v2022_v17 = vld [vmem:[#allocation3 + $0xf60] sm:$0xff] }
 0xb56   :  { %2136 = vmatprep.subr.bf16.mxu0 %v1979_v18  ;;  %v2025_v18 = vld [vmem:[#allocation3 + $0xfa8] sm:$0xff] }
 0xb59   :  { %2137 = vmatpush1.bf16.msra.mxu0 %v1978_v19  ;;  %v2024_v19 = vld [vmem:[#allocation3 + $0xfa0] sm:$0xff] }
 0xb5a   :  { %2138 = vmatprep.subr.bf16.mxu0 %v1981_v20  ;;  %v2027_v20 = vld [vmem:[#allocation3 + $0xfe8] sm:$0xff] }
 0xb5d   :  { %2139 = vmatpush1.bf16.msra.mxu0 %v1980_v50  ;;  %v2026_v50 = vld [vmem:[#allocation3 + $0xfe0] sm:$0xff] }
 0xb5e   :  { %2140 = vmatprep.subr.bf16.mxu0 %v1983_v21  ;;  %v2028_v21 = vld [vmem:[#allocation18 + $0x4] sm:$0x3] }
 0xb61   :  { %2141 = vmatpush1.bf16.msra.mxu0 %v1982_v54  ;;  %v2033_v54 = vrot.slane %v2028_v21, %v3657_v9 }
 0xb62   :  { %2142 = vmatprep.subr.bf16.mxu0 %v1985_v22  ;;  %v2037_v22 = vrot.slane %v2028_v21, %v3659_v12 }
 0xb65   :  { %2143 = vmatpush1.bf16.msra.mxu0 %v1984_v23 }
 0xb66   :  { %2144 = vmatprep.subr.bf16.mxu0 %v1987_v24 }
 0xb69   :  { %2145 = vmatpush1.bf16.msra.mxu0 %v1986_v25 }
 0xb6a   :  { %2146 = vmatprep.subr.bf16.mxu0 %v1989_v26 }
 0xb6d   :  { %2147 = vmatpush1.bf16.msra.mxu0 %v1988_v30 }
 0xb6e   :  { %2148 = vmatprep.subr.bf16.mxu0 %v1991_v31 }
 0xb71   :  { %2149 = vmatpush1.bf16.msra.mxu0 %v1990_v10 }
 0xb72   :  { %2150 = vmatprep.subr.bf16.mxu0 %v1993_v38 }
 0xb75   :  { %2151 = vmatpush1.bf16.msra.mxu0 %v1992_v42 }
 0xb76   :  { %2152 = vmatprep.subr.bf16.mxu0 %v1995_v33 }
 0xb79   :  { %2153 = vmatpush1.bf16.msra.mxu0 %v1994_v39 }
 0xb7a   :  { %2163 = vmatprep.subr.bf16.mxu0 %v1997_v43 }
 0xb7c   :  { %2155 = vmatmul.mubr.bf16.vlgmr.msra.gmra.mrb[16].mxu0 %v3752_v2 }
 0xb7d   :  { %2164 = vmatpush1.bf16.msra.mxu0 %v1996_v44  ;;  %2195 = vmatprep.mubr.bf16.mxu0 %v3757_v4 }
 0xb7e   :  { %2165 = vmatprep.subr.bf16.mxu0 %v1999_v45 }
 0xb81   :  { %2166 = vmatpush1.bf16.msra.mxu0 %v1998_v46 }
 0xb82   :  { %2167 = vmatprep.subr.bf16.mxu0 %v2001_v49 }
 0xb85   :  { %2168 = vmatpush1.bf16.msra.mxu0 %v2000_v53 }
 0xb86   :  { %2169 = vmatprep.subr.bf16.mxu0 %v2003_v36 }
 0xb89   :  { %2170 = vmatpush1.bf16.msra.mxu0 %v2002_v57 }
 0xb8a   :  { %2171 = vmatprep.subr.bf16.mxu0 %v2005_v58 }
 0xb8d   :  { %2172 = vmatpush1.bf16.msra.mxu0 %v2004_v48 }
 0xb8e   :  { %2173 = vmatprep.subr.bf16.mxu0 %v2007_v52 }
 0xb91   :  { %2174 = vmatpush1.bf16.msra.mxu0 %v2006_v59 }
 0xb92   :  { %2175 = vmatprep.subr.bf16.mxu0 %v2009_v7 }
 0xb95   :  { %2176 = vmatpush1.bf16.msra.mxu0 %v2008_v13 }
 0xb96   :  { %2177 = vmatprep.subr.bf16.mxu0 %v2011_v60 }
 0xb99   :  { %2178 = vmatpush1.bf16.msra.mxu0 %v2010_v61 }
 0xb9a   :  { %2179 = vmatprep.subr.bf16.mxu0 %v2013_v62 }
 0xb9d   :  { %2180 = vmatpush1.bf16.msra.mxu0 %v2012_v63 }
 0xb9e   :  { %2181 = vmatprep.subr.bf16.mxu0 %v2015_v0 }
 0xba1   :  { %2182 = vmatpush1.bf16.msra.mxu0 %v2014_v8 }
 0xba2   :  { %2183 = vmatprep.subr.bf16.mxu0 %v2017_v14 }
 0xba5   :  { %2184 = vmatpush1.bf16.msra.mxu0 %v2016_v15 }
 0xba6   :  { %2185 = vmatprep.subr.bf16.mxu0 %v2019_v32 }
 0xba9   :  { %2186 = vmatpush1.bf16.msra.mxu0 %v2018_v40 }
 0xbaa   :  { %2187 = vmatprep.subr.bf16.mxu0 %v2021_v16 }
 0xbad   :  { %2188 = vmatpush1.bf16.msra.mxu0 %v2020_v3 }
 0xbae   :  { %2189 = vmatprep.subr.bf16.mxu0 %v2023_v11 }
 0xbb1   :  { %2190 = vmatpush1.bf16.msra.mxu0 %v2022_v17 }
 0xbb2   :  { %2191 = vmatprep.subr.bf16.mxu0 %v2025_v18 }
 0xbb5   :  { %2192 = vmatpush1.bf16.msra.mxu0 %v2024_v19 }
 0xbb6   :  { %2193 = vmatprep.subr.bf16.mxu0 %v2027_v20 }
 0xbb9   :  { %2194 = vmatpush1.bf16.msra.mxu0 %v2026_v50 }
 0xbbc   :  { %2196 = vmatmul.mubr.bf16.vlgmr.msra.gmra.mrb[16].mxu0 %v3764_v41 }
 0xc8f   :  { %v2197_v23 = vpop.f32.mrb[16].mxu0 }
 0xc90   :  { %v3801_v24 = vadd.f32 %v2197_v23, %v2033_v54  ;;  %v2199_v25 = vpop.f32.mrb[17].mxu0 }
 0xc91   :  { %v3803_v26 = vadd.f32 %v2199_v25, %v2037_v22  ;;  %v2201_v30 = vpop.f32.mrb[18].mxu0 }
 0xc92   :  { %v2204_v31 = vmax.f32 %v3801_v24, 0.0  ;;  %v2202_v10 = vpop.f32.mrb[19].mxu0 }
 0xc93   :  { %v2205_v38 = vmax.f32 %v3803_v26, 0.0 }
 0xc94   :  { %3370 = dma.done.wait [#allocation8 + $0x3], 16384 }
 0xc95   :  { %3371 = vsyncadd [#allocation8 + $0x3], 4294950912  ;;  %2389 = vmatprep.mubr.bf16.mxu1 %v3722_v35  ;;  %v2218_v42 = vld [vmem:[#allocation3 + $0x38] sm:$0xff]  ;;  %v2217_v33 = vld [vmem:[#allocation3 + $0x30] sm:$0xff] }
 0xc96   :  { %v2220_v39 = vld [vmem:[#allocation3 + $0x78] sm:$0xff]  ;;  %2357 = vmatprep.subr.bf16.mxu1 %v2218_v42  ;;  %v2219_v43 = vld [vmem:[#allocation3 + $0x70] sm:$0xff] }
 0xc97   :  { %2358 = vmatpush1.bf16.msra.mxu1 %v2217_v33  ;;  %v2222_v44 = vld [vmem:[#allocation3 + $0xb8] sm:$0xff]  ;;  %v2221_v45 = vld [vmem:[#allocation3 + $0xb0] sm:$0xff] }
 0xc98   :  { %2359 = vmatprep.subr.bf16.mxu1 %v2220_v39  ;;  %v2224_v46 = vld [vmem:[#allocation3 + $0xf8] sm:$0xff]  ;;  %v2223_v49 = vld [vmem:[#allocation3 + $0xf0] sm:$0xff] }
 0xc99   :  { %v2226_v53 = vld [vmem:[#allocation3 + $0x138] sm:$0xff]  ;;  %v2225_v36 = vld [vmem:[#allocation3 + $0x130] sm:$0xff] }
 0xc9a   :  { %v2228_v35 = vld [vmem:[#allocation3 + $0x178] sm:$0xff]  ;;  %v2227_v57 = vld [vmem:[#allocation3 + $0x170] sm:$0xff] }
 0xc9b   :  { %2360 = vmatpush1.bf16.msra.mxu1 %v2219_v43  ;;  %v2230_v58 = vld [vmem:[#allocation3 + $0x1b8] sm:$0xff]  ;;  %v2229_v48 = vld [vmem:[#allocation3 + $0x1b0] sm:$0xff] }
 0xc9c   :  { %2361 = vmatprep.subr.bf16.mxu1 %v2222_v44  ;;  %v2232_v52 = vld [vmem:[#allocation3 + $0x1f8] sm:$0xff]  ;;  %v2231_v59 = vld [vmem:[#allocation3 + $0x1f0] sm:$0xff] }
 0xc9d   :  { %v2234_v7 = vld [vmem:[#allocation3 + $0x238] sm:$0xff]  ;;  %v2233_v13 = vld [vmem:[#allocation3 + $0x230] sm:$0xff] }
 0xc9e   :  { %v2236_v60 = vld [vmem:[#allocation3 + $0x278] sm:$0xff]  ;;  %v2235_v61 = vld [vmem:[#allocation3 + $0x270] sm:$0xff] }
 0xc9f   :  { %2362 = vmatpush1.bf16.msra.mxu1 %v2221_v45  ;;  %v2238_v62 = vld [vmem:[#allocation3 + $0x2b8] sm:$0xff]  ;;  %v2237_v63 = vld [vmem:[#allocation3 + $0x2b0] sm:$0xff] }
 0xca0   :  { %2363 = vmatprep.subr.bf16.mxu1 %v2224_v46  ;;  %v2240_v0 = vld [vmem:[#allocation3 + $0x2f8] sm:$0xff]  ;;  %v2239_v8 = vld [vmem:[#allocation3 + $0x2f0] sm:$0xff] }
 0xca1   :  { %v2242_v14 = vld [vmem:[#allocation3 + $0x338] sm:$0xff]  ;;  %v2241_v15 = vld [vmem:[#allocation3 + $0x330] sm:$0xff] }
 0xca2   :  { %v2244_v32 = vld [vmem:[#allocation3 + $0x378] sm:$0xff]  ;;  %v2243_v40 = vld [vmem:[#allocation3 + $0x370] sm:$0xff] }
 0xca3   :  { %2364 = vmatpush1.bf16.msra.mxu1 %v2223_v49  ;;  %v2246_v16 = vld [vmem:[#allocation3 + $0x3b8] sm:$0xff]  ;;  %v2245_v3 = vld [vmem:[#allocation3 + $0x3b0] sm:$0xff] }
 0xca4   :  { %2365 = vmatprep.subr.bf16.mxu1 %v2226_v53  ;;  %v2248_v11 = vld [vmem:[#allocation3 + $0x3f8] sm:$0xff]  ;;  %v2247_v17 = vld [vmem:[#allocation3 + $0x3f0] sm:$0xff] }
 0xca5   :  { %v2250_v18 = vld [vmem:[#allocation3 + $0x438] sm:$0xff]  ;;  %v2249_v19 = vld [vmem:[#allocation3 + $0x430] sm:$0xff] }
 0xca6   :  { %v2252_v20 = vld [vmem:[#allocation3 + $0x478] sm:$0xff]  ;;  %v2251_v50 = vld [vmem:[#allocation3 + $0x470] sm:$0xff] }
 0xca7   :  { %2366 = vmatpush1.bf16.msra.mxu1 %v2225_v36  ;;  %v2254_v21 = vld [vmem:[#allocation3 + $0x4b8] sm:$0xff]  ;;  %v2253_v54 = vld [vmem:[#allocation3 + $0x4b0] sm:$0xff] }
 0xca8   :  { %2367 = vmatprep.subr.bf16.mxu1 %v2228_v35  ;;  %v2256_v22 = vld [vmem:[#allocation3 + $0x4f8] sm:$0xff]  ;;  %v2255_v23 = vld [vmem:[#allocation3 + $0x4f0] sm:$0xff] }
 0xca9   :  { %v2258_v25 = vld [vmem:[#allocation3 + $0x538] sm:$0xff]  ;;  %v2257_v30 = vld [vmem:[#allocation3 + $0x530] sm:$0xff] }
 0xcaa   :  { %v2260_v10 = vld [vmem:[#allocation3 + $0x578] sm:$0xff]  ;;  %v2263_v39 = vld [vmem:[#allocation3 + $0x5f0] sm:$0xff] }
 0xcab   :  { %2368 = vmatpush1.bf16.msra.mxu1 %v2227_v57  ;;  %v2262_v42 = vld [vmem:[#allocation3 + $0x5b8] sm:$0xff]  ;;  %v2265_v44 = vld [vmem:[#allocation3 + $0x630] sm:$0xff] }
 0xcac   :  { %2369 = vmatprep.subr.bf16.mxu1 %v2230_v58  ;;  %v2264_v33 = vld [vmem:[#allocation3 + $0x5f8] sm:$0xff]  ;;  %v2267_v46 = vld [vmem:[#allocation3 + $0x670] sm:$0xff] }
 0xcad   :  { %v2266_v43 = vld [vmem:[#allocation3 + $0x638] sm:$0xff]  ;;  %v2269_v53 = vld [vmem:[#allocation3 + $0x6b0] sm:$0xff] }
 0xcae   :  { %v2268_v45 = vld [vmem:[#allocation3 + $0x678] sm:$0xff]  ;;  %v2271_v35 = vld [vmem:[#allocation3 + $0x6f0] sm:$0xff] }
 0xcaf   :  { %2370 = vmatpush1.bf16.msra.mxu1 %v2229_v48  ;;  %v2270_v49 = vld [vmem:[#allocation3 + $0x6b8] sm:$0xff]  ;;  %v2273_v58 = vld [vmem:[#allocation3 + $0x730] sm:$0xff] }
 0xcb0   :  { %2371 = vmatprep.subr.bf16.mxu1 %v2232_v52  ;;  %v2272_v36 = vld [vmem:[#allocation3 + $0x6f8] sm:$0xff]  ;;  %v2275_v52 = vld [vmem:[#allocation3 + $0x770] sm:$0xff] }
 0xcb1   :  { %v2274_v57 = vld [vmem:[#allocation3 + $0x738] sm:$0xff] }
 0xcb2   :  { %v2276_v48 = vld [vmem:[#allocation3 + $0x778] sm:$0xff] }
 0xcb3   :  { %2372 = vmatpush1.bf16.msra.mxu1 %v2231_v59  ;;  %v2278_v59 = vld [vmem:[#allocation3 + $0x7b8] sm:$0xff] }
 0xcb4   :  { %2373 = vmatprep.subr.bf16.mxu1 %v2234_v7  ;;  %v2277_v7 = vld [vmem:[#allocation3 + $0x7b0] sm:$0xff] }
 0xcb7   :  { %2374 = vmatpush1.bf16.msra.mxu1 %v2233_v13  ;;  %v2280_v13 = vld [vmem:[#allocation3 + $0x7f8] sm:$0xff] }
 0xcb8   :  { %2375 = vmatprep.subr.bf16.mxu1 %v2236_v60  ;;  %v2279_v60 = vld [vmem:[#allocation3 + $0x7f0] sm:$0xff] }
 0xcbb   :  { %2376 = vmatpush1.bf16.msra.mxu1 %v2235_v61  ;;  %v2282_v61 = vld [vmem:[#allocation3 + $0x838] sm:$0xff] }
 0xcbc   :  { %2377 = vmatprep.subr.bf16.mxu1 %v2238_v62  ;;  %v2281_v62 = vld [vmem:[#allocation3 + $0x830] sm:$0xff] }
 0xcbf   :  { %2378 = vmatpush1.bf16.msra.mxu1 %v2237_v63  ;;  %v2284_v63 = vld [vmem:[#allocation3 + $0x878] sm:$0xff] }
 0xcc0   :  { %2379 = vmatprep.subr.bf16.mxu1 %v2240_v0  ;;  %v2283_v0 = vld [vmem:[#allocation3 + $0x870] sm:$0xff] }
 0xcc3   :  { %2380 = vmatpush1.bf16.msra.mxu1 %v2239_v8  ;;  %v2286_v8 = vld [vmem:[#allocation3 + $0x8b8] sm:$0xff] }
 0xcc4   :  { %2381 = vmatprep.subr.bf16.mxu1 %v2242_v14  ;;  %v2285_v14 = vld [vmem:[#allocation3 + $0x8b0] sm:$0xff] }
 0xcc7   :  { %2382 = vmatpush1.bf16.msra.mxu1 %v2241_v15  ;;  %v2288_v15 = vld [vmem:[#allocation3 + $0x8f8] sm:$0xff] }
 0xcc8   :  { %2383 = vmatprep.subr.bf16.mxu1 %v2244_v32  ;;  %v2287_v32 = vld [vmem:[#allocation3 + $0x8f0] sm:$0xff] }
 0xccb   :  { %2384 = vmatpush1.bf16.msra.mxu1 %v2243_v40  ;;  %v2290_v40 = vld [vmem:[#allocation3 + $0x938] sm:$0xff] }
 0xccc   :  { %2385 = vmatprep.subr.bf16.mxu1 %v2246_v16  ;;  %v2289_v16 = vld [vmem:[#allocation3 + $0x930] sm:$0xff] }
 0xccf   :  { %2386 = vmatpush1.bf16.msra.mxu1 %v2245_v3  ;;  %v2292_v3 = vld [vmem:[#allocation3 + $0x978] sm:$0xff] }
 0xcd0   :  { %2387 = vmatprep.subr.bf16.mxu1 %v2248_v11  ;;  %v2294_v11 = vld [vmem:[#allocation3 + $0x9b8] sm:$0xff] }
 0xcd3   :  { %2388 = vmatpush1.bf16.msra.mxu1 %v2247_v17  ;;  %v2296_v17 = vld [vmem:[#allocation3 + $0x9f8] sm:$0xff] }
 0xcd4   :  { %2398 = vmatprep.subr.bf16.mxu1 %v2250_v18  ;;  %v2295_v18 = vld [vmem:[#allocation3 + $0x9f0] sm:$0xff] }
 0xcd6   :  { %2390 = vmatmul.mubr.bf16.vlgmr.msra.gmra.mrb[16].mxu1 %v3728_v55  ;;  %v2259_v55 = vld [vmem:[#allocation3 + $0x570] sm:$0xff] }
 0xcd7   :  { %2399 = vmatpush1.bf16.msra.mxu1 %v2249_v19  ;;  %2430 = vmatprep.mubr.bf16.mxu1 %v3733_v56  ;;  %v2261_v56 = vld [vmem:[#allocation3 + $0x5b0] sm:$0xff]  ;;  %v2298_v19 = vld [vmem:[#allocation3 + $0xa38] sm:$0xff] }
 0xcd8   :  { %2400 = vmatprep.subr.bf16.mxu1 %v2252_v20  ;;  %v2297_v20 = vld [vmem:[#allocation3 + $0xa30] sm:$0xff] }
 0xcdb   :  { %2401 = vmatpush1.bf16.msra.mxu1 %v2251_v50  ;;  %v2300_v50 = vld [vmem:[#allocation3 + $0xa78] sm:$0xff] }
 0xcdc   :  { %2402 = vmatprep.subr.bf16.mxu1 %v2254_v21  ;;  %v2299_v21 = vld [vmem:[#allocation3 + $0xa70] sm:$0xff] }
 0xcdf   :  { %2403 = vmatpush1.bf16.msra.mxu1 %v2253_v54  ;;  %v2302_v54 = vld [vmem:[#allocation3 + $0xab8] sm:$0xff] }
 0xce0   :  { %2404 = vmatprep.subr.bf16.mxu1 %v2256_v22  ;;  %v2301_v22 = vld [vmem:[#allocation3 + $0xab0] sm:$0xff] }
 0xce3   :  { %2405 = vmatpush1.bf16.msra.mxu1 %v2255_v23  ;;  %v2304_v23 = vld [vmem:[#allocation3 + $0xaf8] sm:$0xff] }
 0xce4   :  { %2406 = vmatprep.subr.bf16.mxu1 %v2258_v25  ;;  %v2303_v25 = vld [vmem:[#allocation3 + $0xaf0] sm:$0xff] }
 0xce7   :  { %2407 = vmatpush1.bf16.msra.mxu1 %v2257_v30  ;;  %v2306_v30 = vld [vmem:[#allocation3 + $0xb38] sm:$0xff] }
 0xce8   :  { %2408 = vmatprep.subr.bf16.mxu1 %v2260_v10  ;;  %v2305_v10 = vld [vmem:[#allocation3 + $0xb30] sm:$0xff] }
 0xceb   :  { %2409 = vmatpush1.bf16.msra.mxu1 %v2259_v55  ;;  %v2308_v55 = vld [vmem:[#allocation3 + $0xb78] sm:$0xff] }
 0xcec   :  { %2410 = vmatprep.subr.bf16.mxu1 %v2262_v42  ;;  %v2307_v42 = vld [vmem:[#allocation3 + $0xb70] sm:$0xff] }
 0xcef   :  { %2411 = vmatpush1.bf16.msra.mxu1 %v2261_v56  ;;  %v2310_v56 = vld [vmem:[#allocation3 + $0xbb8] sm:$0xff] }
 0xcf0   :  { %2412 = vmatprep.subr.bf16.mxu1 %v2264_v33  ;;  %v2309_v33 = vld [vmem:[#allocation3 + $0xbb0] sm:$0xff] }
 0xcf3   :  { %2413 = vmatpush1.bf16.msra.mxu1 %v2263_v39  ;;  %v2312_v39 = vld [vmem:[#allocation3 + $0xbf8] sm:$0xff] }
 0xcf4   :  { %2414 = vmatprep.subr.bf16.mxu1 %v2266_v43  ;;  %v2311_v43 = vld [vmem:[#allocation3 + $0xbf0] sm:$0xff] }
 0xcf7   :  { %2415 = vmatpush1.bf16.msra.mxu1 %v2265_v44  ;;  %v2314_v44 = vld [vmem:[#allocation3 + $0xc38] sm:$0xff] }
 0xcf8   :  { %2416 = vmatprep.subr.bf16.mxu1 %v2268_v45  ;;  %v2313_v45 = vld [vmem:[#allocation3 + $0xc30] sm:$0xff] }
 0xcfb   :  { %2417 = vmatpush1.bf16.msra.mxu1 %v2267_v46  ;;  %v2316_v46 = vld [vmem:[#allocation3 + $0xc78] sm:$0xff] }
 0xcfc   :  { %2418 = vmatprep.subr.bf16.mxu1 %v2270_v49  ;;  %v2315_v49 = vld [vmem:[#allocation3 + $0xc70] sm:$0xff] }
 0xcff   :  { %2419 = vmatpush1.bf16.msra.mxu1 %v2269_v53  ;;  %v2318_v53 = vld [vmem:[#allocation3 + $0xcb8] sm:$0xff] }
 0xd00   :  { %2420 = vmatprep.subr.bf16.mxu1 %v2272_v36  ;;  %v2317_v36 = vld [vmem:[#allocation3 + $0xcb0] sm:$0xff] }
 0xd03   :  { %2421 = vmatpush1.bf16.msra.mxu1 %v2271_v35  ;;  %v2320_v35 = vld [vmem:[#allocation3 + $0xcf8] sm:$0xff] }
 0xd04   :  { %2422 = vmatprep.subr.bf16.mxu1 %v2274_v57  ;;  %v2319_v57 = vld [vmem:[#allocation3 + $0xcf0] sm:$0xff] }
 0xd07   :  { %2423 = vmatpush1.bf16.msra.mxu1 %v2273_v58  ;;  %v2322_v58 = vld [vmem:[#allocation3 + $0xd38] sm:$0xff] }
 0xd08   :  { %2424 = vmatprep.subr.bf16.mxu1 %v2276_v48  ;;  %v2321_v48 = vld [vmem:[#allocation3 + $0xd30] sm:$0xff] }
 0xd0b   :  { %2425 = vmatpush1.bf16.msra.mxu1 %v2275_v52  ;;  %v2324_v52 = vld [vmem:[#allocation3 + $0xd78] sm:$0xff] }
 0xd0c   :  { %2426 = vmatprep.subr.bf16.mxu1 %v2278_v59  ;;  %v2326_v59 = vld [vmem:[#allocation3 + $0xdb8] sm:$0xff] }
 0xd0f   :  { %2427 = vmatpush1.bf16.msra.mxu1 %v2277_v7  ;;  %v2328_v7 = vld [vmem:[#allocation3 + $0xdf8] sm:$0xff] }
 0xd10   :  { %2428 = vmatprep.subr.bf16.mxu1 %v2280_v13  ;;  %v2327_v13 = vld [vmem:[#allocation3 + $0xdf0] sm:$0xff] }
 0xd13   :  { %2429 = vmatpush1.bf16.msra.mxu1 %v2279_v60  ;;  %v2330_v60 = vld [vmem:[#allocation3 + $0xe38] sm:$0xff] }
 0xd14   :  { %2439 = vmatprep.subr.bf16.mxu1 %v2282_v61  ;;  %v2329_v61 = vld [vmem:[#allocation3 + $0xe30] sm:$0xff] }
 0xd16   :  { %2431 = vmatmul.mubr.bf16.vlgmr.msra.gmra.mrb[16].mxu1 %v3740_v28  ;;  %v2291_v28 = vld [vmem:[#allocation3 + $0x970] sm:$0xff] }
 0xd17   :  { %2440 = vmatpush1.bf16.msra.mxu1 %v2281_v62  ;;  %2471 = vmatprep.mubr.bf16.mxu1 %v3745_v29  ;;  %v2293_v29 = vld [vmem:[#allocation3 + $0x9b0] sm:$0xff]  ;;  %v2332_v62 = vld [vmem:[#allocation3 + $0xe78] sm:$0xff] }
 0xd18   :  { %2441 = vmatprep.subr.bf16.mxu1 %v2284_v63  ;;  %v2331_v63 = vld [vmem:[#allocation3 + $0xe70] sm:$0xff] }
 0xd1b   :  { %2442 = vmatpush1.bf16.msra.mxu1 %v2283_v0  ;;  %v2334_v0 = vld [vmem:[#allocation3 + $0xeb8] sm:$0xff] }
 0xd1c   :  { %2443 = vmatprep.subr.bf16.mxu1 %v2286_v8  ;;  %v2333_v8 = vld [vmem:[#allocation3 + $0xeb0] sm:$0xff] }
 0xd1f   :  { %2444 = vmatpush1.bf16.msra.mxu1 %v2285_v14  ;;  %v2336_v14 = vld [vmem:[#allocation3 + $0xef8] sm:$0xff] }
 0xd20   :  { %2445 = vmatprep.subr.bf16.mxu1 %v2288_v15  ;;  %v2335_v15 = vld [vmem:[#allocation3 + $0xef0] sm:$0xff] }
 0xd23   :  { %2446 = vmatpush1.bf16.msra.mxu1 %v2287_v32  ;;  %v2338_v32 = vld [vmem:[#allocation3 + $0xf38] sm:$0xff] }
 0xd24   :  { %2447 = vmatprep.subr.bf16.mxu1 %v2290_v40  ;;  %v2337_v40 = vld [vmem:[#allocation3 + $0xf30] sm:$0xff] }
 0xd27   :  { %2448 = vmatpush1.bf16.msra.mxu1 %v2289_v16  ;;  %v2340_v16 = vld [vmem:[#allocation3 + $0xf78] sm:$0xff] }
 0xd28   :  { %2449 = vmatprep.subr.bf16.mxu1 %v2292_v3  ;;  %v2339_v3 = vld [vmem:[#allocation3 + $0xf70] sm:$0xff] }
 0xd2b   :  { %2450 = vmatpush1.bf16.msra.mxu1 %v2291_v28  ;;  %v2342_v28 = vld [vmem:[#allocation3 + $0xfb8] sm:$0xff] }
 0xd2c   :  { %2451 = vmatprep.subr.bf16.mxu1 %v2294_v11  ;;  %v2341_v11 = vld [vmem:[#allocation3 + $0xfb0] sm:$0xff] }
 0xd2f   :  { %2452 = vmatpush1.bf16.msra.mxu1 %v2293_v29  ;;  %v2344_v29 = vld [vmem:[#allocation3 + $0xff8] sm:$0xff] }
 0xd30   :  { %2453 = vmatprep.subr.bf16.mxu1 %v2296_v17  ;;  %v2343_v17 = vld [vmem:[#allocation3 + $0xff0] sm:$0xff] }
 0xd33   :  { %2454 = vmatpush1.bf16.msra.mxu1 %v2295_v18  ;;  %v2345_v18 = vld [vmem:[#allocation18 + $0x6] sm:$0x3] }
 0xd34   :  { %2455 = vmatprep.subr.bf16.mxu1 %v2298_v19  ;;  %v2350_v19 = vrot.slane %v2345_v18, %v3657_v9 }
 0xd37   :  { %2456 = vmatpush1.bf16.msra.mxu1 %v2297_v20  ;;  %v2354_v20 = vrot.slane %v2345_v18, %v3659_v12 }
 0xd38   :  { %2457 = vmatprep.subr.bf16.mxu1 %v2300_v50 }
 0xd3b   :  { %2458 = vmatpush1.bf16.msra.mxu1 %v2299_v21 }
 0xd3c   :  { %2459 = vmatprep.subr.bf16.mxu1 %v2302_v54 }
 0xd3f   :  { %2460 = vmatpush1.bf16.msra.mxu1 %v2301_v22 }
 0xd40   :  { %2461 = vmatprep.subr.bf16.mxu1 %v2304_v23 }
 0xd43   :  { %2462 = vmatpush1.bf16.msra.mxu1 %v2303_v25 }
 0xd44   :  { %2463 = vmatprep.subr.bf16.mxu1 %v2306_v30 }
 0xd47   :  { %2464 = vmatpush1.bf16.msra.mxu1 %v2305_v10 }
 0xd48   :  { %2465 = vmatprep.subr.bf16.mxu1 %v2308_v55 }
 0xd4b   :  { %2466 = vmatpush1.bf16.msra.mxu1 %v2307_v42 }
 0xd4c   :  { %2467 = vmatprep.subr.bf16.mxu1 %v2310_v56 }
 0xd4f   :  { %2468 = vmatpush1.bf16.msra.mxu1 %v2309_v33 }
 0xd50   :  { %2469 = vmatprep.subr.bf16.mxu1 %v2312_v39 }
 0xd53   :  { %2470 = vmatpush1.bf16.msra.mxu1 %v2311_v43 }
 0xd54   :  { %2480 = vmatprep.subr.bf16.mxu1 %v2314_v44 }
 0xd56   :  { %2472 = vmatmul.mubr.bf16.vlgmr.msra.gmra.mrb[16].mxu1 %v3752_v2  ;;  %v2323_v2 = vld [vmem:[#allocation3 + $0xd70] sm:$0xff] }
 0xd57   :  { %2481 = vmatpush1.bf16.msra.mxu1 %v2313_v45  ;;  %2512 = vmatprep.mubr.bf16.mxu1 %v3757_v4  ;;  %v2325_v4 = vld [vmem:[#allocation3 + $0xdb0] sm:$0xff] }
 0xd58   :  { %2482 = vmatprep.subr.bf16.mxu1 %v2316_v46 }
 0xd5b   :  { %2483 = vmatpush1.bf16.msra.mxu1 %v2315_v49 }
 0xd5c   :  { %2484 = vmatprep.subr.bf16.mxu1 %v2318_v53 }
 0xd5f   :  { %2485 = vmatpush1.bf16.msra.mxu1 %v2317_v36 }
 0xd60   :  { %2486 = vmatprep.subr.bf16.mxu1 %v2320_v35 }
 0xd63   :  { %2487 = vmatpush1.bf16.msra.mxu1 %v2319_v57 }
 0xd64   :  { %2488 = vmatprep.subr.bf16.mxu1 %v2322_v58 }
 0xd67   :  { %2489 = vmatpush1.bf16.msra.mxu1 %v2321_v48 }
 0xd68   :  { %2490 = vmatprep.subr.bf16.mxu1 %v2324_v52 }
 0xd6b   :  { %2491 = vmatpush1.bf16.msra.mxu1 %v2323_v2 }
 0xd6c   :  { %2492 = vmatprep.subr.bf16.mxu1 %v2326_v59 }
 0xd6f   :  { %2493 = vmatpush1.bf16.msra.mxu1 %v2325_v4 }
 0xd70   :  { %2494 = vmatprep.subr.bf16.mxu1 %v2328_v7 }
 0xd73   :  { %2495 = vmatpush1.bf16.msra.mxu1 %v2327_v13 }
 0xd74   :  { %2496 = vmatprep.subr.bf16.mxu1 %v2330_v60 }
 0xd77   :  { %2497 = vmatpush1.bf16.msra.mxu1 %v2329_v61 }
 0xd78   :  { %2498 = vmatprep.subr.bf16.mxu1 %v2332_v62 }
 0xd7b   :  { %2499 = vmatpush1.bf16.msra.mxu1 %v2331_v63 }
 0xd7c   :  { %2500 = vmatprep.subr.bf16.mxu1 %v2334_v0 }
 0xd7f   :  { %2501 = vmatpush1.bf16.msra.mxu1 %v2333_v8 }
 0xd80   :  { %2502 = vmatprep.subr.bf16.mxu1 %v2336_v14 }
 0xd83   :  { %2503 = vmatpush1.bf16.msra.mxu1 %v2335_v15 }
 0xd84   :  { %2504 = vmatprep.subr.bf16.mxu1 %v2338_v32 }
 0xd87   :  { %2505 = vmatpush1.bf16.msra.mxu1 %v2337_v40 }
 0xd88   :  { %2506 = vmatprep.subr.bf16.mxu1 %v2340_v16 }
 0xd8b   :  { %2507 = vmatpush1.bf16.msra.mxu1 %v2339_v3 }
 0xd8c   :  { %2508 = vmatprep.subr.bf16.mxu1 %v2342_v28 }
 0xd8f   :  { %2509 = vmatpush1.bf16.msra.mxu1 %v2341_v11 }
 0xd90   :  { %2510 = vmatprep.subr.bf16.mxu1 %v2344_v29 }
 0xd93   :  { %2511 = vmatpush1.bf16.msra.mxu1 %v2343_v17 }
 0xd96   :  { %2513 = vmatmul.mubr.bf16.vlgmr.msra.gmra.mrb[16].mxu1 %v3764_v41 }
 0xe69   :  { %v2514_v50 = vpop.f32.mrb[16].mxu1 }
 0xe6a   :  { %v3817_v21 = vadd.f32 %v2514_v50, %v2350_v19  ;;  %v2516_v54 = vpop.f32.mrb[17].mxu1 }
 0xe6b   :  { %v3819_v22 = vadd.f32 %v2516_v54, %v2354_v20  ;;  %v2518_v23 = vpop.f32.mrb[18].mxu1 }
 0xe6c   :  { %v2521_v25 = vmax.f32 %v3817_v21, 0.0  ;;  %v2519_v30 = vpop.f32.mrb[19].mxu1 }
 0xe6d   :  { %v2522_v10 = vmax.f32 %v3819_v22, 0.0 }
 0xe6e   :  { %3372 = dma.done.wait [#allocation9], 8192 }
 0xe6f   :  { %3373 = vsyncadd [#allocation9], 4294959104  ;;  %v2950_v9 = vpack.c.bf16 %v1571_v6, %v1571_v6  ;;  %v2952_v12 = vpack.c.bf16 %v1888_v37, %v1888_v37  ;;  %v2547_v41 = vld [vmem:[#allocation4 + $0x40] sm:$0xff]  ;;  %v2548_v33 = vld [vmem:[#allocation4 + $0x48] sm:$0xff]  ;;  %v2949_v15 = vpack.c.bf16 %v1570_v1, %v1570_v1  ;;  %v2951_v32 = vpack.c.bf16 %v1887_v5, %v1887_v5  ;;  %s3416_s7 = smov [#allocation21]  }
 0xe70   :  { %v2563_v55 = vld [vmem:[#allocation4 + $0xc0] sm:$0xff]  ;;  %2957 = vmatprep.subr.bf16.mxu0 %v2547_v41  ;;  %v2564_v39 = vld [vmem:[#allocation4 + $0xc8] sm:$0xff]  ;;  %v2549_v43 = vld [vmem:[#allocation4 + $0x50] sm:$0xff]  ;;  %v2954_v11 = vpack.c.bf16 %v2205_v38, %v2205_v38  ;;  %v2956_v47 = vpack.c.bf16 %v2522_v10, %v2522_v10  ;;  %s2805_s28 = sshll.u32 %s3416_s7, 4  ;;  %s2806_s28 = int_to_ptr.vmem [resolvable:$true] %s2805_s28 }
 0xe71   :  { %2670 = vmatprep.mubr.bf16.mxu0 %v2950_v9  ;;  %2710 = vmatprep.mubr.bf16.mxu1 %v2952_v12  ;;  %v2539_v42 = vld [vmem:[#allocation4] sm:$0xff]  ;;  %v2540_v51 = vld [vmem:[#allocation4 + $0x8] sm:$0xff]  ;;  %v2565_v34 = vld [vmem:[#allocation4 + $0xd0] sm:$0xff]  ;;  %s3326_s10 = scalar_lea.vmem %s2806_s28, 128  ;;  %p3331_p1 = scmp.lt.s32.totalorder %s2806_s28, %s2806_s28 }
 0xe72   :  { %2979 = vmatprep.subr.bf16.mxu1 %v2563_v55  ;;  %v2555_v56 = vld [vmem:[#allocation4 + $0x80] sm:$0xff]  ;;  %2958 = vmatpush3.bf16.msra.mxu0 %v2539_v42  ;;  %v2556_v6 = vld [vmem:[#allocation4 + $0x88] sm:$0xff]  ;;  %v2541_v37 = vld [vmem:[#allocation4 + $0x10] sm:$0xff]  ;;  %p3327_p0 = scmp.ne.s32.totalorder %s2806_s28, %s3326_s10  ;;  %p3332_p2 = scmp.lt.s32.totalorder %s3326_s10, %s3326_s10 }
 0xe73   :  { %2980 = vmatpush3.bf16.msra.mxu1 %v2555_v56  ;;  %2959 = vmatprep.subr.bf16.mxu0 %v2548_v33  ;;  %v2557_v44 = vld [vmem:[#allocation4 + $0x90] sm:$0xff]  ;;  %v2550_v45 = vld [vmem:[#allocation4 + $0x58] sm:$0xff]  ;;  %v2551_v36 = vld [vmem:[#allocation4 + $0x60] sm:$0xff] }
 0xe74   :  { %2981 = vmatprep.subr.bf16.mxu1 %v2564_v39  ;;  %v2566_v46 = vld [vmem:[#allocation4 + $0xd8] sm:$0xff]  ;;  %v2567_v35 = vld [vmem:[#allocation4 + $0xe0] sm:$0xff]  ;;  %v2552_v48 = vld [vmem:[#allocation4 + $0x68] sm:$0xff]  ;;  %p3333_p3 = por %p3332_p2, %p3331_p1 }
 0xe75   :  { %v2542_v49 = vld [vmem:[#allocation4 + $0x18] sm:$0xff]  ;;  %v2543_v57 = vld [vmem:[#allocation4 + $0x20] sm:$0xff]  ;;  %v2568_v52 = vld [vmem:[#allocation4 + $0xe8] sm:$0xff] }
 0xe76   :  { %2960 = vmatpush3.bf16.msra.mxu0 %v2540_v51  ;;  %v2558_v53 = vld [vmem:[#allocation4 + $0x98] sm:$0xff]  ;;  %v2559_v58 = vld [vmem:[#allocation4 + $0xa0] sm:$0xff]  ;;  %v2544_v2 = vld [vmem:[#allocation4 + $0x28] sm:$0xff]  ;;  %p3334_p4 = pnand %p3333_p3, %p3327_p0 }
 0xe77   :  { %2982 = vmatpush3.bf16.msra.mxu1 %v2556_v6  ;;  %2961 = vmatprep.subr.bf16.mxu0 %v2549_v43  ;;  %v2560_v59 = vld [vmem:[#allocation4 + $0xa8] sm:$0xff]  ;;  %v2553_v4 = vld [vmem:[#allocation4 + $0x70] sm:$0xff]  ;;  %v2554_v61 = vld [vmem:[#allocation4 + $0x78] sm:$0xff]  ;;  %v2953_v43 = vpack.c.bf16 %v2204_v31, %v2204_v31 }
 0xe78   :  { %2983 = vmatprep.subr.bf16.mxu1 %v2565_v34  ;;  %v2569_v7 = vld [vmem:[#allocation4 + $0xf0] sm:$0xff]  ;;  %v2570_v62 = vld [vmem:[#allocation4 + $0xf8] sm:$0xff]  ;;  %v2579_v8 = vld [vmem:[#allocation4 + $0x140] sm:$0xff]  ;;  %v2955_v34 = vpack.c.bf16 %v2521_v25, %v2521_v25 }
 0xe79   :  { %v2545_v13 = vld [vmem:[#allocation4 + $0x30] sm:$0xff]  ;;  %v2546_v63 = vld [vmem:[#allocation4 + $0x38] sm:$0xff]  ;;  %v2595_v14 = vld [vmem:[#allocation4 + $0x1c0] sm:$0xff] }
 0xe7a   :  { %2962 = vmatpush3.bf16.msra.mxu0 %v2541_v37  ;;  %v2561_v60 = vld [vmem:[#allocation4 + $0xb0] sm:$0xff]  ;;  %v2562_v0 = vld [vmem:[#allocation4 + $0xb8] sm:$0xff]  ;;  %v2571_v40 = vld [vmem:[#allocation4 + $0x100] sm:$0xff] }
 0xe7b   :  { %2984 = vmatpush3.bf16.msra.mxu1 %v2557_v44  ;;  %2963 = vmatprep.subr.bf16.mxu0 %v2550_v45  ;;  %v2587_v16 = vld [vmem:[#allocation4 + $0x180] sm:$0xff]  ;;  %v2580_v3 = vld [vmem:[#allocation4 + $0x148] sm:$0xff]  ;;  %v2581_v5 = vld [vmem:[#allocation4 + $0x150] sm:$0xff] }
 0xe7c   :  { %2985 = vmatprep.subr.bf16.mxu1 %v2566_v46  ;;  %v2596_v28 = vld [vmem:[#allocation4 + $0x1c8] sm:$0xff]  ;;  %v2597_v29 = vld [vmem:[#allocation4 + $0x1d0] sm:$0xff]  ;;  %v2582_v17 = vld [vmem:[#allocation4 + $0x158] sm:$0xff] }
 0xe7d   :  { %v2572_v1 = vld [vmem:[#allocation4 + $0x108] sm:$0xff]  ;;  %v2573_v26 = vld [vmem:[#allocation4 + $0x110] sm:$0xff]  ;;  %v2598_v18 = vld [vmem:[#allocation4 + $0x1d8] sm:$0xff] }
 0xe7e   :  { %2964 = vmatpush3.bf16.msra.mxu0 %v2542_v49  ;;  %v2588_v27 = vld [vmem:[#allocation4 + $0x188] sm:$0xff]  ;;  %v2589_v38 = vld [vmem:[#allocation4 + $0x190] sm:$0xff]  ;;  %v2574_v19 = vld [vmem:[#allocation4 + $0x118] sm:$0xff] }
 0xe7f   :  { %2986 = vmatpush3.bf16.msra.mxu1 %v2558_v53  ;;  %2965 = vmatprep.subr.bf16.mxu0 %v2551_v36  ;;  %v2590_v20 = vld [vmem:[#allocation4 + $0x198] sm:$0xff]  ;;  %v2583_v50 = vld [vmem:[#allocation4 + $0x160] sm:$0xff]  ;;  %v2584_v30 = vld [vmem:[#allocation4 + $0x168] sm:$0xff] }
 0xe80   :  { %2987 = vmatprep.subr.bf16.mxu1 %v2567_v35  ;;  %v2599_v54 = vld [vmem:[#allocation4 + $0x1e0] sm:$0xff]  ;;  %v2600_v10 = vld [vmem:[#allocation4 + $0x1e8] sm:$0xff]  ;;  %v2585_v41 = vld [vmem:[#allocation4 + $0x170] sm:$0xff] }
 0xe81   :  { %v2575_v22 = vld [vmem:[#allocation4 + $0x120] sm:$0xff]  ;;  %v2576_v9 = vld [vmem:[#allocation4 + $0x128] sm:$0xff]  ;;  %v2601_v55 = vld [vmem:[#allocation4 + $0x1f0] sm:$0xff] }
 0xe82   :  { %2966 = vmatpush3.bf16.msra.mxu0 %v2543_v57  ;;  %v2591_v23 = vld [vmem:[#allocation4 + $0x1a0] sm:$0xff]  ;;  %v2592_v12 = vld [vmem:[#allocation4 + $0x1a8] sm:$0xff]  ;;  %v2577_v42 = vld [vmem:[#allocation4 + $0x130] sm:$0xff] }
 0xe83   :  { %2988 = vmatpush3.bf16.msra.mxu1 %v2559_v58  ;;  %2967 = vmatprep.subr.bf16.mxu0 %v2552_v48  ;;  %v2593_v56 = vld [vmem:[#allocation4 + $0x1b0] sm:$0xff]  ;;  %v2586_v33 = vld [vmem:[#allocation4 + $0x178] sm:$0xff] }
 0xe84   :  { %2989 = vmatprep.subr.bf16.mxu1 %v2568_v52  ;;  %v2602_v39 = vld [vmem:[#allocation4 + $0x1f8] sm:$0xff] }
 0xe85   :  { %v2578_v51 = vld [vmem:[#allocation4 + $0x138] sm:$0xff] }
 0xe86   :  { %2968 = vmatpush3.bf16.msra.mxu0 %v2544_v2  ;;  %v2594_v6 = vld [vmem:[#allocation4 + $0x1b8] sm:$0xff] }
 0xe87   :  { %2990 = vmatpush3.bf16.msra.mxu1 %v2560_v59  ;;  %2969 = vmatprep.subr.bf16.mxu0 %v2553_v4  ;;  %v2915_v45 = vld [vmem:[#allocation19] ss:$0 sm:$0xff] }
 0xe88   :  { %2991 = vmatprep.subr.bf16.mxu1 %v2569_v7 }
 0xe8a   :  { %2970 = vmatpush3.bf16.msra.mxu0 %v2545_v13 }
 0xe8b   :  { %2992 = vmatpush3.bf16.msra.mxu1 %v2561_v60  ;;  %2971 = vmatprep.subr.bf16.mxu0 %v2554_v61 }
 0xe8c   :  { %2993 = vmatprep.subr.bf16.mxu1 %v2570_v62 }
 0xe8e   :  { %2972 = vmatpush3.bf16.msra.mxu0 %v2546_v63 }
 0xe8f   :  { %2994 = vmatpush3.bf16.msra.mxu1 %v2562_v0  ;;  %3001 = vmatprep.subr.bf16.mxu0 %v2579_v8 }
 0xe90   :  { %3023 = vmatprep.subr.bf16.mxu1 %v2595_v14 }
 0xe91   :  { %2671 = vmatmul.mubr.bf16.vlgmr.msra.gmra.mrb[20].mxu0 %v2949_v15 }
 0xe92   :  { %2711 = vmatmul.mubr.bf16.vlgmr.msra.gmra.mrb[20].mxu1 %v2951_v32  ;;  %3002 = vmatpush3.bf16.msra.mxu0 %v2571_v40 }
 0xe93   :  { %3024 = vmatpush3.bf16.msra.mxu1 %v2587_v16  ;;  %3003 = vmatprep.subr.bf16.mxu0 %v2580_v3 }
 0xe94   :  { %3025 = vmatprep.subr.bf16.mxu1 %v2596_v28  ;;  %2750 = vmatprep.mubr.bf16.mxu0 %v2954_v11 }
 0xe95   :  { %2790 = vmatprep.mubr.bf16.mxu1 %v2956_v47 }
 0xe96   :  { %3004 = vmatpush3.bf16.msra.mxu0 %v2572_v1 }
 0xe97   :  { %3026 = vmatpush3.bf16.msra.mxu1 %v2588_v27  ;;  %3005 = vmatprep.subr.bf16.mxu0 %v2581_v5 }
 0xe98   :  { %3027 = vmatprep.subr.bf16.mxu1 %v2597_v29 }
 0xe9a   :  { %3006 = vmatpush3.bf16.msra.mxu0 %v2573_v26 }
 0xe9b   :  { %3028 = vmatpush3.bf16.msra.mxu1 %v2589_v38  ;;  %3007 = vmatprep.subr.bf16.mxu0 %v2582_v17 }
 0xe9c   :  { %3029 = vmatprep.subr.bf16.mxu1 %v2598_v18 }
 0xe9e   :  { %3008 = vmatpush3.bf16.msra.mxu0 %v2574_v19 }
 0xe9f   :  { %3030 = vmatpush3.bf16.msra.mxu1 %v2590_v20  ;;  %3009 = vmatprep.subr.bf16.mxu0 %v2583_v50 }
 0xea0   :  { %3031 = vmatprep.subr.bf16.mxu1 %v2599_v54 }
 0xea2   :  { %3010 = vmatpush3.bf16.msra.mxu0 %v2575_v22 }
 0xea3   :  { %3032 = vmatpush3.bf16.msra.mxu1 %v2591_v23  ;;  %3011 = vmatprep.subr.bf16.mxu0 %v2584_v30 }
 0xea4   :  { %3033 = vmatprep.subr.bf16.mxu1 %v2600_v10 }
 0xea6   :  { %3012 = vmatpush3.bf16.msra.mxu0 %v2576_v9 }
 0xea7   :  { %3034 = vmatpush3.bf16.msra.mxu1 %v2592_v12  ;;  %3013 = vmatprep.subr.bf16.mxu0 %v2585_v41 }
 0xea8   :  { %3035 = vmatprep.subr.bf16.mxu1 %v2601_v55 }
 0xeaa   :  { %3014 = vmatpush3.bf16.msra.mxu0 %v2577_v42 }
 0xeab   :  { %3036 = vmatpush3.bf16.msra.mxu1 %v2593_v56  ;;  %3015 = vmatprep.subr.bf16.mxu0 %v2586_v33 }
 0xeac   :  { %3037 = vmatprep.subr.bf16.mxu1 %v2602_v39 }
 0xeae   :  { %3016 = vmatpush3.bf16.msra.mxu0 %v2578_v51 }
 0xeaf   :  { %3038 = vmatpush3.bf16.msra.mxu1 %v2594_v6 }
 0xeb1   :  { %2751 = vmatmul.mubr.bf16.vlgmr.msra.gmra.mrb[24].mxu0 %v2953_v43 }
 0xeb2   :  { %2791 = vmatmul.mubr.bf16.vlgmr.msra.gmra.mrb[24].mxu1 %v2955_v34 }
 0xf64   :  { %v2973_v37 = vpop.f32.mrb[20].mxu0 }
 0xf65   :  { %v2995_v44 = vpop.f32.mrb[20].mxu1  ;;  %v2974_v46 = vpop.f32.mrb[21].mxu0 }
 0xf66   :  { %v2996_v49 = vpop.f32.mrb[21].mxu1  ;;  %v2975_v53 = vadd.f32 %v2974_v46, %v2973_v37  ;;  %v2976_v35 = vpop.f32.mrb[22].mxu0 }
 0xf67   :  { %v2997_v36 = vadd.f32 %v2996_v49, %v2995_v44  ;;  %v2998_v57 = vpop.f32.mrb[22].mxu1  ;;  %v2977_v24 = vpop.f32.mrb[23].mxu0 }
 0xf68   :  { %v2999_v58 = vpop.f32.mrb[23].mxu1  ;;  %v2673_v31 = vadd.f32 %v2975_v53, %v2915_v45 }
 0xf6a   :  { %v2713_v48 = vadd.f32 %v2997_v36, %v2673_v31 }
 0xf84   :  { %v3017_v21 = vpop.f32.mrb[24].mxu0 }
 0xf85   :  { %v3039_v52 = vpop.f32.mrb[24].mxu1  ;;  %v3018_v25 = vpop.f32.mrb[25].mxu0 }
 0xf86   :  { %v3040_v2 = vpop.f32.mrb[25].mxu1  ;;  %v3019_v59 = vadd.f32 %v3018_v25, %v3017_v21  ;;  %v3020_v7 = vpop.f32.mrb[26].mxu0 }
 0xf87   :  { %v3041_v4 = vadd.f32 %v3040_v2, %v3039_v52  ;;  %v3042_v13 = vpop.f32.mrb[26].mxu1  ;;  %v3021_v60 = vpop.f32.mrb[27].mxu0 }
 0xf88   :  { %v3043_v61 = vpop.f32.mrb[27].mxu1  ;;  %v2753_v62 = vadd.f32 %v3019_v59, %v2713_v48 }
 0xf8a   :  { %v2793_v63 = vadd.f32 %v3041_v4, %v2753_v62 }
 0xf8c   :  { %2798 = vst [vmem:[#allocation21] sm:$0xff] %v2793_v63 }
 0xf8d   :  { %3337 = shalt.err (!%p3334_p4)
}
 0xf8e   :  { %s3338_s20 = scalar_lea.hbm %s3868_s9, 128 }
 0xf8f   :  { %p3339_p5 = scmp.ne.s32.totalorder %s3868_s9, %s3338_s20  ;;  %p3342_p6 = scmp.lt.u32.totalorder %s3338_s20, %s3868_s9 }
 0xf91   :  { %p3344_p7 = pnand %p3342_p6, %p3339_p5 }
 0xf93   :  { %3347 = shalt.err (!%p3344_p7)
}
 0xf94   :  { %2808 = dma.vmem_to_hbm [thread:$0]  %s2806_s28, 128, %s3868_s9, [#allocation12]  }
 0xf95   :  { %3374 = dma.done.wait [#allocation12], 128  }
 0xf96   :  { %3375 = vsyncadd [#allocation12], 4294967168 }
 0xf97   :  { %2812 = vsyncpa [#allocation11], 1 }
 0xf98   :  { %2813 = vsyncpa [#allocation14], 1 }
 0xf99   :  { %2814 = vsyncpa [#allocation17], 1 }
 0xf9a   :  { %2815 = vsyncpa [#allocation20], 1 }
 0xf9b   :  { %2816 = vsyncpa [#allocation12], 1 }
 0xf9c   :  { %2817 = vsyncmov [#allocation7] }
 0xf9f   :  { %s2818_s3 = vpop.sfrf %2817 }
 0xfa0   :  { %p2924_p8 = scmp.ne.s32.totalorder %s2818_s3, 0 }
 0xfa2   :  { %2822 = shalt.err (%p2924_p8)  }
 0xfa3   :  { %2824 = vsyncmov [#allocation7 + $0x1] }
 0xfa6   :  { %s2825_s25 = vpop.sfrf %2824 }
 0xfa7   :  { %p2925_p9 = scmp.ne.s32.totalorder %s2825_s25, 0 }
 0xfa9   :  { %2829 = shalt.err (%p2925_p9)  }
 0xfaa   :  { %2831 = vsyncmov [#allocation7 + $0x2] }
 0xfad   :  { %s2832_s27 = vpop.sfrf %2831 }
 0xfae   :  { %p2926_p10 = scmp.ne.s32.totalorder %s2832_s27, 0 }
 0xfb0   :  { %2836 = shalt.err (%p2926_p10)  }
 0xfb1   :  { %2838 = vsyncmov [#allocation7 + $0x3] }
 0xfb4   :  { %s2839_s9 = vpop.sfrf %2838 }
 0xfb5   :  { %p2927_p11 = scmp.ne.s32.totalorder %s2839_s9, 0 }
 0xfb7   :  { %2843 = shalt.err (%p2927_p11)  }
 0xfb8   :  { %2844 = vsyncmov [#allocation8] }
 0xfbb   :  { %s2845_s29 = vpop.sfrf %2844 }
 0xfbc   :  { %p2928_p12 = scmp.ne.s32.totalorder %s2845_s29, 0 }
 0xfbe   :  { %2849 = shalt.err (%p2928_p12)  }
 0xfbf   :  { %2851 = vsyncmov [#allocation8 + $0x1] }
 0xfc2   :  { %s2852_s26 = vpop.sfrf %2851 }
 0xfc3   :  { %p2929_p13 = scmp.ne.s32.totalorder %s2852_s26, 0 }
 0xfc5   :  { %2856 = shalt.err (%p2929_p13)  }
 0xfc6   :  { %2858 = vsyncmov [#allocation8 + $0x2] }
 0xfc9   :  { %s2859_s30 = vpop.sfrf %2858 }
 0xfca   :  { %p2930_p0 = scmp.ne.s32.totalorder %s2859_s30, 0 }
 0xfcc   :  { %2863 = shalt.err (%p2930_p0)  }
 0xfcd   :  { %2865 = vsyncmov [#allocation8 + $0x3] }
 0xfd0   :  { %s2866_s5 = vpop.sfrf %2865 }
 0xfd1   :  { %p2931_p1 = scmp.ne.s32.totalorder %s2866_s5, 0 }
 0xfd3   :  { %2870 = shalt.err (%p2931_p1)  }
 0xfd4   :  { %2871 = vsyncmov [#allocation9] }
 0xfd7   :  { %s2872_s14 = vpop.sfrf %2871 }
 0xfd8   :  { %p2932_p2 = scmp.ne.s32.totalorder %s2872_s14, 0 }
 0xfda   :  { %2876 = shalt.err (%p2932_p2)  }

</bundles_post_ra>
